<compile_context>
chip_gen: v5e
topology: v5e:2x2
jax: 0.10.0
libtpu: 0.0.40
codegen_flags: <defaults>
</compile_context>

<pallas_src>
import functools
import math

import jax
import jax.numpy as jnp
import numpy as np
from jax import lax
from jax.experimental import pallas as pl
from jax.experimental.pallas import tpu as pltpu

_LOGPI = math.log(math.pi)


def _round_up(x, m):
    return ((x + m - 1) // m) * m


# -----------------------------------------------------------------------------
# Pass A: E-step + sufficient-statistic accumulation + momentum M-step finalize
# -----------------------------------------------------------------------------
def _stats_kernel(x_ref, pis_ref, mu_ref, sig_ref, s1o_ref, s2o_ref, s3o_ref,
                  aff_ref, s1_ref, s2_ref, s3_ref, muup_ref, pisup_ref,
                  covd_ref, out2_ref,
                  s1_acc, s2_acc, s3_acc,
                  *, n_valid, momentum):
    R, D, T = x_ref.shape                       # T = sample-tile on lanes
    K = pis_ref.shape[0]
    m = momentum
    dlogpi = float(D) * _LOGPI

    step = pl.program_id(0)
    nsteps = pl.num_programs(0)

    @pl.when(step == 0)
    def _init():
        s1_acc[...] = jnp.zeros_like(s1_acc)
        s2_acc[...] = jnp.zeros_like(s2_acc)
        s3_acc[...] = jnp.zeros_like(s3_acc)

    x = x_ref[...]                              # (R, D, T)
    pis = pis_ref[...]                          # (K, R)
    mu = mu_ref[...]                            # (K, R, D)
    sig = sig_ref[...]                          # (K, R, D)  diag of old Sigma
    inv_sig = pl.reciprocal(sig)                # hoisted reciprocal (exact)
    mui = mu * inv_sig
    logdet = jnp.sum(jnp.log(jnp.abs(sig)), axis=-1)        # (K, R)
    c0 = jnp.sum(mu * mui, axis=-1)                         # (K, R)

    # Mahalanobis distance, vectorised over the sample (lane) axis:
    #   diffd[k,r,t] = sum_d (x[r,d,t]-mu[k,r,d])^2 * inv_sig[k,r,d]
    x_sq = x * x
    xq = jnp.sum(inv_sig[:, :, :, None] * x_sq[None, :, :, :], axis=2)  # (K,R,T)
    xl = jnp.sum(mui[:, :, :, None] * x[None, :, :, :], axis=2)         # (K,R,T)
    diffd = xq - 2.0 * xl + c0[:, :, None]
    expv = -0.5 * (logdet[:, :, None] + diffd + dlogpi)     # log density
    w = pis[:, :, None] * expv                              # pis * log-density
    aff = w / jnp.sum(w, axis=0, keepdims=True)             # K-normalised

    # Mask padded samples so they do not pollute the statistics.
    lane = lax.broadcasted_iota(jnp.int32, (1, T), 1)
    valid = (step * T + lane) < n_valid                     # (1, T)
    aff = jnp.where(valid[None, :, :], aff, 0.0)
    aff_ref[...] = aff                                      # lane-dense store

    # ---- sufficient statistics (contraction over T runs on the MXU) ---------
    s1_acc[...] += jnp.sum(aff, axis=-1)                    # (K, R)
    dn = (((1,), (1,)), ((), ()))                           # contract lane axis
    s2_parts = []
    s3_parts = []
    for r in range(R):                                      # R tiny & static
        x_r = x[r]                                          # (D, T)
        a_r = aff[:, r, :]                                  # (K, T)
        s2_parts.append(
            lax.dot_general(a_r, x_r, dn, preferred_element_type=jnp.float32))
        wa_r = (a_r[:, None, :] * x_r[None, :, :]).reshape(K * D, T)
        s3_r = lax.dot_general(wa_r, x_r, dn, preferred_element_type=jnp.float32)
        s3_parts.append(s3_r.reshape(K, D, D))
    s2_acc[...] += jnp.stack(s2_parts, axis=1)              # (K, R, D)
    s3_acc[...] += jnp.stack(s3_parts, axis=1)              # (K, R, D, D)

    # ---- momentum M-step + updated parameters (last grid step only) ---------
    @pl.when(step == nsteps - 1)
    def _finalize():
        s1 = s1_acc[...]                                    # raw sums
        S1 = m * s1o_ref[...] + (1.0 - m) * s1
        S2 = m * s2o_ref[...] + (1.0 - m) * s2_acc[...]
        S3 = m * s3o_ref[...] + (1.0 - m) * s3_acc[...]
        s1_ref[...] = S1
        s2_ref[...] = S2
        s3_ref[...] = S3

        pisup_ref[...] = S1 / jnp.sum(S1, axis=0, keepdims=True)

        inv_S1 = pl.reciprocal(S1)                          # hoisted, reused
        mu_raw = S2 * inv_S1[:, :, None]
        norm = jnp.sqrt(jnp.sum(mu_raw * mu_raw, axis=-1, keepdims=True))
        muup_ref[...] = mu_raw / jnp.maximum(norm, 1e-12)   # F.normalize(dim=3)

        row = lax.broadcasted_iota(jnp.int32, (D, D), 0)
        col = lax.broadcasted_iota(jnp.int32, (D, D), 1)
        eye_d = jnp.where(row == col, 1.0, 0.0).astype(jnp.float32)
        s3_diag = jnp.sum(S3 * eye_d[None, None], axis=-1)  # (K, R, D)
        covd_ref[...] = (s3_diag * inv_S1[:, :, None]
                         - (S2 * S2) * (inv_S1 * inv_S1)[:, :, None])

        gm = s1 * (1.0 / float(n_valid))                    # affiliations.mean(0)
        out2_ref[...] = jnp.sum(jnp.log(gm) * gm, axis=0, keepdims=True)


# -----------------------------------------------------------------------------
# Pass B: per-sample outputs from updated parameters ("parallel" over tiles)
# -----------------------------------------------------------------------------
def _output_kernel(x_ref, aff_ref, muup_ref, pisup_ref, covd_ref,
                   out1_ref, out3_ref):
    R, D, T = x_ref.shape
    dlogpi = float(D) * _LOGPI

    x = x_ref[...]                                          # (R_s, D, T)
    aff = aff_ref[...]                                      # (K, R_m, T)
    cd = covd_ref[...]                                      # (K, R_m, D)
    mu = muup_ref[...]                                      # (K, R_m, D)

    inv2 = pl.reciprocal(cd)
    mui = mu * inv2
    logdet2 = jnp.sum(jnp.log(jnp.abs(cd)), axis=-1)        # (K, R_m)
    c2 = jnp.sum(mu * mui, axis=-1)                         # (K, R_m)
    const_km = jnp.log(pisup_ref[...]) - 0.5 * (logdet2 + c2 + dlogpi)

    # Fold the component (K) axis once per tile (factored quadratic form
    # needs ~3.5x fewer ops than materialising the (K,R,R,T) tensor).
    G = jnp.sum(aff[:, :, None, :] * inv2[:, :, :, None], axis=0)   # (R_m, D, T)
    H = jnp.sum(aff[:, :, None, :] * mui[:, :, :, None], axis=0)    # (R_m, D, T)
    W0 = jnp.sum(aff * const_km[:, :, None], axis=0)                # (R_m, T)

    x_sq = x * x
    quad_a = jnp.sum(G[:, None, :, :] * x_sq[None, :, :, :], axis=2)  # (R_m,R_s,T)
    quad_b = jnp.sum(H[:, None, :, :] * x[None, :, :, :], axis=2)     # (R_m,R_s,T)
    out1 = W0[:, None, :] - 0.5 * quad_a + quad_b                     # (R_m,R_s,T)
    out1_ref[...] = out1

    row = lax.broadcasted_iota(jnp.int32, (R, R), 0)
    col = lax.broadcasted_iota(jnp.int32, (R, R), 1)
    eye = jnp.where(row == col, 1.0, 0.0).astype(jnp.float32)
    out3_ref[...] = out1 - eye[:, :, None]


# -----------------------------------------------------------------------------
# Wrapper
# -----------------------------------------------------------------------------
def mixture_forward(samples, Phi, mu, Sigma, S1_old, S2_old, S3_old, momentum,
                    *, tile_n=512):
    """Pallas implementation of Mixture.forward.  Returns the same 10-tuple
    (out1, out2, out3, S1, S2, S3, mu_up, pis_up, cov, affiliations) with the
    same shapes as the PyTorch module."""
    f32 = jnp.float32
    samples = samples.astype(f32)
    N, R, D = samples.shape
    K = Phi.shape[1]
    assert tile_n % 128 == 0, "tile_n must be a multiple of 128 (lane tiling)"

    n_pad = _round_up(max(N, 1), tile_n)
    n_tiles = n_pad // tile_n

    # Sample axis on lanes: (R, D, N_pad), zero-padded.
    xt = jnp.transpose(samples, (1, 2, 0))
    if n_pad != N:
        xt = jnp.pad(xt, ((0, 0), (0, 0), (0, n_pad - N)))

    pis0 = Phi[0].astype(f32)                                        # (K, R)
    mu0 = mu[0].astype(f32)                                          # (K, R, D)
    sig_diag = jnp.diagonal(Sigma[0].astype(f32), axis1=-2, axis2=-1)  # (K, R, D)
    s1o = S1_old[0].astype(f32)                                      # (K, R)
    s2o = S2_old[0].astype(f32)                                      # (K, R, D)
    s3o = S3_old[0].astype(f32)                                      # (K, R, D, D)

    def const_spec(shape):
        return pl.BlockSpec(shape, lambda i, _s=len(shape): (0,) * _s)

    cparams = dict(vmem_limit_bytes=32 * 1024 * 1024)

    # ----------------------------- pass A: stats -----------------------------
    stats_kernel = functools.partial(
        _stats_kernel, n_valid=N, momentum=float(momentum))
    a_out_shape = (
        jax.ShapeDtypeStruct((K, R, n_pad), f32),   # affiliations (transposed)
        jax.ShapeDtypeStruct((K, R), f32),          # S1
        jax.ShapeDtypeStruct((K, R, D), f32),       # S2
        jax.ShapeDtypeStruct((K, R, D, D), f32),    # S3
        jax.ShapeDtypeStruct((K, R, D), f32),       # mu_up
        jax.ShapeDtypeStruct((K, R), f32),          # pis_up
        jax.ShapeDtypeStruct((K, R, D), f32),       # cov diag
        jax.ShapeDtypeStruct((1, R), f32),          # out2
    )
    aff_t, S1, S2, S3, mu_up, pis_up, cov_diag, out2 = pl.pallas_call(
        stats_kernel,
        out_shape=a_out_shape,
        grid_spec=pltpu.PrefetchScalarGridSpec(
            num_scalar_prefetch=0,
            grid=(n_tiles,),
            in_specs=[
                pl.BlockSpec((R, D, tile_n), lambda i: (0, 0, i)),   # samples
                const_spec((K, R)),                                  # pis_old
                const_spec((K, R, D)),                               # mu_old
                const_spec((K, R, D)),                               # sig diag
                const_spec((K, R)),                                  # S1_old
                const_spec((K, R, D)),                               # S2_old
                const_spec((K, R, D, D)),                            # S3_old
            ],
            out_specs=(
                pl.BlockSpec((K, R, tile_n), lambda i: (0, 0, i)),   # affiliations
                const_spec((K, R)),
                const_spec((K, R, D)),
                const_spec((K, R, D, D)),
                const_spec((K, R, D)),
                const_spec((K, R)),
                const_spec((K, R, D)),
                const_spec((1, R)),
            ),
            scratch_shapes=[
                pltpu.VMEM((K, R), f32),
                pltpu.VMEM((K, R, D), f32),
                pltpu.VMEM((K, R, D, D), f32),
            ]),
        compiler_params=pltpu.CompilerParams(
            dimension_semantics=("arbitrary",), **cparams),
    )(xt, pis0, mu0, sig_diag, s1o, s2o, s3o)

    # ----------------------------- pass B: outputs ---------------------------
    b_out_shape = (
        jax.ShapeDtypeStruct((R, R, n_pad), f32),   # out1 (transposed)
        jax.ShapeDtypeStruct((R, R, n_pad), f32),   # out3 (transposed)
    )
    out1_t, out3_t = pl.pallas_call(
        _output_kernel,
        out_shape=b_out_shape,
        grid_spec=pltpu.PrefetchScalarGridSpec(
            num_scalar_prefetch=0,
            grid=(n_tiles,),
            in_specs=[
                pl.BlockSpec((R, D, tile_n), lambda i: (0, 0, i)),   # samples
                pl.BlockSpec((K, R, tile_n), lambda i: (0, 0, i)),   # affiliations
                const_spec((K, R, D)),                               # mu_up
                const_spec((K, R)),                                  # pis_up
                const_spec((K, R, D)),                               # cov diag
            ],
            out_specs=(
                pl.BlockSpec((R, R, tile_n), lambda i: (0, 0, i)),
                pl.BlockSpec((R, R, tile_n), lambda i: (0, 0, i)),
            )),
        compiler_params=pltpu.CompilerParams(
            dimension_semantics=("parallel",), **cparams),
    )(xt, aff_t, mu_up, pis_up, cov_diag)

    # ----------------------- restore PyTorch layouts -------------------------
    aff = jnp.transpose(aff_t, (2, 0, 1))[:N]                 # (N, K, R)
    out1 = jnp.transpose(out1_t, (2, 0, 1))[:N][:, None]      # (N, 1, R, R)
    out3 = jnp.transpose(out3_t, (2, 0, 1))[:N][:, None]      # (N, 1, R, R)
    out2 = out2[None]                                         # (1, 1, R)
    cov = (cov_diag[..., None] * jnp.eye(D, dtype=f32))[None]  # (1, K, R, D, D)
    return (out1, out2, out3, S1[None], S2[None], S3[None],
            mu_up[None], pis_up[None], cov, aff)


# -----------------------------------------------------------------------------
# Pure-JAX transcription of the PyTorch forward (validation only)
# -----------------------------------------------------------------------------
def _reference_forward(samples, Phi, mu, Sigma, S1_old, S2_old, S3_old, momentum):
    f32 = jnp.float32
    x = samples.astype(f32)
    N, R, D = x.shape
    m = float(momentum)
    logpi_d = D * math.log(math.pi)

    pis = Phi[0].astype(f32)
    mu0 = mu[0].astype(f32)
    sig = jnp.diagonal(Sigma[0].astype(f32), axis1=-2, axis2=-1)
    logdet = jnp.sum(jnp.log(jnp.abs(sig)), axis=-1)
    inv = 1.0 / sig

    res = x[:, None, :, :] - mu0[None]
    diff = jnp.sum(res * res * inv[None], axis=-1)
    expv = -0.5 * (logdet[None] + diff + logpi_d)
    w = pis[None] * expv
    aff = w / jnp.sum(w, axis=1, keepdims=True)                       # (N, K, R)

    s1 = jnp.sum(aff, axis=0)
    S1 = m * S1_old[0] + (1.0 - m) * s1
    s2 = jnp.sum(aff[..., None] * x[:, None, :, :], axis=0)
    S2 = m * S2_old[0] + (1.0 - m) * s2
    outer = x[:, None, :, :, None] * x[:, None, :, None, :]
    s3 = jnp.sum(aff[..., None, None] * outer, axis=0)
    S3 = m * S3_old[0] + (1.0 - m) * s3
    pis_up = S1 / jnp.sum(S1, axis=0, keepdims=True)
    mu_raw = S2 / S1[..., None]
    nrm = jnp.sqrt(jnp.sum(mu_raw * mu_raw, axis=-1, keepdims=True))
    mu_up = mu_raw / jnp.maximum(nrm, 1e-12)
    cov_full = (S3 / S1[..., None, None]
                - (S2[..., :, None] * S2[..., None, :]) / (S1[..., None, None] ** 2))
    cov_diag = jnp.diagonal(cov_full, axis1=-2, axis2=-1)
    cov = cov_diag[..., None] * jnp.eye(D, dtype=f32)

    inv2 = 1.0 / cov_diag
    logdet2 = jnp.sum(jnp.log(jnp.abs(cov_diag)), axis=-1)
    res2 = x[:, None, None, :, :] - mu_up[None, :, :, None, :]
    diff2 = jnp.sum(res2 * res2 * inv2[None, :, :, None, :], axis=-1)
    term = (jnp.log(pis_up)[None, :, :, None]
            - 0.5 * (logdet2[None, :, :, None] + diff2 + logpi_d))
    out1 = jnp.sum(aff[:, :, :, None] * term, axis=1)
    out3 = out1 - jnp.eye(R, dtype=f32)[None]
    gm = jnp.mean(aff, axis=0)
    out2 = jnp.sum(jnp.log(gm) * gm, axis=0)

    return (out1[:, None], out2[None, None], out3[:, None],
            S1[None], S2[None], S3[None], mu_up[None], pis_up[None],
            cov[None], aff)


if __name__ == "__main__":
    key = jax.random.PRNGKey(0)
    N, K, R, D = 300, 3, 4, 8      # batch, components, n_rots, embedding dim
    momentum = 0.9
    tile_n = 128                   # small tile -> multi-step grid + tail masking

    k0, k1, k2, k3, k4, k5 = jax.random.split(key, 6)
    samples = jax.random.normal(k0, (N, R, D), jnp.float32)

    Phi = jnp.full((1, K, R), 1.0 / K, jnp.float32)
    mu_init = jax.random.normal(k1, (1, K, R, D), jnp.float32)
    diag0 = 1.0 + jax.random.uniform(k2, (1, K, R, D), dtype=jnp.float32)
    Sigma = diag0[..., None] * jnp.eye(D, dtype=jnp.float32)          # SPD diag

    S1_old = 2.0 + jax.random.uniform(k3, (1, K, R), dtype=jnp.float32)
    m0 = 0.1 * jax.random.normal(k4, (1, K, R, D), jnp.float32)
    S2_old = S1_old[..., None] * m0
    v0 = 0.5 + jax.random.uniform(k5, (1, K, R, D), dtype=jnp.float32)
    S3_old = S1_old[..., None, None] * (
        m0[..., :, None] * m0[..., None, :]
        + v0[..., None] * jnp.eye(D, dtype=jnp.float32))

    fwd = jax.jit(mixture_forward, static_argnames=("momentum", "tile_n"))
    outs = fwd(samples, Phi, mu_init, Sigma, S1_old, S2_old, S3_old,
               momentum=momentum, tile_n=tile_n)
    outs = jax.block_until_ready(outs)

    # Shape sanity against the PyTorch module's return signature.
    assert outs[0].shape == (N, 1, R, R)        # out1
    assert outs[1].shape == (1, 1, R)           # out2
    assert outs[2].shape == (N, 1, R, R)        # out3
    assert outs[3].shape == (1, K, R)           # S1
    assert outs[4].shape == (1, K, R, D)        # S2
    assert outs[5].shape == (1, K, R, D, D)     # S3
    assert outs[6].shape == (1, K, R, D)        # mu_up
    assert outs[7].shape == (1, K, R)           # pis_up
    assert outs[8].shape == (1, K, R, D, D)     # cov
    assert outs[9].shape == (N, K, R)           # affiliations

    # Numerical check against a pure-JAX transcription of the PyTorch forward.
    refs = _reference_forward(samples, Phi, mu_init, Sigma, S1_old, S2_old,
                              S3_old, momentum)
    for got, want in zip(outs, refs):
        np.testing.assert_allclose(np.asarray(got), np.asarray(want),
                                   rtol=2e-3, atol=2e-3)

    print("KERNEL_OK")
</pallas_src>

<mosaic_0001>
module attributes {stable_mosaic.version = 11 : i64} {
  func.func @_stats_kernel(%arg0: i32, %arg1: memref<4x8x128xf32, #tpu.memory_space<vmem>>, %arg2: memref<3x4xf32, #tpu.memory_space<vmem>>, %arg3: memref<3x4x8xf32, #tpu.memory_space<vmem>>, %arg4: memref<3x4x8xf32, #tpu.memory_space<vmem>>, %arg5: memref<3x4xf32, #tpu.memory_space<vmem>>, %arg6: memref<3x4x8xf32, #tpu.memory_space<vmem>>, %arg7: memref<3x4x8x8xf32, #tpu.memory_space<vmem>>, %arg8: memref<3x4x128xf32, #tpu.memory_space<vmem>>, %arg9: memref<3x4xf32, #tpu.memory_space<vmem>>, %arg10: memref<3x4x8xf32, #tpu.memory_space<vmem>>, %arg11: memref<3x4x8x8xf32, #tpu.memory_space<vmem>>, %arg12: memref<3x4x8xf32, #tpu.memory_space<vmem>>, %arg13: memref<3x4xf32, #tpu.memory_space<vmem>>, %arg14: memref<3x4x8xf32, #tpu.memory_space<vmem>>, %arg15: memref<1x4xf32, #tpu.memory_space<vmem>>, %arg16: memref<3x4xf32, #tpu.memory_space<vmem>>, %arg17: memref<3x4x8xf32, #tpu.memory_space<vmem>>, %arg18: memref<3x4x8x8xf32, #tpu.memory_space<vmem>>) attributes {dimension_semantics = [#tpu.dimension_semantics<arbitrary>], iteration_bounds = array<i64: 3>, scalar_prefetch = 0 : i64, scratch_operands = 3 : i64, tpu.core_type = #tpu.core_type<tc>, window_params = [{transform_indices = @transform_0, window_bounds = array<i64: 4, 8, 128>}, {pipeline_mode = #tpu.pipeline_mode<synchronous>, transform_indices = @transform_1, window_bounds = array<i64: 3, 4>}, {pipeline_mode = #tpu.pipeline_mode<synchronous>, transform_indices = @transform_2, window_bounds = array<i64: 3, 4, 8>}, {pipeline_mode = #tpu.pipeline_mode<synchronous>, transform_indices = @transform_3, window_bounds = array<i64: 3, 4, 8>}, {pipeline_mode = #tpu.pipeline_mode<synchronous>, transform_indices = @transform_4, window_bounds = array<i64: 3, 4>}, {pipeline_mode = #tpu.pipeline_mode<synchronous>, transform_indices = @transform_5, window_bounds = array<i64: 3, 4, 8>}, {pipeline_mode = #tpu.pipeline_mode<synchronous>, transform_indices = @transform_6, window_bounds = array<i64: 3, 4, 8, 8>}, {transform_indices = @transform_7, window_bounds = array<i64: 3, 4, 128>}, {pipeline_mode = #tpu.pipeline_mode<synchronous>, transform_indices = @transform_8, window_bounds = array<i64: 3, 4>}, {pipeline_mode = #tpu.pipeline_mode<synchronous>, transform_indices = @transform_9, window_bounds = array<i64: 3, 4, 8>}, {pipeline_mode = #tpu.pipeline_mode<synchronous>, transform_indices = @transform_10, window_bounds = array<i64: 3, 4, 8, 8>}, {pipeline_mode = #tpu.pipeline_mode<synchronous>, transform_indices = @transform_11, window_bounds = array<i64: 3, 4, 8>}, {pipeline_mode = #tpu.pipeline_mode<synchronous>, transform_indices = @transform_12, window_bounds = array<i64: 3, 4>}, {pipeline_mode = #tpu.pipeline_mode<synchronous>, transform_indices = @transform_13, window_bounds = array<i64: 3, 4, 8>}, {pipeline_mode = #tpu.pipeline_mode<synchronous>, transform_indices = @transform_14, window_bounds = array<i64: 1, 4>}]} {
    %c0_i32 = arith.constant 0 : i32
    %0 = arith.cmpi eq, %arg0, %c0_i32 : i32
    %1 = arith.extui %0 : i1 to i32
    %c0_i32_0 = arith.constant 0 : i32
    %2 = arith.cmpi ne, %1, %c0_i32_0 : i32
    scf.if %2 {
      %cst_50 = arith.constant 0.000000e+00 : f32
      %134 = vector.broadcast %cst_50 : f32 to vector<3x4xf32>
      %c0_51 = arith.constant 0 : index
      %c0_52 = arith.constant 0 : index
      %135 = vector.load %arg16[%c0_51, %c0_52] : memref<3x4xf32, #tpu.memory_space<vmem>>, vector<3x4xf32>
      tpu.vector_store %arg16[%c0_51, %c0_52], %134 {strides = array<i32>} : memref<3x4xf32, #tpu.memory_space<vmem>>, vector<3x4xf32>,
      %cst_53 = arith.constant 0.000000e+00 : f32
      %136 = vector.broadcast %cst_53 : f32 to vector<3x4x8xf32>
      %c0_54 = arith.constant 0 : index
      %c0_55 = arith.constant 0 : index
      %c0_56 = arith.constant 0 : index
      %137 = vector.load %arg17[%c0_54, %c0_55, %c0_56] : memref<3x4x8xf32, #tpu.memory_space<vmem>>, vector<3x4x8xf32>
      tpu.vector_store %arg17[%c0_54, %c0_55, %c0_56], %136 {strides = array<i32>} : memref<3x4x8xf32, #tpu.memory_space<vmem>>, vector<3x4x8xf32>,
      %cst_57 = arith.constant 0.000000e+00 : f32
      %138 = vector.broadcast %cst_57 : f32 to vector<3x4x8x8xf32>
      %c0_58 = arith.constant 0 : index
      %c0_59 = arith.constant 0 : index
      %c0_60 = arith.constant 0 : index
      %c0_61 = arith.constant 0 : index
      %139 = vector.load %arg18[%c0_58, %c0_59, %c0_60, %c0_61] : memref<3x4x8x8xf32, #tpu.memory_space<vmem>>, vector<3x4x8x8xf32>
      tpu.vector_store %arg18[%c0_58, %c0_59, %c0_60, %c0_61], %138 {strides = array<i32>} : memref<3x4x8x8xf32, #tpu.memory_space<vmem>>, vector<3x4x8x8xf32>,
    } else {
    }
    %c0 = arith.constant 0 : index
    %c0_1 = arith.constant 0 : index
    %c0_2 = arith.constant 0 : index
    %3 = vector.load %arg1[%c0, %c0_1, %c0_2] : memref<4x8x128xf32, #tpu.memory_space<vmem>>, vector<4x8x128xf32>
    %c0_3 = arith.constant 0 : index
    %c0_4 = arith.constant 0 : index
    %4 = vector.load %arg2[%c0_3, %c0_4] : memref<3x4xf32, #tpu.memory_space<vmem>>, vector<3x4xf32>
    %c0_5 = arith.constant 0 : index
    %c0_6 = arith.constant 0 : index
    %c0_7 = arith.constant 0 : index
    %5 = vector.load %arg3[%c0_5, %c0_6, %c0_7] : memref<3x4x8xf32, #tpu.memory_space<vmem>>, vector<3x4x8xf32>
    %c0_8 = arith.constant 0 : index
    %c0_9 = arith.constant 0 : index
    %c0_10 = arith.constant 0 : index
    %6 = vector.load %arg4[%c0_8, %c0_9, %c0_10] : memref<3x4x8xf32, #tpu.memory_space<vmem>>, vector<3x4x8xf32>
    %7 = tpu.reciprocal %6 : vector<3x4x8xf32> -> vector<3x4x8xf32>
    %8 = arith.mulf %5, %7 : vector<3x4x8xf32>
    %9 = math.absf %6 : vector<3x4x8xf32>
    %10 = math.log %9 : vector<3x4x8xf32>
    %cst = arith.constant dense<0.000000e+00> : vector<3x4xf32>
    %11 = vector.multi_reduction <add>, %10, %cst [2] : vector<3x4x8xf32> to vector<3x4xf32>
    %12 = arith.mulf %5, %8 : vector<3x4x8xf32>
    %cst_11 = arith.constant dense<0.000000e+00> : vector<3x4xf32>
    %13 = vector.multi_reduction <add>, %12, %cst_11 [2] : vector<3x4x8xf32> to vector<3x4xf32>
    %14 = arith.mulf %3, %3 : vector<4x8x128xf32>
    %15 = vector.shape_cast %7 : vector<3x4x8xf32> to vector<3x4x8x1xf32>
    %16 = vector.shape_cast %14 : vector<4x8x128xf32> to vector<1x4x8x128xf32>
    %17 = vector.broadcast %15 : vector<3x4x8x1xf32> to vector<3x4x8x128xf32>
    %18 = vector.broadcast %16 : vector<1x4x8x128xf32> to vector<3x4x8x128xf32>
    %19 = arith.mulf %17, %18 : vector<3x4x8x128xf32>
    %cst_12 = arith.constant dense<0.000000e+00> : vector<3x4x128xf32>
    %20 = vector.multi_reduction <add>, %19, %cst_12 [2] : vector<3x4x8x128xf32> to vector<3x4x128xf32>
    %21 = vector.shape_cast %8 : vector<3x4x8xf32> to vector<3x4x8x1xf32>
    %22 = vector.shape_cast %3 : vector<4x8x128xf32> to vector<1x4x8x128xf32>
    %23 = vector.broadcast %21 : vector<3x4x8x1xf32> to vector<3x4x8x128xf32>
    %24 = vector.broadcast %22 : vector<1x4x8x128xf32> to vector<3x4x8x128xf32>
    %25 = arith.mulf %23, %24 : vector<3x4x8x128xf32>
    %cst_13 = arith.constant dense<0.000000e+00> : vector<3x4x128xf32>
    %26 = vector.multi_reduction <add>, %25, %cst_13 [2] : vector<3x4x8x128xf32> to vector<3x4x128xf32>
    %cst_14 = arith.constant 2.000000e+00 : f32
    %27 = vector.broadcast %cst_14 : f32 to vector<3x4x128xf32>
    %28 = arith.mulf %27, %26 : vector<3x4x128xf32>
    %29 = arith.subf %20, %28 : vector<3x4x128xf32>
    %30 = vector.shape_cast %13 : vector<3x4xf32> to vector<3x4x1xf32>
    %31 = vector.broadcast %30 : vector<3x4x1xf32> to vector<3x4x128xf32>
    %32 = arith.addf %29, %31 : vector<3x4x128xf32>
    %33 = vector.shape_cast %11 : vector<3x4xf32> to vector<3x4x1xf32>
    %34 = vector.broadcast %33 : vector<3x4x1xf32> to vector<3x4x128xf32>
    %35 = arith.addf %34, %32 : vector<3x4x128xf32>
    %cst_15 = arith.constant 9.15783882 : f32
    %36 = vector.broadcast %cst_15 : f32 to vector<3x4x128xf32>
    %37 = arith.addf %35, %36 : vector<3x4x128xf32>
    %cst_16 = arith.constant -5.000000e-01 : f32
    %38 = vector.broadcast %cst_16 : f32 to vector<3x4x128xf32>
    %39 = arith.mulf %38, %37 : vector<3x4x128xf32>
    %40 = vector.shape_cast %4 : vector<3x4xf32> to vector<3x4x1xf32>
    %41 = vector.broadcast %40 : vector<3x4x1xf32> to vector<3x4x128xf32>
    %42 = arith.mulf %41, %39 : vector<3x4x128xf32>
    %cst_17 = arith.constant dense<0.000000e+00> : vector<4x128xf32>
    %43 = vector.multi_reduction <add>, %42, %cst_17 [0] : vector<3x4x128xf32> to vector<4x128xf32>
    %44 = vector.shape_cast %43 : vector<4x128xf32> to vector<1x4x128xf32>
    %45 = vector.broadcast %44 : vector<1x4x128xf32> to vector<3x4x128xf32>
    %46 = arith.divf %42, %45 : vector<3x4x128xf32>
    %47 = tpu.iota {dimensions = array<i32: 1>} : vector<1x128xi32>
    %c128_i32 = arith.constant 128 : i32
    %48 = arith.muli %arg0, %c128_i32 : i32
    %49 = vector.broadcast %48 : i32 to vector<1x128xi32>
    %50 = arith.addi %49, %47 : vector<1x128xi32>
    %c300_i32 = arith.constant 300 : i32
    %51 = vector.broadcast %c300_i32 : i32 to vector<1x128xi32>
    %52 = arith.cmpi slt, %50, %51 : vector<1x128xi32>
    %53 = vector.shape_cast %52 : vector<1x128xi1> to vector<1x1x128xi1>
    %cst_18 = arith.constant 0.000000e+00 : f32
    %54 = vector.shape_cast %53 : vector<1x1x128xi1> to vector<1x1x128xi1>
    %55 = vector.broadcast %54 : vector<1x1x128xi1> to vector<3x4x128xi1>
    %56 = vector.broadcast %cst_18 : f32 to vector<3x4x128xf32>
    %57 = arith.select %55, %46, %56 : vector<3x4x128xi1>, vector<3x4x128xf32>
    %c0_19 = arith.constant 0 : index
    %c0_20 = arith.constant 0 : index
    %c0_21 = arith.constant 0 : index
    %58 = vector.load %arg8[%c0_19, %c0_20, %c0_21] : memref<3x4x128xf32, #tpu.memory_space<vmem>>, vector<3x4x128xf32>
    tpu.vector_store %arg8[%c0_19, %c0_20, %c0_21], %57 {strides = array<i32>} : memref<3x4x128xf32, #tpu.memory_space<vmem>>, vector<3x4x128xf32>,
    %c0_22 = arith.constant 0 : index
    %c0_23 = arith.constant 0 : index
    %59 = vector.load %arg16[%c0_22, %c0_23] : memref<3x4xf32, #tpu.memory_space<vmem>>, vector<3x4xf32>
    %cst_24 = arith.constant dense<0.000000e+00> : vector<3x4xf32>
    %60 = vector.multi_reduction <add>, %57, %cst_24 [2] : vector<3x4x128xf32> to vector<3x4xf32>
    %61 = arith.addf %59, %60 : vector<3x4xf32>
    %c0_25 = arith.constant 0 : index
    %c0_26 = arith.constant 0 : index
    %62 = vector.load %arg16[%c0_25, %c0_26] : memref<3x4xf32, #tpu.memory_space<vmem>>, vector<3x4xf32>
    tpu.vector_store %arg16[%c0_25, %c0_26], %61 {strides = array<i32>} : memref<3x4xf32, #tpu.memory_space<vmem>>, vector<3x4xf32>,
    %63 = vector.extract_strided_slice %3 {offsets = [0, 0, 0], sizes = [1, 8, 128], strides = [1, 1, 1]} : vector<4x8x128xf32> to vector<1x8x128xf32>
    %64 = vector.shape_cast %63 : vector<1x8x128xf32> to vector<8x128xf32>
    %65 = vector.extract_strided_slice %57 {offsets = [0, 0, 0], sizes = [3, 1, 128], strides = [1, 1, 1]} : vector<3x4x128xf32> to vector<3x1x128xf32>
    %66 = vector.shape_cast %65 : vector<3x1x128xf32> to vector<3x128xf32>
    %cst_27 = arith.constant dense<0.000000e+00> : vector<3x8xf32>
    %67 = tpu.matmul %66, %64, %cst_27 {dimension_numbers = #tpu.dot_dimension_numbers<[1], [1], [0], [0], [0, 0, 1, 0], [], []>} : vector<3x128xf32>, vector<8x128xf32>, vector<3x8xf32> -> vector<3x8xf32>
    %68 = vector.shape_cast %66 : vector<3x128xf32> to vector<3x1x128xf32>
    %69 = vector.shape_cast %64 : vector<8x128xf32> to vector<1x8x128xf32>
    %70 = vector.broadcast %68 : vector<3x1x128xf32> to vector<3x8x128xf32>
    %71 = vector.broadcast %69 : vector<1x8x128xf32> to vector<3x8x128xf32>
    %72 = arith.mulf %70, %71 : vector<3x8x128xf32>
    %73 = vector.shape_cast %72 : vector<3x8x128xf32> to vector<24x128xf32>
    %cst_28 = arith.constant dense<0.000000e+00> : vector<24x8xf32>
    %74 = tpu.matmul %73, %64, %cst_28 {dimension_numbers = #tpu.dot_dimension_numbers<[1], [1], [0], [0], [0, 0, 1, 0], [], []>} : vector<24x128xf32>, vector<8x128xf32>, vector<24x8xf32> -> vector<24x8xf32>
    %75 = vector.shape_cast %74 : vector<24x8xf32> to vector<3x8x8xf32>
    %76 = vector.extract_strided_slice %3 {offsets = [1, 0, 0], sizes = [1, 8, 128], strides = [1, 1, 1]} : vector<4x8x128xf32> to vector<1x8x128xf32>
    %77 = vector.shape_cast %76 : vector<1x8x128xf32> to vector<8x128xf32>
    %78 = vector.extract_strided_slice %57 {offsets = [0, 1, 0], sizes = [3, 1, 128], strides = [1, 1, 1]} : vector<3x4x128xf32> to vector<3x1x128xf32>
    %79 = vector.shape_cast %78 : vector<3x1x128xf32> to vector<3x128xf32>
    %cst_29 = arith.constant dense<0.000000e+00> : vector<3x8xf32>
    %80 = tpu.matmul %79, %77, %cst_29 {dimension_numbers = #tpu.dot_dimension_numbers<[1], [1], [0], [0], [0, 0, 1, 0], [], []>} : vector<3x128xf32>, vector<8x128xf32>, vector<3x8xf32> -> vector<3x8xf32>
    %81 = vector.shape_cast %79 : vector<3x128xf32> to vector<3x1x128xf32>
    %82 = vector.shape_cast %77 : vector<8x128xf32> to vector<1x8x128xf32>
    %83 = vector.broadcast %81 : vector<3x1x128xf32> to vector<3x8x128xf32>
    %84 = vector.broadcast %82 : vector<1x8x128xf32> to vector<3x8x128xf32>
    %85 = arith.mulf %83, %84 : vector<3x8x128xf32>
    %86 = vector.shape_cast %85 : vector<3x8x128xf32> to vector<24x128xf32>
    %cst_30 = arith.constant dense<0.000000e+00> : vector<24x8xf32>
    %87 = tpu.matmul %86, %77, %cst_30 {dimension_numbers = #tpu.dot_dimension_numbers<[1], [1], [0], [0], [0, 0, 1, 0], [], []>} : vector<24x128xf32>, vector<8x128xf32>, vector<24x8xf32> -> vector<24x8xf32>
    %88 = vector.shape_cast %87 : vector<24x8xf32> to vector<3x8x8xf32>
    %89 = vector.extract_strided_slice %3 {offsets = [2, 0, 0], sizes = [1, 8, 128], strides = [1, 1, 1]} : vector<4x8x128xf32> to vector<1x8x128xf32>
    %90 = vector.shape_cast %89 : vector<1x8x128xf32> to vector<8x128xf32>
    %91 = vector.extract_strided_slice %57 {offsets = [0, 2, 0], sizes = [3, 1, 128], strides = [1, 1, 1]} : vector<3x4x128xf32> to vector<3x1x128xf32>
    %92 = vector.shape_cast %91 : vector<3x1x128xf32> to vector<3x128xf32>
    %cst_31 = arith.constant dense<0.000000e+00> : vector<3x8xf32>
    %93 = tpu.matmul %92, %90, %cst_31 {dimension_numbers = #tpu.dot_dimension_numbers<[1], [1], [0], [0], [0, 0, 1, 0], [], []>} : vector<3x128xf32>, vector<8x128xf32>, vector<3x8xf32> -> vector<3x8xf32>
    %94 = vector.shape_cast %92 : vector<3x128xf32> to vector<3x1x128xf32>
    %95 = vector.shape_cast %90 : vector<8x128xf32> to vector<1x8x128xf32>
    %96 = vector.broadcast %94 : vector<3x1x128xf32> to vector<3x8x128xf32>
    %97 = vector.broadcast %95 : vector<1x8x128xf32> to vector<3x8x128xf32>
    %98 = arith.mulf %96, %97 : vector<3x8x128xf32>
    %99 = vector.shape_cast %98 : vector<3x8x128xf32> to vector<24x128xf32>
    %cst_32 = arith.constant dense<0.000000e+00> : vector<24x8xf32>
    %100 = tpu.matmul %99, %90, %cst_32 {dimension_numbers = #tpu.dot_dimension_numbers<[1], [1], [0], [0], [0, 0, 1, 0], [], []>} : vector<24x128xf32>, vector<8x128xf32>, vector<24x8xf32> -> vector<24x8xf32>
    %101 = vector.shape_cast %100 : vector<24x8xf32> to vector<3x8x8xf32>
    %102 = vector.extract_strided_slice %3 {offsets = [3, 0, 0], sizes = [1, 8, 128], strides = [1, 1, 1]} : vector<4x8x128xf32> to vector<1x8x128xf32>
    %103 = vector.shape_cast %102 : vector<1x8x128xf32> to vector<8x128xf32>
    %104 = vector.extract_strided_slice %57 {offsets = [0, 3, 0], sizes = [3, 1, 128], strides = [1, 1, 1]} : vector<3x4x128xf32> to vector<3x1x128xf32>
    %105 = vector.shape_cast %104 : vector<3x1x128xf32> to vector<3x128xf32>
    %cst_33 = arith.constant dense<0.000000e+00> : vector<3x8xf32>
    %106 = tpu.matmul %105, %103, %cst_33 {dimension_numbers = #tpu.dot_dimension_numbers<[1], [1], [0], [0], [0, 0, 1, 0], [], []>} : vector<3x128xf32>, vector<8x128xf32>, vector<3x8xf32> -> vector<3x8xf32>
    %107 = vector.shape_cast %105 : vector<3x128xf32> to vector<3x1x128xf32>
    %108 = vector.shape_cast %103 : vector<8x128xf32> to vector<1x8x128xf32>
    %109 = vector.broadcast %107 : vector<3x1x128xf32> to vector<3x8x128xf32>
    %110 = vector.broadcast %108 : vector<1x8x128xf32> to vector<3x8x128xf32>
    %111 = arith.mulf %109, %110 : vector<3x8x128xf32>
    %112 = vector.shape_cast %111 : vector<3x8x128xf32> to vector<24x128xf32>
    %cst_34 = arith.constant dense<0.000000e+00> : vector<24x8xf32>
    %113 = tpu.matmul %112, %103, %cst_34 {dimension_numbers = #tpu.dot_dimension_numbers<[1], [1], [0], [0], [0, 0, 1, 0], [], []>} : vector<24x128xf32>, vector<8x128xf32>, vector<24x8xf32> -> vector<24x8xf32>
    %114 = vector.shape_cast %113 : vector<24x8xf32> to vector<3x8x8xf32>
    %c0_35 = arith.constant 0 : index
    %c0_36 = arith.constant 0 : index
    %c0_37 = arith.constant 0 : index
    %115 = vector.load %arg17[%c0_35, %c0_36, %c0_37] : memref<3x4x8xf32, #tpu.memory_space<vmem>>, vector<3x4x8xf32>
    %116 = vector.shape_cast %67 : vector<3x8xf32> to vector<3x1x8xf32>
    %117 = vector.shape_cast %80 : vector<3x8xf32> to vector<3x1x8xf32>
    %118 = vector.shape_cast %93 : vector<3x8xf32> to vector<3x1x8xf32>
    %119 = vector.shape_cast %106 : vector<3x8xf32> to vector<3x1x8xf32>
    %120 = tpu.concatenate %116, %117, %118, %119 in 1 : vector<3x1x8xf32>, vector<3x1x8xf32>, vector<3x1x8xf32>, vector<3x1x8xf32> -> vector<3x4x8xf32>
    %121 = arith.addf %115, %120 : vector<3x4x8xf32>
    %c0_38 = arith.constant 0 : index
    %c0_39 = arith.constant 0 : index
    %c0_40 = arith.constant 0 : index
    %122 = vector.load %arg17[%c0_38, %c0_39, %c0_40] : memref<3x4x8xf32, #tpu.memory_space<vmem>>, vector<3x4x8xf32>
    tpu.vector_store %arg17[%c0_38, %c0_39, %c0_40], %121 {strides = array<i32>} : memref<3x4x8xf32, #tpu.memory_space<vmem>>, vector<3x4x8xf32>,
    %c0_41 = arith.constant 0 : index
    %c0_42 = arith.constant 0 : index
    %c0_43 = arith.constant 0 : index
    %c0_44 = arith.constant 0 : index
    %123 = vector.load %arg18[%c0_41, %c0_42, %c0_43, %c0_44] : memref<3x4x8x8xf32, #tpu.memory_space<vmem>>, vector<3x4x8x8xf32>
    %124 = vector.shape_cast %75 : vector<3x8x8xf32> to vector<3x1x8x8xf32>
    %125 = vector.shape_cast %88 : vector<3x8x8xf32> to vector<3x1x8x8xf32>
    %126 = vector.shape_cast %101 : vector<3x8x8xf32> to vector<3x1x8x8xf32>
    %127 = vector.shape_cast %114 : vector<3x8x8xf32> to vector<3x1x8x8xf32>
    %128 = tpu.concatenate %124, %125, %126, %127 in 1 : vector<3x1x8x8xf32>, vector<3x1x8x8xf32>, vector<3x1x8x8xf32>, vector<3x1x8x8xf32> -> vector<3x4x8x8xf32>
    %129 = arith.addf %123, %128 : vector<3x4x8x8xf32>
    %c0_45 = arith.constant 0 : index
    %c0_46 = arith.constant 0 : index
    %c0_47 = arith.constant 0 : index
    %c0_48 = arith.constant 0 : index
    %130 = vector.load %arg18[%c0_45, %c0_46, %c0_47, %c0_48] : memref<3x4x8x8xf32, #tpu.memory_space<vmem>>, vector<3x4x8x8xf32>
    tpu.vector_store %arg18[%c0_45, %c0_46, %c0_47, %c0_48], %129 {strides = array<i32>} : memref<3x4x8x8xf32, #tpu.memory_space<vmem>>, vector<3x4x8x8xf32>,
    %c2_i32 = arith.constant 2 : i32
    %131 = arith.cmpi eq, %arg0, %c2_i32 : i32
    %132 = arith.extui %131 : i1 to i32
    %c0_i32_49 = arith.constant 0 : i32
    %133 = arith.cmpi ne, %132, %c0_i32_49 : i32
    scf.if %133 {
      %c0_50 = arith.constant 0 : index
      %c0_51 = arith.constant 0 : index
      %134 = vector.load %arg16[%c0_50, %c0_51] : memref<3x4xf32, #tpu.memory_space<vmem>>, vector<3x4xf32>
      %c0_52 = arith.constant 0 : index
      %c0_53 = arith.constant 0 : index
      %135 = vector.load %arg5[%c0_52, %c0_53] : memref<3x4xf32, #tpu.memory_space<vmem>>, vector<3x4xf32>
      %cst_54 = arith.constant 0.899999976 : f32
      %136 = vector.broadcast %cst_54 : f32 to vector<3x4xf32>
      %137 = arith.mulf %136, %135 : vector<3x4xf32>
      %cst_55 = arith.constant 1.000000e-01 : f32
      %138 = vector.broadcast %cst_55 : f32 to vector<3x4xf32>
      %139 = arith.mulf %138, %134 : vector<3x4xf32>
      %140 = arith.addf %137, %139 : vector<3x4xf32>
      %c0_56 = arith.constant 0 : index
      %c0_57 = arith.constant 0 : index
      %c0_58 = arith.constant 0 : index
      %141 = vector.load %arg6[%c0_56, %c0_57, %c0_58] : memref<3x4x8xf32, #tpu.memory_space<vmem>>, vector<3x4x8xf32>
      %cst_59 = arith.constant 0.899999976 : f32
      %142 = vector.broadcast %cst_59 : f32 to vector<3x4x8xf32>
      %143 = arith.mulf %142, %141 : vector<3x4x8xf32>
      %c0_60 = arith.constant 0 : index
      %c0_61 = arith.constant 0 : index
      %c0_62 = arith.constant 0 : index
      %144 = vector.load %arg17[%c0_60, %c0_61, %c0_62] : memref<3x4x8xf32, #tpu.memory_space<vmem>>, vector<3x4x8xf32>
      %cst_63 = arith.constant 1.000000e-01 : f32
      %145 = vector.broadcast %cst_63 : f32 to vector<3x4x8xf32>
      %146 = arith.mulf %145, %144 : vector<3x4x8xf32>
      %147 = arith.addf %143, %146 : vector<3x4x8xf32>
      %c0_64 = arith.constant 0 : index
      %c0_65 = arith.constant 0 : index
      %c0_66 = arith.constant 0 : index
      %c0_67 = arith.constant 0 : index
      %148 = vector.load %arg7[%c0_64, %c0_65, %c0_66, %c0_67] : memref<3x4x8x8xf32, #tpu.memory_space<vmem>>, vector<3x4x8x8xf32>
      %cst_68 = arith.constant 0.899999976 : f32
      %149 = vector.broadcast %cst_68 : f32 to vector<3x4x8x8xf32>
      %150 = arith.mulf %149, %148 : vector<3x4x8x8xf32>
      %c0_69 = arith.constant 0 : index
      %c0_70 = arith.constant 0 : index
      %c0_71 = arith.constant 0 : index
      %c0_72 = arith.constant 0 : index
      %151 = vector.load %arg18[%c0_69, %c0_70, %c0_71, %c0_72] : memref<3x4x8x8xf32, #tpu.memory_space<vmem>>, vector<3x4x8x8xf32>
      %cst_73 = arith.constant 1.000000e-01 : f32
      %152 = vector.broadcast %cst_73 : f32 to vector<3x4x8x8xf32>
      %153 = arith.mulf %152, %151 : vector<3x4x8x8xf32>
      %154 = arith.addf %150, %153 : vector<3x4x8x8xf32>
      %c0_74 = arith.constant 0 : index
      %c0_75 = arith.constant 0 : index
      %155 = vector.load %arg9[%c0_74, %c0_75] : memref<3x4xf32, #tpu.memory_space<vmem>>, vector<3x4xf32>
      tpu.vector_store %arg9[%c0_74, %c0_75], %140 {strides = array<i32>} : memref<3x4xf32, #tpu.memory_space<vmem>>, vector<3x4xf32>,
      %c0_76 = arith.constant 0 : index
      %c0_77 = arith.constant 0 : index
      %c0_78 = arith.constant 0 : index
      %156 = vector.load %arg10[%c0_76, %c0_77, %c0_78] : memref<3x4x8xf32, #tpu.memory_space<vmem>>, vector<3x4x8xf32>
      tpu.vector_store %arg10[%c0_76, %c0_77, %c0_78], %147 {strides = array<i32>} : memref<3x4x8xf32, #tpu.memory_space<vmem>>, vector<3x4x8xf32>,
      %c0_79 = arith.constant 0 : index
      %c0_80 = arith.constant 0 : index
      %c0_81 = arith.constant 0 : index
      %c0_82 = arith.constant 0 : index
      %157 = vector.load %arg11[%c0_79, %c0_80, %c0_81, %c0_82] : memref<3x4x8x8xf32, #tpu.memory_space<vmem>>, vector<3x4x8x8xf32>
      tpu.vector_store %arg11[%c0_79, %c0_80, %c0_81, %c0_82], %154 {strides = array<i32>} : memref<3x4x8x8xf32, #tpu.memory_space<vmem>>, vector<3x4x8x8xf32>,
      %cst_83 = arith.constant dense<0.000000e+00> : vector<4xf32>
      %158 = vector.multi_reduction <add>, %140, %cst_83 [0] : vector<3x4xf32> to vector<4xf32>
      %159 = vector.shape_cast %158 : vector<4xf32> to vector<1x4xf32>
      %160 = vector.broadcast %159 : vector<1x4xf32> to vector<3x4xf32>
      %161 = arith.divf %140, %160 : vector<3x4xf32>
      %c0_84 = arith.constant 0 : index
      %c0_85 = arith.constant 0 : index
      %162 = vector.load %arg13[%c0_84, %c0_85] : memref<3x4xf32, #tpu.memory_space<vmem>>, vector<3x4xf32>
      tpu.vector_store %arg13[%c0_84, %c0_85], %161 {strides = array<i32>} : memref<3x4xf32, #tpu.memory_space<vmem>>, vector<3x4xf32>,
      %163 = tpu.reciprocal %140 : vector<3x4xf32> -> vector<3x4xf32>
      %164 = vector.shape_cast %163 : vector<3x4xf32> to vector<3x4x1xf32>
      %165 = vector.broadcast %164 : vector<3x4x1xf32> to vector<3x4x8xf32>
      %166 = arith.mulf %147, %165 : vector<3x4x8xf32>
      %167 = arith.mulf %166, %166 : vector<3x4x8xf32>
      %cst_86 = arith.constant dense<0.000000e+00> : vector<3x4xf32>
      %168 = vector.multi_reduction <add>, %167, %cst_86 [2] : vector<3x4x8xf32> to vector<3x4xf32>
      %169 = vector.shape_cast %168 : vector<3x4xf32> to vector<3x4x1xf32>
      %170 = math.sqrt %169 : vector<3x4x1xf32>
      %cst_87 = arith.constant 9.99999996E-13 : f32
      %171 = vector.broadcast %cst_87 : f32 to vector<3x4x1xf32>
      %172 = arith.maximumf %170, %171 : vector<3x4x1xf32>
      %173 = vector.broadcast %172 : vector<3x4x1xf32> to vector<3x4x8xf32>
      %174 = arith.divf %166, %173 : vector<3x4x8xf32>
      %c0_88 = arith.constant 0 : index
      %c0_89 = arith.constant 0 : index
      %c0_90 = arith.constant 0 : index
      %175 = vector.load %arg12[%c0_88, %c0_89, %c0_90] : memref<3x4x8xf32, #tpu.memory_space<vmem>>, vector<3x4x8xf32>
      tpu.vector_store %arg12[%c0_88, %c0_89, %c0_90], %174 {strides = array<i32>} : memref<3x4x8xf32, #tpu.memory_space<vmem>>, vector<3x4x8xf32>,
      %176 = tpu.iota {dimensions = array<i32: 0>} : vector<8x8xi32>
      %177 = tpu.iota {dimensions = array<i32: 1>} : vector<8x8xi32>
      %178 = arith.cmpi eq, %176, %177 : vector<8x8xi32>
      %cst_91 = arith.constant 1.000000e+00 : f32
      %cst_92 = arith.constant 0.000000e+00 : f32
      %179 = vector.broadcast %cst_91 : f32 to vector<8x8xf32>
      %180 = vector.broadcast %cst_92 : f32 to vector<8x8xf32>
      %181 = arith.select %178, %179, %180 : vector<8x8xi1>, vector<8x8xf32>
      %182 = vector.shape_cast %181 : vector<8x8xf32> to vector<1x1x8x8xf32>
      %183 = vector.broadcast %182 : vector<1x1x8x8xf32> to vector<3x4x8x8xf32>
      %184 = arith.mulf %154, %183 : vector<3x4x8x8xf32>
      %cst_93 = arith.constant dense<0.000000e+00> : vector<3x4x8xf32>
      %185 = vector.multi_reduction <add>, %184, %cst_93 [3] : vector<3x4x8x8xf32> to vector<3x4x8xf32>
      %186 = vector.shape_cast %163 : vector<3x4xf32> to vector<3x4x1xf32>
      %187 = vector.broadcast %186 : vector<3x4x1xf32> to vector<3x4x8xf32>
      %188 = arith.mulf %185, %187 : vector<3x4x8xf32>
      %189 = arith.mulf %147, %147 : vector<3x4x8xf32>
      %190 = arith.mulf %163, %163 : vector<3x4xf32>
      %191 = vector.shape_cast %190 : vector<3x4xf32> to vector<3x4x1xf32>
      %192 = vector.broadcast %191 : vector<3x4x1xf32> to vector<3x4x8xf32>
      %193 = arith.mulf %189, %192 : vector<3x4x8xf32>
      %194 = arith.subf %188, %193 : vector<3x4x8xf32>
      %c0_94 = arith.constant 0 : index
      %c0_95 = arith.constant 0 : index
      %c0_96 = arith.constant 0 : index
      %195 = vector.load %arg14[%c0_94, %c0_95, %c0_96] : memref<3x4x8xf32, #tpu.memory_space<vmem>>, vector<3x4x8xf32>
      tpu.vector_store %arg14[%c0_94, %c0_95, %c0_96], %194 {strides = array<i32>} : memref<3x4x8xf32, #tpu.memory_space<vmem>>, vector<3x4x8xf32>,
      %cst_97 = arith.constant 0.00333333341 : f32
      %196 = vector.broadcast %cst_97 : f32 to vector<3x4xf32>
      %197 = arith.mulf %134, %196 : vector<3x4xf32>
      %198 = math.log %197 : vector<3x4xf32>
      %199 = arith.mulf %198, %197 : vector<3x4xf32>
      %cst_98 = arith.constant dense<0.000000e+00> : vector<4xf32>
      %200 = vector.multi_reduction <add>, %199, %cst_98 [0] : vector<3x4xf32> to vector<4xf32>
      %201 = vector.shape_cast %200 : vector<4xf32> to vector<1x4xf32>
      %c0_99 = arith.constant 0 : index
      %c0_100 = arith.constant 0 : index
      %202 = vector.load %arg15[%c0_99, %c0_100] : memref<1x4xf32, #tpu.memory_space<vmem>>, vector<1x4xf32>
      tpu.vector_store %arg15[%c0_99, %c0_100], %201 {strides = array<i32>} : memref<1x4xf32, #tpu.memory_space<vmem>>, vector<1x4xf32>,
    } else {
    }
    return
  }
  func.func @transform_0(%arg0: i32) -> (i32, i32, i32) {
    %c0_i32 = arith.constant 0 : i32
    %c0_i32_0 = arith.constant 0 : i32
    %c0_i32_1 = arith.constant 0 : i32
    return %c0_i32, %c0_i32_0, %arg0 : i32, i32, i32
  }
  func.func @transform_1(%arg0: i32) -> (i32, i32) {
    %c0_i32 = arith.constant 0 : i32
    %c0_i32_0 = arith.constant 0 : i32
    %c0_i32_1 = arith.constant 0 : i32
    return %c0_i32, %c0_i32_0 : i32, i32
  }
  func.func @transform_2(%arg0: i32) -> (i32, i32, i32) {
    %c0_i32 = arith.constant 0 : i32
    %c0_i32_0 = arith.constant 0 : i32
    %c0_i32_1 = arith.constant 0 : i32
    %c0_i32_2 = arith.constant 0 : i32
    return %c0_i32, %c0_i32_0, %c0_i32_1 : i32, i32, i32
  }
  func.func @transform_3(%arg0: i32) -> (i32, i32, i32) {
    %c0_i32 = arith.constant 0 : i32
    %c0_i32_0 = arith.constant 0 : i32
    %c0_i32_1 = arith.constant 0 : i32
    %c0_i32_2 = arith.constant 0 : i32
    return %c0_i32, %c0_i32_0, %c0_i32_1 : i32, i32, i32
  }
  func.func @transform_4(%arg0: i32) -> (i32, i32) {
    %c0_i32 = arith.constant 0 : i32
    %c0_i32_0 = arith.constant 0 : i32
    %c0_i32_1 = arith.constant 0 : i32
    return %c0_i32, %c0_i32_0 : i32, i32
  }
  func.func @transform_5(%arg0: i32) -> (i32, i32, i32) {
    %c0_i32 = arith.constant 0 : i32
    %c0_i32_0 = arith.constant 0 : i32
    %c0_i32_1 = arith.constant 0 : i32
    %c0_i32_2 = arith.constant 0 : i32
    return %c0_i32, %c0_i32_0, %c0_i32_1 : i32, i32, i32
  }
  func.func @transform_6(%arg0: i32) -> (i32, i32, i32, i32) {
    %c0_i32 = arith.constant 0 : i32
    %c0_i32_0 = arith.constant 0 : i32
    %c0_i32_1 = arith.constant 0 : i32
    %c0_i32_2 = arith.constant 0 : i32
    %c0_i32_3 = arith.constant 0 : i32
    return %c0_i32, %c0_i32_0, %c0_i32_1, %c0_i32_2 : i32, i32, i32, i32
  }
  func.func @transform_7(%arg0: i32) -> (i32, i32, i32) {
    %c0_i32 = arith.constant 0 : i32
    %c0_i32_0 = arith.constant 0 : i32
    %c0_i32_1 = arith.constant 0 : i32
    return %c0_i32, %c0_i32_0, %arg0 : i32, i32, i32
  }
  func.func @transform_8(%arg0: i32) -> (i32, i32) {
    %c0_i32 = arith.constant 0 : i32
    %c0_i32_0 = arith.constant 0 : i32
    %c0_i32_1 = arith.constant 0 : i32
    return %c0_i32, %c0_i32_0 : i32, i32
  }
  func.func @transform_9(%arg0: i32) -> (i32, i32, i32) {
    %c0_i32 = arith.constant 0 : i32
    %c0_i32_0 = arith.constant 0 : i32
    %c0_i32_1 = arith.constant 0 : i32
    %c0_i32_2 = arith.constant 0 : i32
    return %c0_i32, %c0_i32_0, %c0_i32_1 : i32, i32, i32
  }
  func.func @transform_10(%arg0: i32) -> (i32, i32, i32, i32) {
    %c0_i32 = arith.constant 0 : i32
    %c0_i32_0 = arith.constant 0 : i32
    %c0_i32_1 = arith.constant 0 : i32
    %c0_i32_2 = arith.constant 0 : i32
    %c0_i32_3 = arith.constant 0 : i32
    return %c0_i32, %c0_i32_0, %c0_i32_1, %c0_i32_2 : i32, i32, i32, i32
  }
  func.func @transform_11(%arg0: i32) -> (i32, i32, i32) {
    %c0_i32 = arith.constant 0 : i32
    %c0_i32_0 = arith.constant 0 : i32
    %c0_i32_1 = arith.constant 0 : i32
    %c0_i32_2 = arith.constant 0 : i32
    return %c0_i32, %c0_i32_0, %c0_i32_1 : i32, i32, i32
  }
  func.func @transform_12(%arg0: i32) -> (i32, i32) {
    %c0_i32 = arith.constant 0 : i32
    %c0_i32_0 = arith.constant 0 : i32
    %c0_i32_1 = arith.constant 0 : i32
    return %c0_i32, %c0_i32_0 : i32, i32
  }
  func.func @transform_13(%arg0: i32) -> (i32, i32, i32) {
    %c0_i32 = arith.constant 0 : i32
    %c0_i32_0 = arith.constant 0 : i32
    %c0_i32_1 = arith.constant 0 : i32
    %c0_i32_2 = arith.constant 0 : i32
    return %c0_i32, %c0_i32_0, %c0_i32_1 : i32, i32, i32
  }
  func.func @transform_14(%arg0: i32) -> (i32, i32) {
    %c0_i32 = arith.constant 0 : i32
    %c0_i32_0 = arith.constant 0 : i32
    %c0_i32_1 = arith.constant 0 : i32
    return %c0_i32, %c0_i32_0 : i32, i32
  }
}

module attributes {stable_mosaic.version = 11 : i64} {
  func.func @_output_kernel(%arg0: i32, %arg1: memref<4x8x128xf32, #tpu.memory_space<vmem>>, %arg2: memref<3x4x128xf32, #tpu.memory_space<vmem>>, %arg3: memref<3x4x8xf32, #tpu.memory_space<vmem>>, %arg4: memref<3x4xf32, #tpu.memory_space<vmem>>, %arg5: memref<3x4x8xf32, #tpu.memory_space<vmem>>, %arg6: memref<4x4x128xf32, #tpu.memory_space<vmem>>, %arg7: memref<4x4x128xf32, #tpu.memory_space<vmem>>) attributes {dimension_semantics = [#tpu.dimension_semantics<parallel>], iteration_bounds = array<i64: 3>, scalar_prefetch = 0 : i64, scratch_operands = 0 : i64, tpu.core_type = #tpu.core_type<tc>, window_params = [{transform_indices = @transform_0, window_bounds = array<i64: 4, 8, 128>}, {transform_indices = @transform_1, window_bounds = array<i64: 3, 4, 128>}, {pipeline_mode = #tpu.pipeline_mode<synchronous>, transform_indices = @transform_2, window_bounds = array<i64: 3, 4, 8>}, {pipeline_mode = #tpu.pipeline_mode<synchronous>, transform_indices = @transform_3, window_bounds = array<i64: 3, 4>}, {pipeline_mode = #tpu.pipeline_mode<synchronous>, transform_indices = @transform_4, window_bounds = array<i64: 3, 4, 8>}, {transform_indices = @transform_5, window_bounds = array<i64: 4, 4, 128>}, {transform_indices = @transform_6, window_bounds = array<i64: 4, 4, 128>}]} {
    %c0 = arith.constant 0 : index
    %c0_0 = arith.constant 0 : index
    %c0_1 = arith.constant 0 : index
    %0 = vector.load %arg1[%c0, %c0_0, %c0_1] : memref<4x8x128xf32, #tpu.memory_space<vmem>>, vector<4x8x128xf32>
    %c0_2 = arith.constant 0 : index
    %c0_3 = arith.constant 0 : index
    %c0_4 = arith.constant 0 : index
    %1 = vector.load %arg2[%c0_2, %c0_3, %c0_4] : memref<3x4x128xf32, #tpu.memory_space<vmem>>, vector<3x4x128xf32>
    %c0_5 = arith.constant 0 : index
    %c0_6 = arith.constant 0 : index
    %c0_7 = arith.constant 0 : index
    %2 = vector.load %arg5[%c0_5, %c0_6, %c0_7] : memref<3x4x8xf32, #tpu.memory_space<vmem>>, vector<3x4x8xf32>
    %c0_8 = arith.constant 0 : index
    %c0_9 = arith.constant 0 : index
    %c0_10 = arith.constant 0 : index
    %3 = vector.load %arg3[%c0_8, %c0_9, %c0_10] : memref<3x4x8xf32, #tpu.memory_space<vmem>>, vector<3x4x8xf32>
    %4 = tpu.reciprocal %2 : vector<3x4x8xf32> -> vector<3x4x8xf32>
    %5 = arith.mulf %3, %4 : vector<3x4x8xf32>
    %6 = math.absf %2 : vector<3x4x8xf32>
    %7 = math.log %6 : vector<3x4x8xf32>
    %cst = arith.constant dense<0.000000e+00> : vector<3x4xf32>
    %8 = vector.multi_reduction <add>, %7, %cst [2] : vector<3x4x8xf32> to vector<3x4xf32>
    %9 = arith.mulf %3, %5 : vector<3x4x8xf32>
    %cst_11 = arith.constant dense<0.000000e+00> : vector<3x4xf32>
    %10 = vector.multi_reduction <add>, %9, %cst_11 [2] : vector<3x4x8xf32> to vector<3x4xf32>
    %c0_12 = arith.constant 0 : index
    %c0_13 = arith.constant 0 : index
    %11 = vector.load %arg4[%c0_12, %c0_13] : memref<3x4xf32, #tpu.memory_space<vmem>>, vector<3x4xf32>
    %12 = math.log %11 : vector<3x4xf32>
    %13 = arith.addf %8, %10 : vector<3x4xf32>
    %cst_14 = arith.constant 9.15783882 : f32
    %14 = vector.broadcast %cst_14 : f32 to vector<3x4xf32>
    %15 = arith.addf %13, %14 : vector<3x4xf32>
    %cst_15 = arith.constant 5.000000e-01 : f32
    %16 = vector.broadcast %cst_15 : f32 to vector<3x4xf32>
    %17 = arith.mulf %16, %15 : vector<3x4xf32>
    %18 = arith.subf %12, %17 : vector<3x4xf32>
    %19 = vector.shape_cast %1 : vector<3x4x128xf32> to vector<3x4x1x128xf32>
    %20 = vector.shape_cast %4 : vector<3x4x8xf32> to vector<3x4x8x1xf32>
    %21 = vector.broadcast %19 : vector<3x4x1x128xf32> to vector<3x4x8x128xf32>
    %22 = vector.broadcast %20 : vector<3x4x8x1xf32> to vector<3x4x8x128xf32>
    %23 = arith.mulf %21, %22 : vector<3x4x8x128xf32>
    %cst_16 = arith.constant dense<0.000000e+00> : vector<4x8x128xf32>
    %24 = vector.multi_reduction <add>, %23, %cst_16 [0] : vector<3x4x8x128xf32> to vector<4x8x128xf32>
    %25 = vector.shape_cast %1 : vector<3x4x128xf32> to vector<3x4x1x128xf32>
    %26 = vector.shape_cast %5 : vector<3x4x8xf32> to vector<3x4x8x1xf32>
    %27 = vector.broadcast %25 : vector<3x4x1x128xf32> to vector<3x4x8x128xf32>
    %28 = vector.broadcast %26 : vector<3x4x8x1xf32> to vector<3x4x8x128xf32>
    %29 = arith.mulf %27, %28 : vector<3x4x8x128xf32>
    %cst_17 = arith.constant dense<0.000000e+00> : vector<4x8x128xf32>
    %30 = vector.multi_reduction <add>, %29, %cst_17 [0] : vector<3x4x8x128xf32> to vector<4x8x128xf32>
    %31 = vector.shape_cast %18 : vector<3x4xf32> to vector<3x4x1xf32>
    %32 = vector.broadcast %31 : vector<3x4x1xf32> to vector<3x4x128xf32>
    %33 = arith.mulf %1, %32 : vector<3x4x128xf32>
    %cst_18 = arith.constant dense<0.000000e+00> : vector<4x128xf32>
    %34 = vector.multi_reduction <add>, %33, %cst_18 [0] : vector<3x4x128xf32> to vector<4x128xf32>
    %35 = arith.mulf %0, %0 : vector<4x8x128xf32>
    %36 = vector.shape_cast %24 : vector<4x8x128xf32> to vector<4x1x8x128xf32>
    %37 = vector.shape_cast %35 : vector<4x8x128xf32> to vector<1x4x8x128xf32>
    %38 = vector.broadcast %36 : vector<4x1x8x128xf32> to vector<4x4x8x128xf32>
    %39 = vector.broadcast %37 : vector<1x4x8x128xf32> to vector<4x4x8x128xf32>
    %40 = arith.mulf %38, %39 : vector<4x4x8x128xf32>
    %cst_19 = arith.constant dense<0.000000e+00> : vector<4x4x128xf32>
    %41 = vector.multi_reduction <add>, %40, %cst_19 [2] : vector<4x4x8x128xf32> to vector<4x4x128xf32>
    %42 = vector.shape_cast %30 : vector<4x8x128xf32> to vector<4x1x8x128xf32>
    %43 = vector.shape_cast %0 : vector<4x8x128xf32> to vector<1x4x8x128xf32>
    %44 = vector.broadcast %42 : vector<4x1x8x128xf32> to vector<4x4x8x128xf32>
    %45 = vector.broadcast %43 : vector<1x4x8x128xf32> to vector<4x4x8x128xf32>
    %46 = arith.mulf %44, %45 : vector<4x4x8x128xf32>
    %cst_20 = arith.constant dense<0.000000e+00> : vector<4x4x128xf32>
    %47 = vector.multi_reduction <add>, %46, %cst_20 [2] : vector<4x4x8x128xf32> to vector<4x4x128xf32>
    %48 = vector.shape_cast %34 : vector<4x128xf32> to vector<4x1x128xf32>
    %cst_21 = arith.constant 5.000000e-01 : f32
    %49 = vector.broadcast %cst_21 : f32 to vector<4x4x128xf32>
    %50 = arith.mulf %49, %41 : vector<4x4x128xf32>
    %51 = vector.broadcast %48 : vector<4x1x128xf32> to vector<4x4x128xf32>
    %52 = arith.subf %51, %50 : vector<4x4x128xf32>
    %53 = arith.addf %52, %47 : vector<4x4x128xf32>
    %c0_22 = arith.constant 0 : index
    %c0_23 = arith.constant 0 : index
    %c0_24 = arith.constant 0 : index
    %54 = vector.load %arg6[%c0_22, %c0_23, %c0_24] : memref<4x4x128xf32, #tpu.memory_space<vmem>>, vector<4x4x128xf32>
    tpu.vector_store %arg6[%c0_22, %c0_23, %c0_24], %53 {strides = array<i32>} : memref<4x4x128xf32, #tpu.memory_space<vmem>>, vector<4x4x128xf32>,
    %55 = tpu.iota {dimensions = array<i32: 0>} : vector<4x4xi32>
    %56 = tpu.iota {dimensions = array<i32: 1>} : vector<4x4xi32>
    %57 = arith.cmpi eq, %55, %56 : vector<4x4xi32>
    %cst_25 = arith.constant 1.000000e+00 : f32
    %cst_26 = arith.constant 0.000000e+00 : f32
    %58 = vector.broadcast %cst_25 : f32 to vector<4x4xf32>
    %59 = vector.broadcast %cst_26 : f32 to vector<4x4xf32>
    %60 = arith.select %57, %58, %59 : vector<4x4xi1>, vector<4x4xf32>
    %61 = vector.shape_cast %60 : vector<4x4xf32> to vector<4x4x1xf32>
    %62 = vector.broadcast %61 : vector<4x4x1xf32> to vector<4x4x128xf32>
    %63 = arith.subf %53, %62 : vector<4x4x128xf32>
    %c0_27 = arith.constant 0 : index
    %c0_28 = arith.constant 0 : index
    %c0_29 = arith.constant 0 : index
    %64 = vector.load %arg7[%c0_27, %c0_28, %c0_29] : memref<4x4x128xf32, #tpu.memory_space<vmem>>, vector<4x4x128xf32>
    tpu.vector_store %arg7[%c0_27, %c0_28, %c0_29], %63 {strides = array<i32>} : memref<4x4x128xf32, #tpu.memory_space<vmem>>, vector<4x4x128xf32>,
    return
  }
  func.func @transform_0(%arg0: i32) -> (i32, i32, i32) {
    %c0_i32 = arith.constant 0 : i32
    %c0_i32_0 = arith.constant 0 : i32
    %c0_i32_1 = arith.constant 0 : i32
    return %c0_i32, %c0_i32_0, %arg0 : i32, i32, i32
  }
  func.func @transform_1(%arg0: i32) -> (i32, i32, i32) {
    %c0_i32 = arith.constant 0 : i32
    %c0_i32_0 = arith.constant 0 : i32
    %c0_i32_1 = arith.constant 0 : i32
    return %c0_i32, %c0_i32_0, %arg0 : i32, i32, i32
  }
  func.func @transform_2(%arg0: i32) -> (i32, i32, i32) {
    %c0_i32 = arith.constant 0 : i32
    %c0_i32_0 = arith.constant 0 : i32
    %c0_i32_1 = arith.constant 0 : i32
    %c0_i32_2 = arith.constant 0 : i32
    return %c0_i32, %c0_i32_0, %c0_i32_1 : i32, i32, i32
  }
  func.func @transform_3(%arg0: i32) -> (i32, i32) {
    %c0_i32 = arith.constant 0 : i32
    %c0_i32_0 = arith.constant 0 : i32
    %c0_i32_1 = arith.constant 0 : i32
    return %c0_i32, %c0_i32_0 : i32, i32
  }
  func.func @transform_4(%arg0: i32) -> (i32, i32, i32) {
    %c0_i32 = arith.constant 0 : i32
    %c0_i32_0 = arith.constant 0 : i32
    %c0_i32_1 = arith.constant 0 : i32
    %c0_i32_2 = arith.constant 0 : i32
    return %c0_i32, %c0_i32_0, %c0_i32_1 : i32, i32, i32
  }
  func.func @transform_5(%arg0: i32) -> (i32, i32, i32) {
    %c0_i32 = arith.constant 0 : i32
    %c0_i32_0 = arith.constant 0 : i32
    %c0_i32_1 = arith.constant 0 : i32
    return %c0_i32, %c0_i32_0, %arg0 : i32, i32, i32
  }
  func.func @transform_6(%arg0: i32) -> (i32, i32, i32) {
    %c0_i32 = arith.constant 0 : i32
    %c0_i32_0 = arith.constant 0 : i32
    %c0_i32_1 = arith.constant 0 : i32
    return %c0_i32, %c0_i32_0, %arg0 : i32, i32, i32
  }
}

</mosaic_0001>

<bundles_post_ra>
// kernel: mixture_forward.3
= control target key start
LH: loop header
LB: loop body
LE: loop exit
PB: predicated region body
PF: predicated region fallthrough
CT: control target
= control target key end

     0   :  { %s1490_s21 = smov 0   ;;  %s1492_s22 = smov 0   ;;  %s1881_s0 = inlined_call_operand.vmem [shape: f32[4,8,384], index: 0, kind: input, shape index: {}]   ;;  %s1882_s1 = inlined_call_operand.vmem [shape: f32[3,4,384], index: 1, kind: input, shape index: {}]   ;;  %s1883_s2 = inlined_call_operand.vmem [shape: f32[3,4,8], index: 2, kind: input, shape index: {}]   ;;  %s1884_s3 = inlined_call_operand.vmem [shape: f32[3,4], index: 3, kind: input, shape index: {}]   ;;  %s1885_s4 = inlined_call_operand.vmem [shape: f32[3,4,8], index: 4, kind: input, shape index: {}]   ;;  %s1886_s5 = inlined_call_operand.vmem [shape: f32[4,4,384], index: 5, kind: output, shape index: {0}]   ;;  %s1887_s6 = inlined_call_operand.vmem [shape: f32[4,4,384], index: 6, kind: output, shape index: {1}]  }
   0x1   :  { %s1494_s23 = smov 0  }
   0x2 LB: > { %s1506_s24 = sadd.s32 4294967295, %s1452_s23   ;;  %s1509_s25 = sadd.s32 1, %s1452_s23   ;;  %s1452_s23 = sphi %s1494_s23, %s1914_s23   ;;  %s1448_s22 = sphi %s1492_s22, %s1913_s22   ;;  %s1444_s21 = sphi %s1490_s21, %s1912_s21  }
   0x3   : > { %s21_s26 = ssub.s32 %s1452_s23, %s1509_s25  ;;  %s24_s27 = sadd.s32 1, %s1448_s22 }
   0x4   : > { %p22_p0 = scmp.eq.s32.totalorder %s21_s26, 0  ;;  %p31_p1 = scmp.ne.s32.totalorder %s1448_s22, %s1444_s21 }
   0x5   : > { %p32_p2 = scmp.eq.s32.totalorder %s1452_s23, 0  ;;  %p150_p3 = scmp.eq.s32.totalorder %s1506_s24, 2 }
   0x6   : > { %s1519_s28 = scalar_select %p22_p0, %s1448_s22, %s24_s27  }
   0x7   : > { %p1521_p4 = por %p32_p2, %p31_p1  ;;  %p1525_p5 = por %p150_p3, %p31_p1 }
   0x8   : > { %p1362_p6 = scmp.ge.s32.totalorder %s1452_s23, 3 }
   0xa   : > { %207 = sbr.rel (%p1362_p6) target bundleno = 31 (0x1f), region = 28 }
   0xf   : > { %210 = sbr.rel (!%p1521_p4) target bundleno = 23 (0x17), region = 32  ;;  %s212_s7 = sand.u32 (%p1521_p4), 1, %s1448_s22  }
  0x10   : > { %s1364_s8 = sshll.u32 (%p1521_p4), %s1452_s23, 3  ;;  %s1363_s9 = sshll.u32 (%p1521_p4), %s212_s7, 5 }
  0x11   : > { %s216_s12 = scalar_lea.vmem (%p1521_p4), %s1881_s0, %s1364_s8  ;;  %s214_s13 = scalar_lea.vmem (%p1521_p4), [#allocation2], %s1363_s9 }
  0x12   : > { %v251_v0 = vld [vmem:[%s216_s12] sm:$0xff] (%p1521_p4)  ;;  %v253_v1 = vld [vmem:[%s216_s12 + $0x18] sm:$0xff] (%p1521_p4)  ;;  %v255_v2 = vld [vmem:[%s216_s12 + $0x30] sm:$0xff] (%p1521_p4) }
  0x13   : > { %252 = vst [vmem:[%s214_s13] sm:$0xff] (%p1521_p4), %v251_v0  ;;  %v257_v3 = vld [vmem:[%s216_s12 + $0x48] sm:$0xff] (%p1521_p4) }
  0x14   : > { %254 = vst [vmem:[%s214_s13 + $0x8] sm:$0xff] %v253_v1 }
  0x15   : > { %256 = vst [vmem:[%s214_s13 + $0x10] sm:$0xff] %v255_v2 }
  0x16   : > { %258 = vst [vmem:[%s214_s13 + $0x18] sm:$0xff] %v257_v3 }
  0x17 PF: > { %264 = sbr.rel (!%p1521_p4) target bundleno = 31 (0x1f), region = 70  ;;  %s266_s14 = sand.u32 (%p1521_p4), 1, %s1448_s22  }
  0x18   : > { %s1365_s15 = sshll.u32 (%p1521_p4), %s1452_s23, 2  ;;  %s1376_s16 = smul.u32 (%p1521_p4), 12, %s266_s14 }
  0x19   : > { %s270_s19 = scalar_lea.vmem (%p1521_p4), %s1882_s1, %s1365_s15 }
  0x1a   : > { %v287_v4 = vld [vmem:[%s270_s19] sm:$0xf] (%p1521_p4)  ;;  %v289_v5 = vld [vmem:[%s270_s19 + $0xc] sm:$0xf] (%p1521_p4)  ;;  %v291_v6 = vld [vmem:[%s270_s19 + $0x18] sm:$0xf] (%p1521_p4) }
  0x1b   : > { %s268_s20 = scalar_lea.vmem (%p1521_p4), [#allocation3], %s1376_s16 }
  0x1c   : > { %288 = vst [vmem:[%s268_s20] sm:$0xf] %v287_v4 }
  0x1d   : > { %290 = vst [vmem:[%s268_s20 + $0x4] sm:$0xf] %v289_v5 }
  0x1e   : > { %292 = vst [vmem:[%s268_s20 + $0x8] sm:$0xf] %v291_v6 }
  0x1f PF: > { %p1366_p7 = scmp.ge.s32.totalorder %s1452_s23, 1  ;;  %p321_p8 = scmp.lt.s32.totalorder %s1452_s23, 4 }
  0x21   : > { %p322_p9 = pnand %p1366_p7, %p321_p8 }
  0x23   : > { %325 = sbr.rel (%p322_p9) target bundleno = 356 (0x164), region = 111 }
  0x28   : > { %v380_v7 = vld [vmem:[%s1885_s4 + $0x8] sm:$0xf]  ;;  %v378_v8 = vld [vmem:[%s1885_s4] sm:$0xf]  ;;  %v379_v11 = vld [vmem:[%s1885_s4 + $0x4] sm:$0xf]  ;;  %v475_v13 = vlaneseq }
  0x29   : > { %v421_v9 = vand.u32 2147483647, %v380_v7  ;;  %1416 = vrcp.f32 %v380_v7  ;;  %v393_v10 = vand.u32 2147483647, %v378_v8  ;;  %v407_v12 = vand.u32 2147483647, %v379_v11 }
  0x2a   : > { %1418 = vrcp.f32 %v378_v8  ;;  %v1556_v15 = vshrl.u32 %v475_v13, 7  ;;  %v423_v19 = vand.u32 2147483648, %v380_v7  ;;  %vm438_vm0 = vcmask 60416   ;;  %v381_v43 = vld [vmem:[%s1883_s2] sm:$0xf]  ;;  %s1599_s17 = sand.u32 1, %s1444_s21  }
  0x2b   : > { %1420 = vlog2.f32 %v421_v9  ;;  %vm417_vm1 = vweird.f32 %v380_v7  ;;  %v395_v24 = vand.u32 2147483648, %v378_v8  ;;  %vm389_vm2 = vweird.f32 %v378_v8  ;;  %v382_v50 = vld [vmem:[%s1883_s2 + $0x4] sm:$0xf]  ;;  %v383_v57 = vld [vmem:[%s1883_s2 + $0x8] sm:$0xf]  ;;  %s1377_s18 = smul.u32 12, %s1599_s17 }
  0x2c   : > { %1422 = vlog2.f32 %v393_v10  ;;  %1404 = vset.pattern.permute.xlu1 %v1556_v15  ;;  %1403 = vset.pattern.permute.xlu0 %v1556_v15  ;;  %vm403_vm5 = vweird.f32 %v379_v11  ;;  %v409_v34 = vand.u32 2147483648, %v379_v11  ;;  %vm394_vm9 = vcmp.eq.f32.partialorder %v393_v10, 8.507059e+37  ;;  %s1367_s21 = sshll.u32 %s1599_s17, 5  ;;  %s1368_s26 = sshll.u32 %s1599_s17, 4 }
  0x2d   : > { %1424 = vrcp.f32 %v379_v11  ;;  %1405 = vset.pattern.permute.xlu2 %v1556_v15  ;;  %v396_v36 = vor.u32 1.1754944e-38, %v395_v24  ;;  %v424_v44 = vor.u32 1.1754944e-38, %v423_v19  ;;  %vm422_vm10 = vcmp.eq.f32.partialorder %v421_v9, 8.507059e+37  ;;  %s337_s19 = scalar_lea.vmem [#allocation3], %s1377_s18  ;;  %s330_s20 = scalar_lea.vmem [#allocation2], %s1367_s21 }
  0x2e   : > { %1426 = vlog2.f32 %v407_v12  ;;  %v410_v46 = vor.u32 1.1754944e-38, %v409_v34  ;;  %vm408_vm12 = vcmp.eq.f32.partialorder %v407_v12, 8.507059e+37  ;;  %v460_v34 = vld [vmem:[%s1884_s3] sm:$0x7]  ;;  %v476_v37 = vand.u32 127, %v475_v13  ;;  %s364_s27 = scalar_lea.vmem [#allocation4], %s1368_s26 }
  0x2f   : > { %v1417_v14 = vpop.eup %1416  ;;  %1428 = vlog2.f32 %v460_v34  ;;  %vm480_vm13 = vcmask 1041409   ;;  %vm482_vm14 = vcmask 1042434   ;;  %s370_s29 = scalar_lea.vmem [#allocation5], %s1368_s26  ;;  %s1372_s7 = sshll.u32 (%p1525_p5), %s1506_s24, 2 }
  0x30   : > { %v1419_v16 = vpop.eup %1418  ;;  %v413_v17 = vmul.f32 %v1417_v14, %v380_v7  ;;  %vm418_vm4 = vweird.f32 %v1417_v14  ;;  %vm1095_vm15 = vcmp.eq.s32.totalorder %v1556_v15, %v476_v37  ;;  %s1145_s23 = scalar_lea.vmem (%p1525_p5), %s1886_s5, %s1372_s7 }
  0x31   : > { %v1421_v18 = vpop.eup %1420  ;;  %v385_v20 = vmul.f32 %v1419_v16, %v378_v8  ;;  %vm390_vm3 = vweird.f32 %v1419_v16  ;;  %vm1569_vm8 = vmor %vm417_vm1, %vm418_vm4  ;;  %vm754_vm1 = vcmask 1043456  }
  0x32   : > { %v1423_v21 = vpop.eup %1422  ;;  %v437_v22 = vmul.f32 0.6931472, %v1421_v18  ;;  %v414_v23 = vsub.f32 1.0, %v413_v17  ;;  %vm1564_vm6 = vmor %vm389_vm2, %vm390_vm3 }
  0x33   : > { %v1425_v25 = vpop.eup %1424  ;;  %v433_v26 = vmul.f32 0.6931472, %v1423_v21  ;;  %v386_v27 = vsub.f32 1.0, %v385_v20 }
  0x34   : > { %v1427_v28 = vpop.eup %1426  ;;  %v445_v29 = vsel %vm438_vm0, %v437_v22, 0.0  ;;  %v415_v30 = vmul.f32 %v1417_v14, %v414_v23  ;;  %v399_v31 = vmul.f32 %v1425_v25, %v379_v11  ;;  %vm404_vm7 = vweird.f32 %v1425_v25 }
  0x35   : > { %446 = vadd.xlane.f32.xlu1 %v445_v29  ;;  %v439_v32 = vsel %vm438_vm0, %v433_v26, 0.0  ;;  %v387_v33 = vmul.f32 %v1419_v16, %v386_v27  ;;  %v435_v41 = vmul.f32 0.6931472, %v1427_v28  ;;  %vm405_vm11 = vmor %vm403_vm5, %vm404_vm7 }
  0x36   : > { %v416_v35 = vadd.f32 %v1417_v14, %v415_v30  ;;  %440 = vadd.xlane.f32.xlu0 %v439_v32  ;;  %v400_v38 = vsub.f32 1.0, %v399_v31 }
  0x37   : > { %v388_v40 = vadd.f32 %v1419_v16, %v387_v33  ;;  %v442_v51 = vsel %vm438_vm0, %v435_v41, 0.0 }
  0x38   : > { %v401_v42 = vmul.f32 %v1425_v25, %v400_v38  ;;  %v420_v47 = vsel %vm1569_vm8, %v1417_v14, %v416_v35 }
  0x39   : > { %v392_v45 = vsel %vm1564_vm6, %v1419_v16, %v388_v40  ;;  %v425_v54 = vsel %vm422_vm10, %v424_v44, %v420_v47 }
  0x3a   : > { %v397_v48 = vsel %vm394_vm9, %v396_v36, %v392_v45  ;;  %v402_v49 = vadd.f32 %v1425_v25, %v401_v42  ;;  %v428_v61 = vmul.f32 %v425_v54, %v383_v57  ;;  %v568_v5 = vperm.slane %v425_v54, 2  ;;  %v1429_v42 = vpop.eup %1428 }
  0x3b   : > { %v426_v52 = vmul.f32 %v397_v48, %v381_v43  ;;  %v498_v1 = vperm.slane %v397_v48, 0  ;;  %v505_v2 = vperm.slane %v397_v48, 1  ;;  %v512_v6 = vperm.slane %v397_v48, 2 }
  0x3c   : > { %v406_v53 = vsel %vm405_vm11, %v1425_v25, %v402_v49  ;;  %v450_v63 = vmul.f32 %v428_v61, %v383_v57  ;;  %v519_v9 = vperm.slane %v397_v48, 3  ;;  %v561_v10 = vperm.slane %v425_v54, 1 }
  0x3d   : > { %v411_v55 = vsel %vm408_vm12, %v410_v46, %v406_v53  ;;  %v448_v56 = vmul.f32 %v426_v52, %v381_v43  ;;  %v633_v8 = vperm.slane %v426_v52, 1  ;;  %v626_v14 = vperm.slane %v426_v52, 0 }
  0x3e   : > { %v427_v58 = vmul.f32 %v411_v55, %v382_v50  ;;  %443 = vadd.xlane.f32.xlu0 %v442_v51  ;;  %v457_v0 = vsel %vm438_vm0, %v450_v63, 0.0  ;;  %v547_v3 = vperm.slane %v411_v55, 3  ;;  %v526_v4 = vperm.slane %v411_v55, 0 }
  0x3f   : > { %v451_v59 = vsel %vm438_vm0, %v448_v56, 0.0  ;;  %v540_v7 = vperm.slane %v411_v55, 2  ;;  %v533_v12 = vperm.slane %v411_v55, 1  ;;  %v554_v17 = vperm.slane %v425_v54, 0 }
  0x40   : > { %v449_v60 = vmul.f32 %v427_v58, %v382_v50  ;;  %452 = vadd.xlane.f32.xlu1 %v451_v59  ;;  %v654_v11 = vperm.slane %v427_v58, 0  ;;  %v675_v16 = vperm.slane %v427_v58, 3  ;;  %v647_v18 = vperm.slane %v426_v52, 3 }
  0x41   : > { %v696_v19 = vperm.slane %v428_v61, 2  ;;  %v575_v20 = vperm.slane %v425_v54, 3  ;;  %v668_v21 = vperm.slane %v427_v58, 2  ;;  %v640_v22 = vperm.slane %v426_v52, 2 }
  0x42   : > { %v454_v62 = vsel %vm438_vm0, %v449_v60, 0.0  ;;  %v689_v23 = vperm.slane %v428_v61, 1  ;;  %v661_v24 = vperm.slane %v427_v58, 1  ;;  %v682_v25 = vperm.slane %v428_v61, 0 }
  0x43   : > { %455 = vadd.xlane.f32.xlu2 %v454_v62  ;;  %v703_v26 = vperm.slane %v428_v61, 3  ;;  %v462_v47 = vmul.f32 0.6931472, %v1429_v42  ;;  %v1454_v52 = vmov 0.0   ;;  %vm1034_vm0 = vcmask 1043459  }
  0x44   : > { %v1096_v53 = vsel %vm1095_vm15, 1.0, %v1454_v52 }
  0x45   : > { %v1111_v57 = vperm.slane %v1096_v53, 2  ;;  %v1118_v58 = vperm.slane %v1096_v53, 3  ;;  %v1097_v59 = vperm.slane %v1096_v53, 0  ;;  %v1104_v60 = vperm.slane %v1096_v53, 1  ;;  %v1664_v53 = vld [vmem:[%s330_s20 + $0x18] sm:$0xff] }
  0x46   : > { %1901 = vst [vmem:[#allocation7_spill] sm:$0xff] %v1664_v53 }
  0x47   : > { %v1411_v63 = vpack.i.bf16 %v1118_v58, %v1111_v57  ;;  %v1406_v15 = vpack.i.bf16 %v1104_v60, %v1097_v59 }
  0x4b   : > { %458 = vadd.xlane.f32.xlu2 %v457_v0 }
  0x52   : > { %503 = vperm.xlu0 %1403, %v498_v1  }
  0x59   : > { %510 = vperm.xlu1 %1404, %v505_v2  }
  0x5a   : > { %552 = vperm.xlu0 %1403, %v547_v3  }
  0x61   : > { %531 = vperm.xlu1 %1404, %v526_v4  }
  0x62   : > { %573 = vperm.xlu0 %1403, %v568_v5  }
  0x63   : > { %517 = vperm.xlu2 %1405, %v512_v6   ;;  %v1602_v6 = vld [vmem:[%s337_s19] sm:$0xf] }
  0x69   : > { %545 = vperm.xlu1 %1404, %v540_v7   ;;  %v1604_v7 = vld [vmem:[%s337_s19 + $0x4] sm:$0xf] }
  0x6a   : > { %638 = vperm.xlu0 %1403, %v633_v8   ;;  %v490_v8 = vrot.slane %v1602_v6, 2 }
  0x6b   : > { %524 = vperm.xlu2 %1405, %v519_v9   ;;  %v493_v9 = vrot.slane %v1604_v7, 2 }
  0x71   : > { %566 = vperm.xlu1 %1404, %v561_v10  }
  0x72   : > { %659 = vperm.xlu0 %1403, %v654_v11   ;;  %v1608_v11 = vld [vmem:[%s337_s19 + $0x8] sm:$0xf] }
  0x73   : > { %538 = vperm.xlu2 %1405, %v533_v12   ;;  %v1610_v12 = vperm.slane %v490_v8, 0  ;;  %v497_v34 = vrot.slane %v1608_v11, 3 }
  0x79   : > { %631 = vperm.xlu1 %1404, %v626_v14   ;;  %v1612_v14 = vperm.slane %v493_v9, 0 }
  0x7a   : > { %680 = vperm.xlu0 %1403, %v675_v16   ;;  %v496_v16 = vrot.slane %v1608_v11, 2 }
  0x7b   : > { %559 = vperm.xlu2 %1405, %v554_v17  }
  0x81   : > { %652 = vperm.xlu1 %1404, %v647_v18   ;;  %v1890_v18 = vperm.slane %v1602_v6, 0 }
  0x82   : > { %701 = vperm.xlu0 %1403, %v696_v19   ;;  %v1889_v19 = vperm.slane %v1604_v7, 0 }
  0x83   : > { %580 = vperm.xlu2 %1405, %v575_v20  }
  0x89   : > { %673 = vperm.xlu1 %1404, %v668_v21   ;;  %v491_v21 = vrot.slane %v1602_v6, 3 }
  0x8b   : > { %645 = vperm.xlu2 %1405, %v640_v22   ;;  %v494_v22 = vrot.slane %v1604_v7, 3 }
  0x91   : > { %694 = vperm.xlu1 %1404, %v689_v23  }
  0x93   : > { %666 = vperm.xlu2 %1405, %v661_v24  }
  0x9b   : > { %687 = vperm.xlu2 %1405, %v682_v25   ;;  %v1621_v25 = vperm.slane %v496_v16, 0 }
  0xa3   : > { %708 = vperm.xlu2 %1405, %v703_v26   ;;  %v489_v26 = vrot.slane %v1602_v6, 1 }
  0xa8   : > { %v447_v27 = vpop.xlane.xlu1 %446 }
  0xa9   : > { %v441_v28 = vpop.xlane.xlu0 %440 }
  0xb1   : > { %v444_v30 = vpop.xlane.xlu0 %443 }
  0xb3   : > { %v453_v29 = vpop.xlane.xlu1 %452 }
  0xb4   : > { %v463_v32 = vadd.f32 %v453_v29, %v441_v28 }
  0xb6   : > { %v456_v31 = vpop.xlane.xlu2 %455  ;;  %v466_v36 = vadd.f32 9.157839, %v463_v32  ;;  %v1633_v32 = vperm.slane %v491_v21, 0 }
  0xb7   : > { %v464_v33 = vadd.f32 %v456_v31, %v444_v30  ;;  %v1888_v30 = vperm.slane %v1608_v11, 0 }
  0xb8   : > { %v469_v39 = vmul.f32 0.5, %v466_v36 }
  0xb9   : > { %v467_v35 = vadd.f32 9.157839, %v464_v33  ;;  %v1635_v33 = vperm.slane %v494_v22, 0 }
  0xba   : > { %v477_v45 = vperm.slane %v469_v39, %v476_v37  ;;  %v495_v39 = vrot.slane %v1608_v11, 1 }
  0xbb   : > { %v470_v38 = vmul.f32 0.5, %v467_v35 }
  0xbc   : > { %v1662_v52 = vperm.slane %v495_v39, 0 }
  0xbd   : > { %v478_v44 = vperm.slane %v470_v38, %v476_v37 }
  0xbe   : > { %v459_v40 = vpop.xlane.xlu2 %458  ;;  %1900 = vst [vmem:[#allocation6_spill] sm:$0xff] %v1662_v52 }
  0xbf   : > { %v465_v41 = vadd.f32 %v459_v40, %v447_v27  ;;  %v481_v49 = vsel %vm480_vm13, %v478_v44, %v477_v45  ;;  %v492_v27 = vrot.slane %v1604_v7, 1  ;;  %v1650_v44 = vld [vmem:[%s330_s20 + $0x8] sm:$0xff] }
  0xc1   : > { %v468_v43 = vadd.f32 9.157839, %v465_v41  ;;  %v1641_v38 = vperm.slane %v492_v27, 0 }
  0xc3   : > { %v471_v46 = vmul.f32 0.5, %v468_v43  ;;  %v1648_v43 = vld [vmem:[%s330_s20] sm:$0xff] }
  0xc4   : > { %v504_v0 = vpop.permute.xlu0 %503 }
  0xc5   : > { %v479_v48 = vperm.slane %v471_v46, %v476_v37  ;;  %v606_v28 = vmul.f32 %v1890_v18, %v504_v0  ;;  %v1639_v37 = vperm.slane %v489_v26, 0 }
  0xc6   : > { %v518_v50 = vpop.permute.xlu2 %517 }
  0xc7   : > { %v483_v13 = vsel %vm482_vm14, %v479_v48, %v481_v49  ;;  %v608_v23 = vmul.f32 %v1610_v12, %v518_v50  ;;  %v1656_v48 = vld [vmem:[%s330_s20 + $0x10] sm:$0xff] }
  0xc8   : > { %v485_v51 = vsub.f32 %v462_v47, %v483_v13  ;;  %v1654_v47 = vperm.slane %v497_v34, 0  ;;  %v762_v58 = vmul.f32 %v1656_v48, %v1656_v48 }
  0xca   : > { %v744_v54 = vperm.slane %v485_v51, 2  ;;  %v737_v55 = vperm.slane %v485_v51, 1  ;;  %v730_v56 = vperm.slane %v485_v51, 0 }
  0xcb   : > { %v511_v62 = vpop.permute.xlu1 %510 }
  0xcc   : > { %749 = vperm.xlu2 %1405, %v744_v54   ;;  %742 = vperm.xlu0 %1403, %v737_v55   ;;  %v553_v3 = vpop.permute.xlu0 %552  ;;  %v607_v13 = vmul.f32 %v1639_v37, %v511_v62  ;;  %v760_v55 = vmul.f32 %v1648_v43, %v1648_v43 }
  0xcd   : > { %735 = vperm.xlu1 %1404, %v730_v56   ;;  %v613_v46 = vmul.f32 %v1635_v33, %v553_v3  ;;  %v761_v56 = vmul.f32 %v1650_v44, %v1650_v44 }
  0xce   : > { %v525_v61 = vpop.permute.xlu2 %524 }
  0xcf   : > { %v609_v45 = vmul.f32 %v1633_v32, %v525_v61 }
  0xd1   : > { %v624_v57 = vadd.f32 %v613_v46, %v609_v45 }
  0xd3   : > { %v532_v2 = vpop.permute.xlu1 %531 }
  0xd4   : > { %1412 = vperm.xlu0 %1403, %v1411_v63   ;;  %v574_v10 = vpop.permute.xlu0 %573  ;;  %v610_v29 = vmul.f32 %v1889_v19, %v532_v2 }
  0xd5   : > { %1407 = vperm.xlu1 %1404, %v1406_v15   ;;  %v616_v36 = vmul.f32 %v1621_v25, %v574_v10  ;;  %v1677_v15 = vmul.f32 %v1664_v53, %v1664_v53 }
  0xd6   : > { %v539_v1 = vpop.permute.xlu2 %538  ;;  %v618_v40 = vadd.f32 %v610_v29, %v606_v28 }
  0xd7   : > { %v611_v51 = vmul.f32 %v1641_v38, %v539_v1 }
  0xd9   : > { %v620_v63 = vadd.f32 %v611_v51, %v607_v13 }
  0xdb   : > { %v546_v5 = vpop.permute.xlu1 %545 }
  0xdc   : > { %v612_v24 = vmul.f32 %v1612_v14, %v546_v5  ;;  %v1631_v31 = vpop.permute.xlu0 %638 }
  0xde   : > { %v560_v4 = vpop.permute.xlu2 %559  ;;  %v622_v35 = vadd.f32 %v612_v24, %v608_v23 }
  0xdf   : > { %v614_v41 = vmul.f32 %v1888_v30, %v560_v4 }
  0xe0   : > { %v623_v49 = vadd.f32 %v622_v35, %v616_v36 }
  0xe1   : > { %v619_v54 = vadd.f32 %v618_v40, %v614_v41 }
  0xe2   : > { %v772_v60 = vmul.f32 %v760_v55, %v623_v49  ;;  %v773_v61 = vmul.f32 %v761_v56, %v623_v49  ;;  %v774_v0 = vmul.f32 %v762_v58, %v623_v49  ;;  %v775_v5 = vmul.f32 %v1677_v15, %v623_v49 }
  0xe3   : > { %v567_v20 = vpop.permute.xlu1 %566  ;;  %v764_v2 = vmul.f32 %v760_v55, %v619_v54  ;;  %v765_v3 = vmul.f32 %v761_v56, %v619_v54  ;;  %v766_v4 = vmul.f32 %v762_v58, %v619_v54 }
  0xe4   : > { %v1673_v62 = vpop.permute.xlu0 %659  ;;  %v615_v1 = vmul.f32 %v1662_v52, %v567_v20  ;;  %v828_v9 = vrot.slane %v772_v60, 4  ;;  %v834_v10 = vrot.slane %v773_v61, 4  ;;  %v840_v21 = vrot.slane %v774_v0, 4 }
  0xe5   : > { %v780_v23 = vrot.slane %v764_v2, 4  ;;  %v786_v24 = vrot.slane %v765_v3, 4  ;;  %v792_v27 = vrot.slane %v766_v4, 4  ;;  %v846_v20 = vrot.slane %v775_v5, 4 }
  0xe6   : > { %v581_v17 = vpop.permute.xlu2 %580  ;;  %v621_v22 = vadd.f32 %v620_v63, %v615_v1  ;;  %v829_v29 = vadd.f32 %v828_v9, %v772_v60  ;;  %v835_v34 = vadd.f32 %v834_v10, %v773_v61  ;;  %v841_v39 = vadd.f32 %v840_v21, %v774_v0 }
  0xe7   : > { %v617_v59 = vmul.f32 %v1654_v47, %v581_v17  ;;  %v767_v17 = vmul.f32 %v1677_v15, %v619_v54  ;;  %v781_v45 = vadd.f32 %v780_v23, %v764_v2  ;;  %v787_v46 = vadd.f32 %v786_v24, %v765_v3 }
  0xe8   : > { %v768_v40 = vmul.f32 %v760_v55, %v621_v22  ;;  %v769_v41 = vmul.f32 %v761_v56, %v621_v22  ;;  %v793_v51 = vadd.f32 %v792_v27, %v766_v4  ;;  %v1686_v54 = vadd.f32 %v846_v20, %v775_v5 }
  0xe9   : > { %v625_v8 = vadd.f32 %v624_v57, %v617_v59  ;;  %v798_v36 = vrot.slane %v767_v17, 4  ;;  %v830_v59 = vrot.slane %v829_v29, 2  ;;  %v836_v63 = vrot.slane %v835_v34, 2 }
  0xea   : > { %v770_v30 = vmul.f32 %v762_v58, %v621_v22  ;;  %v842_v60 = vrot.slane %v841_v39, 2  ;;  %v804_v61 = vrot.slane %v768_v40, 4  ;;  %v810_v9 = vrot.slane %v769_v41, 4 }
  0xeb   : > { %v1658_v50 = vpop.permute.xlu1 %631  ;;  %v776_v28 = vmul.f32 %v760_v55, %v625_v8  ;;  %v777_v35 = vmul.f32 %v761_v56, %v625_v8  ;;  %v778_v49 = vmul.f32 %v762_v58, %v625_v8  ;;  %v1688_v19 = vadd.f32 %v798_v36, %v767_v17 }
  0xec   : > { %v681_v13 = vpop.permute.xlu0 %680  ;;  %v782_v0 = vrot.slane %v781_v45, 2  ;;  %v788_v55 = vrot.slane %v787_v46, 2  ;;  %v794_v3 = vrot.slane %v793_v51, 2  ;;  %v1693_v5 = vmul.f32 %v1631_v31, %v1639_v37 }
  0xed   : > { %v852_v57 = vrot.slane %v776_v28, 4  ;;  %v858_v1 = vrot.slane %v777_v35, 4  ;;  %v864_v56 = vrot.slane %v778_v49, 4  ;;  %v831_v21 = vadd.f32 %v830_v59, %v829_v29 }
  0xee   : > { %v1646_v42 = vpop.permute.xlu2 %645  ;;  %v837_v23 = vadd.f32 %v836_v63, %v835_v34  ;;  %v816_v17 = vrot.slane %v770_v30, 4  ;;  %v1696_v20 = vadd.f32 %v842_v60, %v841_v39  ;;  %v805_v36 = vadd.f32 %v804_v61, %v768_v40 }
  0xef   : > { %v853_v4 = vadd.f32 %v852_v57, %v776_v28  ;;  %v859_v58 = vadd.f32 %v858_v1, %v777_v35  ;;  %v811_v18 = vadd.f32 %v810_v9, %v769_v41  ;;  %v783_v53 = vadd.f32 %v782_v0, %v781_v45 }
  0xf0   : > { %v789_v52 = vadd.f32 %v788_v55, %v787_v46  ;;  %v779_v10 = vmul.f32 %v1677_v15, %v625_v8  ;;  %v865_v28 = vadd.f32 %v864_v56, %v778_v49  ;;  %v1699_v57 = vadd.f32 %v794_v3, %v793_v51 }
  0xf1   : > { %v854_v31 = vrot.slane %v853_v4, 2  ;;  %v771_v37 = vmul.f32 %v1677_v15, %v621_v22  ;;  %v832_v34 = vrot.slane %v831_v21, 1  ;;  %v838_v35 = vrot.slane %v837_v23, 1 }
  0xf2   : > { %v860_v59 = vrot.slane %v859_v58, 2  ;;  %v817_v63 = vadd.f32 %v816_v17, %v770_v30  ;;  %v844_v40 = vrot.slane %v1696_v20, 1  ;;  %v806_v41 = vrot.slane %v805_v36, 2 }
  0xf3   : > { %v1684_v26 = vpop.permute.xlu1 %652  ;;  %v812_v45 = vrot.slane %v811_v18, 2  ;;  %v712_v8 = vmul.f32 %v1646_v42, %v1610_v12  ;;  %v784_v46 = vrot.slane %v783_v53, 1  ;;  %v790_v49 = vrot.slane %v789_v52, 1 }
  0xf4   : > { %v702_v39 = vpop.permute.xlu0 %701  ;;  %v866_v51 = vrot.slane %v865_v28, 2  ;;  %v870_v1 = vrot.slane %v779_v10, 4  ;;  %v855_v60 = vadd.f32 %v854_v31, %v853_v4  ;;  %v822_v15 = vrot.slane %v771_v37, 4 }
  0xf5   : > { %v861_v61 = vadd.f32 %v860_v59, %v859_v58  ;;  %v818_v9 = vrot.slane %v817_v63, 2  ;;  %v1902_v30 = vperm.slane %v1602_v6, 0  ;;  %v1903_v55 = vperm.slane %v1604_v7, 0 }
  0xf6   : > { %v1681_v16 = vpop.permute.xlu2 %666  ;;  %v807_v42 = vadd.f32 %v806_v41, %v805_v36  ;;  %v813_v3 = vadd.f32 %v812_v45, %v811_v18  ;;  %v713_v4 = vmul.f32 %v1684_v26, %v1633_v32  ;;  %v717_v17 = vmul.f32 %v681_v13, %v1635_v33 }
  0xf7   : > { %v710_v0 = vmul.f32 %v1658_v50, %v1902_v30  ;;  %v714_v56 = vmul.f32 %v1673_v62, %v1903_v55  ;;  %v833_v58 = vadd.f32 %v832_v34, %v831_v21  ;;  %v867_v31 = vadd.f32 %v866_v51, %v865_v28  ;;  %v1906_v30 = vld [vmem:[#allocation6_spill] sm:$0xff] }
  0xf8   : > { %v1717_v59 = vadd.f32 %v822_v15, %v771_v37  ;;  %v856_v62 = vrot.slane %v855_v60, 1  ;;  %v1904_v18 = vperm.slane %v1608_v11, 0  ;;  %v808_v32 = vrot.slane %v807_v42, 1 }
  0xf9   : > { %v722_v36 = vadd.f32 %v714_v56, %v710_v0  ;;  %v814_v26 = vrot.slane %v813_v3, 1  ;;  %v1722_v33 = vadd.f32 %v818_v9, %v817_v63  ;;  %v728_v13 = vadd.f32 %v717_v17, %v713_v4  ;;  %v1907_v4 = vld [vmem:[#allocation7_spill] sm:$0xff] }
  0xfa   : > { %v1724_v21 = vadd.f32 %v784_v46, %v783_v53  ;;  %v715_v28 = vmul.f32 %v1681_v16, %v1641_v38  ;;  %v1733_v53 = vadd.f32 %v808_v32, %v807_v42  ;;  %v1905_v38 = vrot.slane %v1686_v54, 2 }
  0xfb   : > { %v674_v24 = vpop.permute.xlu1 %673  ;;  %v845_v15 = vadd.f32 %v844_v40, %v1696_v20 }
  0xfc   : > { %v716_v29 = vmul.f32 %v674_v24, %v1612_v14  ;;  %v720_v14 = vmul.f32 %v702_v39, %v1621_v25  ;;  %v839_v24 = vadd.f32 %v838_v35, %v837_v23  ;;  %v1726_v23 = vadd.f32 %v790_v49, %v789_v52 }
  0xfd   : > { %v1735_v52 = vadd.f32 %v814_v26, %v813_v3  ;;  %v1741_v16 = vadd.f32 %v1905_v38, %v1686_v54  ;;  %v724_v49 = vadd.f32 %v715_v28, %v1693_v5 }
  0xfe   : > { %v688_v2 = vpop.permute.xlu2 %687  ;;  %v726_v22 = vadd.f32 %v716_v29, %v712_v8  ;;  %v871_v29 = vadd.f32 %v870_v1, %v779_v10  ;;  %v862_v8 = vrot.slane %v861_v61, 1  ;;  %v868_v10 = vrot.slane %v867_v31, 1 }
  0xff   : > { %v718_v41 = vmul.f32 %v688_v2, %v1904_v18  ;;  %v857_v2 = vadd.f32 %v856_v62, %v855_v60  ;;  %v850_v40 = vrot.slane %v1741_v16, 1  ;;  %v1759_v42 = vmul.f32 0.5, %v839_v24 }
 0x100   : > { %v727_v50 = vadd.f32 %v726_v22, %v720_v14  ;;  %v863_v45 = vadd.f32 %v862_v8, %v861_v61  ;;  %v1746_v22 = vadd.f32 %v868_v10, %v867_v31 }
 0x101   : > { %v723_v51 = vadd.f32 %v722_v36, %v718_v41  ;;  %v1768_v10 = vmul.f32 0.5, %v857_v2 }
 0x102   : > { %v884_v34 = vmul.f32 %v727_v50, %v1648_v43  ;;  %v885_v63 = vmul.f32 %v727_v50, %v1650_v44  ;;  %v886_v60 = vmul.f32 %v727_v50, %v1656_v48  ;;  %v887_v17 = vmul.f32 %v727_v50, %v1907_v4 }
 0x103   : > { %v695_v1 = vpop.permute.xlu1 %694  ;;  %v876_v55 = vmul.f32 %v723_v51, %v1648_v43  ;;  %v877_v5 = vmul.f32 %v723_v51, %v1650_v44  ;;  %v878_v3 = vmul.f32 %v723_v51, %v1656_v48  ;;  %v879_v36 = vmul.f32 %v723_v51, %v1907_v4 }
 0x104   : > { %v940_v14 = vrot.slane %v884_v34, 4  ;;  %v719_v0 = vmul.f32 %v695_v1, %v1906_v30  ;;  %v946_v56 = vrot.slane %v885_v63, 4  ;;  %v952_v31 = vrot.slane %v886_v60, 4 }
 0x105   : > { %v892_v18 = vrot.slane %v876_v55, 4  ;;  %v898_v26 = vrot.slane %v877_v5, 4  ;;  %v904_v50 = vrot.slane %v878_v3, 4  ;;  %v1005_v1 = vmul.f32 0.5, %v863_v45 }
 0x106   : > { %v709_v12 = vpop.permute.xlu2 %708  ;;  %v941_v62 = vadd.f32 %v940_v14, %v884_v34  ;;  %v947_v41 = vadd.f32 %v946_v56, %v885_v63  ;;  %v953_v28 = vadd.f32 %v952_v31, %v886_v60  ;;  %v910_v14 = vrot.slane %v879_v36, 4 }
 0x107   : > { %v721_v39 = vmul.f32 %v709_v12, %v1654_v47  ;;  %v872_v47 = vrot.slane %v871_v29, 2  ;;  %v1754_v12 = vmul.f32 0.5, %v833_v58  ;;  %v725_v58 = vadd.f32 %v724_v49, %v719_v0 }
 0x108   : > { %v942_v34 = vrot.slane %v941_v62, 2  ;;  %v893_v51 = vadd.f32 %v892_v18, %v876_v55  ;;  %v948_v63 = vrot.slane %v947_v41, 2  ;;  %v1773_v46 = vadd.f32 %v904_v50, %v878_v3 }
 0x109   : > { %v729_v35 = vadd.f32 %v728_v13, %v721_v39  ;;  %v1752_v54 = vadd.f32 %v872_v47, %v871_v29  ;;  %v1763_v39 = vmul.f32 0.5, %v845_v15  ;;  %v958_v47 = vrot.slane %v887_v17, 4 }
 0x10a   : > { %v880_v49 = vmul.f32 %v725_v58, %v1648_v43  ;;  %v881_v56 = vmul.f32 %v725_v58, %v1650_v44  ;;  %v882_v2 = vmul.f32 %v725_v58, %v1656_v48  ;;  %v954_v60 = vrot.slane %v953_v28, 2 }
 0x10b   : > { %v888_v61 = vmul.f32 %v729_v35, %v1648_v43  ;;  %v889_v9 = vmul.f32 %v729_v35, %v1650_v44  ;;  %v890_v20 = vmul.f32 %v729_v35, %v1656_v48  ;;  %v891_v32 = vmul.f32 %v729_v35, %v1907_v4 }
 0x10c   : > { %v874_v13 = vrot.slane %v1752_v54, 1  ;;  %v899_v35 = vadd.f32 %v898_v26, %v877_v5  ;;  %v959_v31 = vadd.f32 %v958_v47, %v887_v17  ;;  %v883_v45 = vmul.f32 %v725_v58, %v1907_v4 }
 0x10d   : > { %v964_v29 = vrot.slane %v888_v61, 4  ;;  %v970_v8 = vrot.slane %v889_v9, 4  ;;  %v976_v24 = vrot.slane %v890_v20, 4  ;;  %v982_v30 = vrot.slane %v891_v32, 4 }
 0x10e   : > { %v916_v43 = vrot.slane %v880_v49, 4  ;;  %v894_v55 = vrot.slane %v893_v51, 2  ;;  %v949_v18 = vadd.f32 %v948_v63, %v947_v41  ;;  %v922_v44 = vrot.slane %v881_v56, 4 }
 0x10f   : > { %v965_v38 = vadd.f32 %v964_v29, %v888_v61  ;;  %v971_v15 = vadd.f32 %v970_v8, %v889_v9  ;;  %v977_v0 = vadd.f32 %v976_v24, %v890_v20  ;;  %v943_v61 = vadd.f32 %v942_v34, %v941_v62 }
 0x110   : > { %v1776_v8 = vadd.f32 %v910_v14, %v879_v36  ;;  %v983_v5 = vadd.f32 %v982_v30, %v891_v32  ;;  %v900_v20 = vrot.slane %v899_v35, 2  ;;  %v928_v24 = vrot.slane %v882_v2, 4 }
 0x111   : > { %v966_v9 = vrot.slane %v965_v38, 2  ;;  %v972_v29 = vrot.slane %v971_v15, 2  ;;  %v978_v26 = vrot.slane %v977_v0, 2  ;;  %v906_v48 = vrot.slane %v1773_v46, 2 }
 0x112   : > { %v934_v3 = vrot.slane %v883_v45, 4  ;;  %v955_v50 = vadd.f32 %v954_v60, %v953_v28  ;;  %v960_v17 = vrot.slane %v959_v31, 2  ;;  %v917_v62 = vadd.f32 %v916_v43, %v880_v49 }
 0x113   : > { %v967_v47 = vadd.f32 %v966_v9, %v965_v38  ;;  %v973_v4 = vadd.f32 %v972_v29, %v971_v15  ;;  %v944_v58 = vrot.slane %v943_v61, 1  ;;  %v895_v34 = vadd.f32 %v894_v55, %v893_v51 }
 0x114   : > { %v851_v36 = vadd.f32 %v850_v40, %v1741_v16  ;;  %v950_v14 = vrot.slane %v949_v18, 1  ;;  %v984_v41 = vrot.slane %v983_v5, 2  ;;  %v901_v32 = vadd.f32 %v900_v20, %v899_v35 }
 0x115   : > { %v923_v63 = vadd.f32 %v922_v44, %v881_v56  ;;  %v929_v30 = vadd.f32 %v928_v24, %v882_v2  ;;  %v979_v25 = vadd.f32 %v978_v26, %v977_v0  ;;  %v1780_v37 = vadd.f32 %v934_v3, %v883_v45 }
 0x116   : > { %v875_v27 = vadd.f32 %v874_v13, %v1752_v54  ;;  %v956_v28 = vrot.slane %v955_v50, 1  ;;  %v961_v60 = vadd.f32 %v960_v17, %v959_v31  ;;  %v918_v38 = vrot.slane %v917_v62, 2 }
 0x117   : > { %v945_v15 = vadd.f32 %v944_v58, %v943_v61  ;;  %v968_v49 = vrot.slane %v967_v47, 1  ;;  %v974_v9 = vrot.slane %v973_v4, 1  ;;  %v951_v51 = vadd.f32 %v950_v14, %v949_v18 }
 0x118   : > { %v985_v29 = vadd.f32 %v984_v41, %v983_v5  ;;  %v1006_v16 = vmul.f32 0.5, %v1746_v22  ;;  %v1039_v40 = vsel %vm480_vm13, %v1759_v42, %v1754_v12  ;;  %v924_v35 = vrot.slane %v923_v63, 2 }
 0x119   : > { %v930_v0 = vrot.slane %v929_v30, 2  ;;  %v980_v56 = vrot.slane %v979_v25, 1  ;;  %v1042_v54 = vsel %vm480_vm13, %v1005_v1, %v1768_v10  ;;  %v957_v13 = vadd.f32 %v956_v28, %v955_v50 }
 0x11a   : > { %v962_v2 = vrot.slane %v961_v60, 1  ;;  %v1003_v31 = vmul.f32 0.5, %v851_v36  ;;  %v1908_v45 = vrot.slane %v1688_v19, 2  ;;  %v969_v43 = vadd.f32 %v968_v49, %v967_v47 }
 0x11b   : > { %v975_v55 = vadd.f32 %v974_v9, %v973_v4  ;;  %v1007_v22 = vmul.f32 0.5, %v875_v27  ;;  %v1040_v18 = vsel %vm482_vm14, %v1763_v39, %v1039_v40  ;;  %v919_v12 = vadd.f32 %v918_v38, %v917_v62 }
 0x11c   : > { %v801_v61 = vadd.f32 %v1908_v45, %v1688_v19  ;;  %v986_v42 = vrot.slane %v985_v29, 1  ;;  %v1043_v5 = vsel %vm482_vm14, %v1006_v16, %v1042_v54  ;;  %v1075_v10 = vsel %vm480_vm13, %v951_v51, %v945_v15 }
 0x11d   : > { %v925_v1 = vadd.f32 %v924_v35, %v923_v63  ;;  %v981_v20 = vadd.f32 %v980_v56, %v979_v25  ;;  %v1909_v26 = vrot.slane %v1717_v59, 2  ;;  %v896_v19 = vrot.slane %v895_v34, 1 }
 0x11e   : > { %v1799_v24 = vadd.f32 %v962_v2, %v961_v60  ;;  %v1802_v27 = vsel %vm1034_vm0, %v1003_v31, %v1040_v18  ;;  %v802_v39 = vrot.slane %v801_v61, 1  ;;  %v902_v3 = vrot.slane %v901_v32, 1 }
 0x11f   : > { %v825_v44 = vadd.f32 %v1909_v26, %v1717_v59  ;;  %v1805_v50 = vsel %vm1034_vm0, %v1007_v22, %v1043_v5  ;;  %v1808_v17 = vsel %vm482_vm14, %v957_v13, %v1075_v10  ;;  %v1078_v25 = vsel %vm480_vm13, %v975_v55, %v969_v43 }
 0x120   : > { %v912_v47 = vrot.slane %v1776_v8, 2  ;;  %v1812_v4 = vadd.f32 %v986_v42, %v985_v29  ;;  %v1910_v59 = vrot.slane %v1699_v57, 1  ;;  %v907_v58 = vadd.f32 %v906_v48, %v1773_v46 }
 0x121   : > { %v920_v36 = vrot.slane %v919_v12, 1  ;;  %v1911_v41 = vrot.slane %v1722_v33, 1  ;;  %v826_v28 = vrot.slane %v825_v44, 1  ;;  %v897_v60 = vadd.f32 %v896_v19, %v895_v34 }
 0x122   : > { %v797_v62 = vadd.f32 %v1910_v59, %v1699_v57  ;;  %v931_v38 = vadd.f32 %v930_v0, %v929_v30  ;;  %v803_v49 = vadd.f32 %v802_v39, %v801_v61  ;;  %v903_v9 = vadd.f32 %v902_v3, %v901_v32 }
 0x123   : > { %v821_v63 = vadd.f32 %v1911_v41, %v1722_v33  ;;  %v926_v51 = vrot.slane %v925_v1, 1  ;;  %v936_v29 = vrot.slane %v1780_v37, 2  ;;  %v913_v46 = vadd.f32 %v912_v47, %v1776_v8 }
 0x124   : > { %v992_v48 = vmul.f32 0.5, %v1724_v21  ;;  %v993_v40 = vmul.f32 0.5, %v1726_v23  ;;  %v908_v30 = vrot.slane %v907_v58, 1  ;;  %v921_v35 = vadd.f32 %v920_v36, %v919_v12 }
 0x125   : > { %v932_v0 = vrot.slane %v931_v38, 1  ;;  %v996_v56 = vmul.f32 0.5, %v1733_v53  ;;  %v927_v8 = vadd.f32 %v926_v51, %v925_v1  ;;  %v937_v21 = vadd.f32 %v936_v29, %v1780_v37 }
 0x126   : > { %v750_v14 = vpop.permute.xlu2 %749  ;;  %v994_v13 = vmul.f32 0.5, %v797_v62  ;;  %v827_v2 = vadd.f32 %v826_v28, %v825_v44  ;;  %v909_v45 = vadd.f32 %v908_v30, %v907_v58  ;;  %v995_v61 = vmul.f32 0.5, %v803_v49 }
 0x127   : > { %v753_v33 = vmul.f32 %v750_v14, %v1608_v11  ;;  %v914_v11 = vrot.slane %v913_v46, 1  ;;  %v998_v43 = vmul.f32 0.5, %v821_v63  ;;  %v933_v55 = vadd.f32 %v932_v0, %v931_v38 }
 0x128   : > { %v1069_v22 = vsel %vm480_vm13, %v903_v9, %v897_v60  ;;  %v1079_v37 = vsel %vm482_vm14, %v981_v20, %v1078_v25  ;;  %v938_v18 = vrot.slane %v937_v21, 1  ;;  %v1072_v42 = vsel %vm480_vm13, %v927_v8, %v921_v35 }
 0x129   : > { %v758_v31 = vsel %vm754_vm1, %v753_v33, 0.0  ;;  %v915_v1 = vadd.f32 %v914_v11, %v913_v46  ;;  %v999_v26 = vmul.f32 0.5, %v827_v2  ;;  %v1070_v3 = vsel %vm482_vm14, %v909_v45, %v1069_v22 }
 0x12a   : > { %v1073_v25 = vsel %vm482_vm14, %v933_v55, %v1072_v42  ;;  %v1077_v58 = vsel %vm1034_vm0, %v1799_v24, %v1808_v17  ;;  %v939_v36 = vadd.f32 %v938_v18, %v937_v21  ;;  %v1080_v49 = vsel %vm1034_vm0, %v1812_v4, %v1079_v37 }
 0x12c   : > { %v1074_v51 = vsel %vm1034_vm0, %v939_v36, %v1073_v25 }
 0x13e   : > { %v743_v15 = vpop.permute.xlu0 %742 }
 0x13f   : > { %v752_v16 = vmul.f32 %v743_v15, %v1604_v7  ;;  %v736_v57 = vpop.permute.xlu1 %735  ;;  %v997_v7 = vmul.f32 0.5, %v1735_v52  ;;  %v1071_v15 = vsel %vm1034_vm0, %v915_v1, %v1070_v3 }
 0x140   : > { %v751_v34 = vmul.f32 %v736_v57, %v1602_v6  ;;  %v1032_v6 = vsel %vm480_vm13, %v993_v40, %v992_v48 }
 0x141   : > { %v756_v32 = vsel %vm754_vm1, %v752_v16, 0.0  ;;  %v1036_v52 = vsel %vm480_vm13, %v997_v7, %v996_v56  ;;  %v1033_v12 = vsel %vm482_vm14, %v994_v13, %v1032_v6 }
 0x142   : > { %v755_v54 = vsel %vm754_vm1, %v751_v34, 0.0  ;;  %v1037_v39 = vsel %vm482_vm14, %v998_v43, %v1036_v52  ;;  %v1035_v20 = vsel %vm1034_vm0, %v995_v61, %v1033_v12 }
 0x143   : > { %v757_v23 = vadd.f32 %v756_v32, %v755_v54  ;;  %v1038_v38 = vsel %vm1034_vm0, %v999_v26, %v1037_v39 }
 0x145   : > { %v759_v53 = vadd.f32 %v758_v31, %v757_v23 }
 0x146   : > { %v1413_v62 = vpop.permute.xlu0 %1412 }
 0x147   : > { %v990_v5 = vrot.slane %v759_v53, 2  ;;  %v991_v10 = vrot.slane %v759_v53, 3  ;;  %v989_v44 = vrot.slane %v759_v53, 1  ;;  %v1008_v19 = vperm.slane %v759_v53, 0  ;;  %v1408_v60 = vpop.permute.xlu1 %1407 }
 0x148   : > { %v1415_v17 = vunpack.i.h.bf16 %v1413_v62  ;;  %v1414_v29 = vunpack.i.l.bf16 %v1413_v62  ;;  %v1410_v40 = vunpack.i.h.bf16 %v1408_v60 }
 0x149   : > { %v1010_v47 = vperm.slane %v990_v5, 0  ;;  %v1011_v59 = vperm.slane %v991_v10, 0  ;;  %v1009_v14 = vperm.slane %v989_v44, 0  ;;  %v1049_v41 = vsub.f32 %v1008_v19, %v1035_v20 }
 0x14b   : > { %v1051_v63 = vsub.f32 %v1010_v47, %v1802_v27  ;;  %v1052_v28 = vsub.f32 %v1011_v59, %v1805_v50  ;;  %v1050_v9 = vsub.f32 %v1009_v14, %v1038_v38  ;;  %v1085_v24 = vadd.f32 %v1071_v15, %v1049_v41 }
 0x14c   : > { %v1409_v27 = vunpack.i.l.bf16 %v1408_v60 }
 0x14d   : > { %v1087_v16 = vadd.f32 %v1077_v58, %v1051_v63  ;;  %v1088_v57 = vadd.f32 %v1080_v49, %v1052_v28  ;;  %v1086_v46 = vadd.f32 %v1074_v51, %v1050_v9  ;;  %1089 = vst [vmem:[%s364_s27] sm:$0xf] %v1085_v24 }
 0x14e   : > { %v1125_v4 = vsub.f32 %v1085_v24, %v1409_v27 }
 0x14f   : > { %1091 = vst [vmem:[%s364_s27 + $0x8] sm:$0xf] %v1087_v16  ;;  %v1127_v50 = vsub.f32 %v1087_v16, %v1414_v29  ;;  %v1128_v48 = vsub.f32 %v1088_v57, %v1415_v17  ;;  %v1126_v33 = vsub.f32 %v1086_v46, %v1410_v40 }
 0x150   : > { %1092 = vst [vmem:[%s364_s27 + $0xc] sm:$0xf] %v1088_v57 }
 0x151   : > { %1131 = vst [vmem:[%s370_s29 + $0x8] sm:$0xf] %v1127_v50  ;;  %1143 = sbr.rel (!%p1525_p5) target bundleno = 348 (0x15c), region = 123 }
 0x152   : > { %1132 = vst [vmem:[%s370_s29 + $0xc] sm:$0xf] %v1128_v48 }
 0x153   : > { %1090 = vst [vmem:[%s364_s27 + $0x4] sm:$0xf] %v1086_v46 }
 0x154   : > { %1129 = vst [vmem:[%s370_s29] sm:$0xf] %v1125_v4  ;;  %v1162_v34 = vld [vmem:[%s364_s27] sm:$0xf] (%p1525_p5) }
 0x155   : > { %1130 = vst [vmem:[%s370_s29 + $0x4] sm:$0xf] %v1126_v33 }
 0x156   : > { %v1166_v35 = vld [vmem:[%s364_s27 + $0x8] sm:$0xf]  ;;  %1163 = vst [vmem:[%s1145_s23] sm:$0xf] %v1162_v34 }
 0x157   : > { %v1168_v32 = vld [vmem:[%s364_s27 + $0xc] sm:$0xf]  ;;  %1167 = vst [vmem:[%s1145_s23 + $0x18] sm:$0xf] %v1166_v35 }
 0x158   : > { %1169 = vst [vmem:[%s1145_s23 + $0x24] sm:$0xf] %v1168_v32 }
 0x15a   : > { %v1164_v30 = vld [vmem:[%s364_s27 + $0x4] sm:$0xf] }
 0x15b   : > { %1165 = vst [vmem:[%s1145_s23 + $0xc] sm:$0xf] %v1164_v30 }
 0x15c PF: > { %1201 = sbr.rel (!%p1525_p5) target bundleno = 356 (0x164), region = 164  ;;  %s1373_s10 = sshll.u32 (%p1525_p5), %s1506_s24, 2 }
 0x15d   : > { %s1203_s13 = scalar_lea.vmem (%p1525_p5), %s1887_s6, %s1373_s10 }
 0x15e   : > { %v1224_v7 = vld [vmem:[%s370_s29 + $0x8] sm:$0xf] (%p1525_p5) }
 0x15f   : > { %v1226_v54 = vld [vmem:[%s370_s29 + $0xc] sm:$0xf] (%p1525_p5)  ;;  %1225 = vst [vmem:[%s1203_s13 + $0x18] sm:$0xf] (%p1525_p5), %v1224_v7 }
 0x160   : > { %1227 = vst [vmem:[%s1203_s13 + $0x24] sm:$0xf] (%p1525_p5), %v1226_v54 }
 0x161   : > { %v1220_v0 = vld [vmem:[%s370_s29] sm:$0xf] }
 0x162   : > { %v1222_v56 = vld [vmem:[%s370_s29 + $0x4] sm:$0xf]  ;;  %1221 = vst [vmem:[%s1203_s13] sm:$0xf] %v1220_v0 }
 0x163   : > { %1223 = vst [vmem:[%s1203_s13 + $0xc] sm:$0xf] %v1222_v56 }
 0x164 PF: > { %p14_p10 = scmp.ge.s32.totalorder %s1509_s25, 5   ;;  %s1912_s21 = smov %s1448_s22 }
 0x165   : > { %s1913_s22 = smov %s1519_s28  ;;  %s1914_s23 = smov %s1509_s25 }
 0x166   :  { %16 = sbr.rel (!%p14_p10) target bundleno = 2 (0x2), region = 256 }

// kernel: mixture_forward.2
= control target key start
LH: loop header
LB: loop body
LE: loop exit
PB: predicated region body
PF: predicated region fallthrough
CT: control target
= control target key end

     0   :  { %s3166_s0 = inlined_call_operand.vmem [shape: f32[4,8,384], index: 0, kind: input, shape index: {}]   ;;  %s3167_s1 = inlined_call_operand.vmem [shape: f32[3,4], index: 1, kind: input, shape index: {}]   ;;  %s3168_s2 = inlined_call_operand.vmem [shape: f32[3,4,8], index: 2, kind: input, shape index: {}]   ;;  %s3169_s3 = inlined_call_operand.vmem [shape: f32[3,4,8], index: 3, kind: input, shape index: {}]   ;;  %s3170_s4 = inlined_call_operand.vmem [shape: f32[3,4], index: 4, kind: input, shape index: {}]   ;;  %s3171_s5 = inlined_call_operand.vmem [shape: f32[3,4,8], index: 5, kind: input, shape index: {}]   ;;  %s3172_s6 = inlined_call_operand.vmem [shape: f32[3,4,8,8], index: 6, kind: input, shape index: {}]   ;;  %s3173_s7 = inlined_call_operand.vmem [shape: f32[3,4,384], index: 7, kind: output, shape index: {0}]   ;;  %s3174_s8 = inlined_call_operand.vmem [shape: f32[3,4], index: 8, kind: output, shape index: {1}]   ;;  %s3175_s9 = inlined_call_operand.hbm [shape: f32[3,4,8], index: 9, kind: output, shape index: {2}]   ;;  %s3176_s10 = inlined_call_operand.hbm [shape: f32[3,4,8,8], index: 10, kind: output, shape index: {3}]   ;;  %s3177_s11 = inlined_call_operand.vmem [shape: f32[3,4,8], index: 11, kind: output, shape index: {4}]   ;;  %s3178_s12 = inlined_call_operand.vmem [shape: f32[3,4], index: 12, kind: output, shape index: {5}]   ;;  %s3179_s13 = inlined_call_operand.vmem [shape: f32[3,4,8], index: 13, kind: output, shape index: {6}]   ;;  %s3180_s14 = inlined_call_operand.hbm [shape: f32[1,4], index: 14, kind: output, shape index: {7}]  }
   0x1   :  { %3181 = sst [smem:[#allocation14_spill]] %s3166_s0 }
   0x2   :  { %3182 = sst [smem:[#allocation15_spill]] %s3167_s1 }
   0x3   :  { %3183 = sst [smem:[#allocation16_spill]] %s3168_s2 }
   0x4   :  { %3184 = sst [smem:[#allocation17_spill]] %s3169_s3 }
   0x5   :  { %20 = vsyncpa [#allocation8], 0 }
   0x6   :  { %21 = vsyncpa [#allocation10], 0  ;;  %s2559_s29 = smov 0   ;;  %s2561_s30 = smov 0  }
   0x7   :  { %s2563_s15 = smov 0  }
   0x8 LB: > { %s2575_s16 = sadd.s32 4294967295, %s2472_s15   ;;  %s2578_s17 = sadd.s32 1, %s2472_s15   ;;  %s2472_s15 = sphi %s2563_s15, %s3192_s15   ;;  %s2468_s30 = sphi %s2561_s30, %s3191_s30   ;;  %s2464_s29 = sphi %s2559_s29, %s3190_s29  }
   0x9   : > { %s31_s18 = ssub.s32 %s2472_s15, %s2578_s17  ;;  %s34_s19 = sadd.s32 1, %s2468_s30 }
   0xa   : > { %p32_p0 = scmp.eq.s32.totalorder %s31_s18, 0  ;;  %p41_p1 = scmp.ne.s32.totalorder %s2468_s30, %s2464_s29 }
   0xb   : > { %p42_p2 = scmp.eq.s32.totalorder %s2472_s15, 0  ;;  %p197_p3 = scmp.eq.s32.totalorder %s2575_s16, 2 }
   0xc   : > { %s2588_s20 = scalar_select %p32_p0, %s2468_s30, %s34_s19  }
   0xd   : > { %p43_p4 = por %p42_p2, %p41_p1  ;;  %p2592_p5 = por %p197_p3, %p41_p1 }
   0xe   : > { %p2247_p6 = scmp.ge.s32.totalorder %s2472_s15, 3 }
  0x10   : > { %384 = sbr.rel (%p2247_p6) target bundleno = 35 (0x23), region = 40 }
  0x15   : > { %387 = sbr.rel (!%p43_p4) target bundleno = 35 (0x23), region = 44  ;;  %s389_s22 = sand.u32 (%p43_p4), 1, %s2468_s30  }
  0x16   : > { %s2249_s23 = sshll.u32 (%p43_p4), %s2472_s15, 3  ;;  %s2248_s24 = sshll.u32 (%p43_p4), %s389_s22, 5 }
  0x17   : > { %s3186_s0 = sld [smem:[#allocation14_spill]] (%p43_p4)  ;;  %s391_s28 = scalar_lea.vmem (%p43_p4), [#allocation5], %s2248_s24 }
  0x1d   : > { %s393_s27 = scalar_lea.vmem %s3186_s0, %s2249_s23 }
  0x1e   : > { %v428_v0 = vld [vmem:[%s393_s27] sm:$0xff]  ;;  %v430_v1 = vld [vmem:[%s393_s27 + $0x18] sm:$0xff]  ;;  %v432_v2 = vld [vmem:[%s393_s27 + $0x30] sm:$0xff] }
  0x1f   : > { %429 = vst [vmem:[%s391_s28] sm:$0xff] %v428_v0  ;;  %v434_v3 = vld [vmem:[%s393_s27 + $0x48] sm:$0xff] }
  0x20   : > { %431 = vst [vmem:[%s391_s28 + $0x8] sm:$0xff] %v430_v1 }
  0x21   : > { %433 = vst [vmem:[%s391_s28 + $0x10] sm:$0xff] %v432_v2 }
  0x22   : > { %435 = vst [vmem:[%s391_s28 + $0x18] sm:$0xff] %v434_v3 }
  0x23 PF: > { %p2250_p7 = scmp.ge.s32.totalorder %s2472_s15, 1  ;;  %p440_p8 = scmp.lt.s32.totalorder %s2472_s15, 4 }
  0x25   : > { %p441_p9 = pnand %p2250_p7, %p440_p8 }
  0x26   : > { %s447_s18 = sand.u32 (!%p441_p9), 1, %s2464_s29   ;;  %p2252_p10 = scmp.ne.s32.totalorder (!%p441_p9), %s2575_s16, 0 }
  0x27   : > { %444 = sbr.rel (%p441_p9) target bundleno = 1015 (0x3f7), region = 82  ;;  %s2251_s19 = sshll.u32 (!%p441_p9), %s447_s18, 5 }
  0x28   : > { %s2264_s22 = smul.u32 (!%p441_p9), 12, %s447_s18  ;;  %s2605_s23 = scalar_lea.vmem (!%p441_p9), [#allocation5], %s2251_s19 }
  0x2a   : > { %s2607_s24 = scalar_lea.vmem (!%p441_p9), [#allocation6], %s2264_s22 }
  0x2c   : > { %494 = sbr.rel (%p2252_p10) target bundleno = 66 (0x42), region = 90 }
  0x31   : > { %vm495_vm0 = vcmask 26624   ;;  %vm497_vm1 = vcmask 60416   ;;  %v2474_v4 = vmov 0.0   ;;  %vm501_vm2 = vcmask 64512  }
  0x32   : > { %496 = vst.msk [vmem:[#allocation2] sm:$0x7] %vm495_vm0, %v2474_v4 }
  0x33   : > { %498 = vst.msk [vmem:[#allocation3] sm:$0xf] %vm497_vm1, %v2474_v4 }
  0x34   : > { %499 = vst.msk [vmem:[#allocation3 + $0x4] sm:$0xf] %vm497_vm1, %v2474_v4 }
  0x35   : > { %500 = vst.msk [vmem:[#allocation3 + $0x8] sm:$0xf] %vm497_vm1, %v2474_v4 }
  0x36   : > { %502 = vst.msk [vmem:[#allocation4] sm:$0xff] %vm501_vm2, %v2474_v4 }
  0x37   : > { %503 = vst.msk [vmem:[#allocation4 + $0x8] sm:$0xff] %vm501_vm2, %v2474_v4 }
  0x38   : > { %504 = vst.msk [vmem:[#allocation4 + $0x10] sm:$0xff] %vm501_vm2, %v2474_v4 }
  0x39   : > { %505 = vst.msk [vmem:[#allocation4 + $0x18] sm:$0xff] %vm501_vm2, %v2474_v4 }
  0x3a   : > { %506 = vst.msk [vmem:[#allocation4 + $0x20] sm:$0xff] %vm501_vm2, %v2474_v4 }
  0x3b   : > { %507 = vst.msk [vmem:[#allocation4 + $0x28] sm:$0xff] %vm501_vm2, %v2474_v4 }
  0x3c   : > { %508 = vst.msk [vmem:[#allocation4 + $0x30] sm:$0xff] %vm501_vm2, %v2474_v4 }
  0x3d   : > { %509 = vst.msk [vmem:[#allocation4 + $0x38] sm:$0xff] %vm501_vm2, %v2474_v4 }
  0x3e   : > { %510 = vst.msk [vmem:[#allocation4 + $0x40] sm:$0xff] %vm501_vm2, %v2474_v4 }
  0x3f   : > { %511 = vst.msk [vmem:[#allocation4 + $0x48] sm:$0xff] %vm501_vm2, %v2474_v4 }
  0x40   : > { %512 = vst.msk [vmem:[#allocation4 + $0x50] sm:$0xff] %vm501_vm2, %v2474_v4 }
  0x41   : > { %513 = vst.msk [vmem:[#allocation4 + $0x58] sm:$0xff] %vm501_vm2, %v2474_v4 }
  0x42 PF: > { %v606_v5 = vlaneseq  ;;  %s3187_s3 = sld [smem:[#allocation17_spill]]  ;;  %vm579_vm15 = vcmask 60416   ;;  %vm1014_vm0 = vcmask 1041409   ;;  %vm1017_vm1 = vcmask 1042434   ;;  %s2253_s27 = sshll.u32 %s2575_s16, 7 }
  0x43   : > { %s3188_s2 = sld [smem:[#allocation16_spill]]  ;;  %vm1020_vm2 = vcmask 1043459   ;;  %p2254_p11 = scmp.ne.s32.totalorder %s2575_s16, 2 }
  0x44   : > { %v2622_v8 = vshrl.u32 %v606_v5, 7  ;;  %s3189_s1 = sld [smem:[#allocation15_spill]] }
  0x46   : > { %2317 = vset.pattern.permute.xlu2 %v2622_v8  ;;  %2319 = vset.pattern.permute.xlu1 %v2622_v8 }
  0x47   : > { %2318 = vset.pattern.permute.xlu0 %v2622_v8 }
  0x48   : > { %v2613_v6 = vld [vmem:[%s3187_s3] sm:$0xf]  ;;  %v2618_v7 = vld [vmem:[%s3187_s3 + $0x4] sm:$0xf]  ;;  %v2630_v9 = vld [vmem:[%s3187_s3 + $0x8] sm:$0xf] }
  0x49   : > { %2320 = vrcp.f32 %v2613_v6  ;;  %v536_v13 = vand.u32 2147483648, %v2613_v6  ;;  %vm530_vm3 = vweird.f32 %v2613_v6  ;;  %v534_v16 = vand.u32 2147483647, %v2613_v6  ;;  %v2647_v25 = vld [vmem:[%s3188_s2] sm:$0xf] }
  0x4a   : > { %2322 = vrcp.f32 %v2618_v7  ;;  %vm544_vm5 = vweird.f32 %v2618_v7  ;;  %v550_v18 = vand.u32 2147483648, %v2618_v7  ;;  %v548_v20 = vand.u32 2147483647, %v2618_v7  ;;  %v2658_v35 = vld [vmem:[%s3188_s2 + $0x4] sm:$0xf] }
  0x4b   : > { %2324 = vrcp.f32 %v2630_v9  ;;  %v537_v22 = vor.u32 1.1754944e-38, %v536_v13  ;;  %vm535_vm8 = vcmp.eq.f32.partialorder %v534_v16, 8.507059e+37  ;;  %vm558_vm11 = vweird.f32 %v2630_v9  ;;  %v521_v52 = vld [vmem:[%s3188_s2 + $0x8] sm:$0xf]  ;;  %v2688_v13 = vld [vmem:[%s2605_s23 + $0x10] sm:$0xff] }
  0x4c   : > { %v551_v27 = vor.u32 1.1754944e-38, %v550_v18  ;;  %vm549_vm10 = vcmp.eq.f32.partialorder %v548_v20, 8.507059e+37  ;;  %v564_v44 = vand.u32 2147483648, %v2630_v9  ;;  %v562_v46 = vand.u32 2147483647, %v2630_v9 }
  0x4d   : > { %2326 = vlog2.f32 %v534_v16  ;;  %v2704_v16 = vld [vmem:[%s2605_s23 + $0x18] sm:$0xff] }
  0x4e   : > { %v565_v47 = vor.u32 1.1754944e-38, %v564_v44  ;;  %vm563_vm14 = vcmp.eq.f32.partialorder %v562_v46, 8.507059e+37  ;;  %2328 = vlog2.f32 %v562_v46  ;;  %1324 = vmatpush.xpose.msra.mxu0 %v2704_v16 }
  0x4f   : > { %v2321_v10 = vpop.eup %2320  ;;  %2330 = vlog2.f32 %v548_v20 }
  0x50   : > { %v2323_v11 = vpop.eup %2322  ;;  %v526_v12 = vmul.f32 %v2321_v10, %v2613_v6  ;;  %vm531_vm4 = vweird.f32 %v2321_v10 }
  0x51   : > { %v540_v14 = vmul.f32 %v2323_v11, %v2618_v7  ;;  %vm545_vm6 = vweird.f32 %v2323_v11  ;;  %v2325_v21 = vpop.eup %2324  ;;  %vm532_vm7 = vmor %vm530_vm3, %vm531_vm4  ;;  %vm1070_vm3 = vcmask 1043456  }
  0x52   : > { %v527_v15 = vsub.f32 1.0, %v526_v12  ;;  %vm546_vm9 = vmor %vm544_vm5, %vm545_vm6  ;;  %v554_v29 = vmul.f32 %v2325_v21, %v2630_v9  ;;  %vm559_vm12 = vweird.f32 %v2325_v21  ;;  %v2683_v12 = vld [vmem:[%s2605_s23] sm:$0xff]  ;;  %1350 = vmatpush.xpose.msrb.mxu0 %v2704_v16 }
  0x53   : > { %v541_v17 = vsub.f32 1.0, %v540_v14  ;;  %vm560_vm13 = vmor %vm558_vm11, %vm559_vm12  ;;  %1152 = vmatpush.xpose.msra.mxu1 %v2683_v12  ;;  %v2327_v18 = vpop.eup %2326  ;;  %vm1396_vm11 = vcmask 1040384   ;;  %vm1400_vm12 = vcmask 1041408  }
  0x54   : > { %v528_v19 = vmul.f32 %v2321_v10, %v527_v15  ;;  %v555_v38 = vsub.f32 1.0, %v554_v29  ;;  %v574_v7 = vmul.f32 0.6931472, %v2327_v18 }
  0x55   : > { %v542_v23 = vmul.f32 %v2323_v11, %v541_v17 }
  0x56   : > { %v529_v24 = vadd.f32 %v2321_v10, %v528_v19  ;;  %v556_v41 = vmul.f32 %v2325_v21, %v555_v38  ;;  %v2329_v19 = vpop.eup %2328 }
  0x57   : > { %v543_v26 = vadd.f32 %v2323_v11, %v542_v23  ;;  %1178 = vmatpush.xpose.msrb.mxu1 %v2683_v12  ;;  %v578_v20 = vmul.f32 0.6931472, %v2329_v19 }
  0x58   : > { %v533_v28 = vsel %vm532_vm7, %v2321_v10, %v529_v24  ;;  %v557_v45 = vadd.f32 %v2325_v21, %v556_v41  ;;  %v2678_v10 = vld [vmem:[%s2605_s23 + $0x8] sm:$0xff]  ;;  %v580_v24 = vsel %vm579_vm15, %v574_v7, 0.0 }
  0x59   : > { %v538_v30 = vsel %vm535_vm8, %v537_v22, %v533_v28  ;;  %v547_v31 = vsel %vm546_vm9, %v2323_v11, %v543_v26  ;;  %1209 = vmatpush.xpose.msra.mxu2 %v2678_v10  ;;  %1235 = vmatpush.xpose.msra.mxu3 %v2678_v10  ;;  %v2331_v22 = vpop.eup %2330  ;;  %vm1127_vm9 = vcmask 26624  }
  0x5a   : > { %v612_v32 = vperm.slane %v538_v30, 1  ;;  %v2653_v33 = vmul.f32 %v538_v30, %v2647_v25  ;;  %v552_v34 = vsel %vm549_vm10, %v551_v27, %v547_v31  ;;  %v561_v49 = vsel %vm560_vm13, %v2325_v21, %v557_v45  ;;  %v518_v27 = vld [vmem:[%s3189_s1] sm:$0x7] }
  0x5b   : > { %v2663_v39 = vmul.f32 %v552_v34, %v2658_v35  ;;  %v640_v40 = vperm.slane %v552_v34, 1  ;;  %v566_v53 = vsel %vm563_vm14, %v565_v47, %v561_v49  ;;  %v619_v55 = vperm.slane %v538_v30, 2 }
  0x5c   : > { %617 = vperm.xlu2 %2317, %v612_v32   ;;  %v787_v36 = vperm.slane %v2653_v33, 2  ;;  %v780_v37 = vperm.slane %v2653_v33, 1  ;;  %v794_v50 = vperm.slane %v2653_v33, 3  ;;  %v773_v51 = vperm.slane %v2653_v33, 0 }
  0x5d   : > { %v815_v42 = vperm.slane %v2663_v39, 2  ;;  %v808_v43 = vperm.slane %v2663_v39, 1  ;;  %v801_v48 = vperm.slane %v2663_v39, 0  ;;  %v569_v54 = vmul.f32 %v566_v53, %v521_v52  ;;  %1266 = vmatpush.xpose.msrb.mxu3 %v2688_v13  ;;  %1292 = vmatpush.xpose.msrb.mxu2 %v2688_v13 }
  0x5e   : > { %792 = vperm.xlu1 %2319, %v787_v36   ;;  %785 = vperm.xlu0 %2318, %v780_v37   ;;  %v822_v57 = vperm.slane %v2663_v39, 3  ;;  %v605_v58 = vperm.slane %v538_v30, 0  ;;  %v647_v60 = vperm.slane %v552_v34, 2  ;;  %v654_v61 = vperm.slane %v552_v34, 3 }
  0x5f   : > { %v836_v56 = vperm.slane %v569_v54, 1  ;;  %v843_v59 = vperm.slane %v569_v54, 2  ;;  %v633_v62 = vperm.slane %v552_v34, 0  ;;  %v626_v63 = vperm.slane %v538_v30, 3 }
  0x60   : > { %v850_v0 = vperm.slane %v569_v54, 3  ;;  %v829_v1 = vperm.slane %v569_v54, 0  ;;  %v668_v2 = vperm.slane %v566_v53, 1  ;;  %v682_v3 = vperm.slane %v566_v53, 3 }
  0x61   : > { %v661_v4 = vperm.slane %v566_v53, 0  ;;  %v675_v9 = vperm.slane %v566_v53, 2  ;;  %v591_v11 = vmul.f32 %v569_v54, %v521_v52  ;;  %v590_v14 = vmul.f32 %v2663_v39, %v2658_v35 }
  0x62   : > { %v589_v15 = vmul.f32 %v2653_v33, %v2647_v25  ;;  %v576_v23 = vmul.f32 0.6931472, %v2331_v22  ;;  %v586_v25 = vsel %vm579_vm15, %v578_v20, 0.0  ;;  %v1053_v31 = vperm.slane %v518_v27, 1 }
  0x63   : > { %v598_v17 = vsel %vm579_vm15, %v591_v11, 0.0  ;;  %v595_v21 = vsel %vm579_vm15, %v590_v14, 0.0  ;;  %v1046_v32 = vperm.slane %v518_v27, 0  ;;  %v1060_v33 = vperm.slane %v518_v27, 2 }
  0x64   : > { %645 = vperm.xlu2 %2317, %v640_v40   ;;  %v592_v6 = vsel %vm579_vm15, %v589_v15, 0.0  ;;  %v583_v26 = vsel %vm579_vm15, %v576_v23, 0.0  ;;  %v2727_v47 = vmul.f32 %v2688_v13, %v2688_v13  ;;  %vm1438_vm10 = vcmask 64512  }
  0x65   : > { %vm1404_vm13 = vcmask 1042432  }
  0x66   : > { %820 = vperm.xlu1 %2319, %v815_v42   ;;  %813 = vperm.xlu0 %2318, %v808_v43   ;;  %v2720_v43 = vmul.f32 %v2678_v10, %v2678_v10 }
  0x6c   : > { %806 = vperm.xlu2 %2317, %v801_v48  }
  0x6e   : > { %799 = vperm.xlu1 %2319, %v794_v50   ;;  %778 = vperm.xlu0 %2318, %v773_v51  }
  0x74   : > { %624 = vperm.xlu2 %2317, %v619_v55   ;;  %v2735_v55 = vmul.f32 %v2683_v12, %v2683_v12 }
  0x76   : > { %841 = vperm.xlu1 %2319, %v836_v56   ;;  %827 = vperm.xlu0 %2318, %v822_v57  }
  0x7c   : > { %610 = vperm.xlu2 %2317, %v605_v58  }
  0x7e   : > { %848 = vperm.xlu1 %2319, %v843_v59   ;;  %652 = vperm.xlu0 %2318, %v647_v60  }
  0x84   : > { %659 = vperm.xlu2 %2317, %v654_v61  }
  0x86   : > { %638 = vperm.xlu1 %2319, %v633_v62   ;;  %631 = vperm.xlu0 %2318, %v626_v63  }
  0x8c   : > { %855 = vperm.xlu2 %2317, %v850_v0  }
  0x8e   : > { %834 = vperm.xlu1 %2319, %v829_v1   ;;  %673 = vperm.xlu0 %2318, %v668_v2  }
  0x94   : > { %687 = vperm.xlu2 %2317, %v682_v3  }
  0x96   : > { %666 = vperm.xlu1 %2319, %v661_v4   ;;  %680 = vperm.xlu0 %2318, %v675_v9  }
  0xb6   : > { %v618_v28 = vpop.permute.xlu2 %617 }
  0xb7   : > { %v690_v48 = vmul.f32 %v618_v28, %v2720_v43 }
  0xb9   : > { %v707_v58 = vrot.slane %v690_v48, 4 }
  0xbb   : > { %v708_v1 = vadd.f32 %v707_v58, %v690_v48 }
  0xbd   : > { %599 = vadd.xlane.f32.xlu2 %v598_v17  ;;  %v709_v19 = vrot.slane %v708_v1, 2 }
  0xbe   : > { %v646_v34 = vpop.permute.xlu2 %645 }
  0xbf   : > { %v694_v49 = vmul.f32 %v646_v34, %v2720_v43  ;;  %v710_v27 = vadd.f32 %v709_v19, %v708_v1  ;;  %v604_v34 = vmul.f32 %v2704_v16, %v2704_v16 }
  0xc0   : > { %596 = vadd.xlane.f32.xlu1 %v595_v21  ;;  %593 = vadd.xlane.f32.xlu0 %v592_v6 }
  0xc1   : > { %v731_v59 = vrot.slane %v694_v49, 4 }
  0xc3   : > { %v732_v2 = vadd.f32 %v731_v59, %v694_v49 }
  0xc5   : > { %581 = vadd.xlane.f32.xlu2 %v580_v24  ;;  %v733_v21 = vrot.slane %v732_v2, 2 }
  0xc6   : > { %v807_v37 = vpop.permute.xlu2 %806 }
  0xc7   : > { %v861_v44 = vmul.f32 %v807_v37, %v2683_v12  ;;  %v734_v28 = vadd.f32 %v733_v21, %v732_v2 }
  0xc8   : > { %587 = vadd.xlane.f32.xlu1 %v586_v25  ;;  %584 = vadd.xlane.f32.xlu0 %v583_v26 }
  0xc9   : > { %v893_v50 = vrot.slane %v861_v44, 4 }
  0xcb   : > { %v894_v60 = vadd.f32 %v893_v50, %v861_v44  ;;  %v711_v44 = vrot.slane %v710_v27, 1 }
  0xcd   : > { %v895_v3 = vrot.slane %v894_v60, 2 }
  0xce   : > { %v625_v40 = vpop.permute.xlu2 %624 }
  0xcf   : > { %v691_v57 = vmul.f32 %v625_v40, %v2727_v47  ;;  %v896_v6 = vadd.f32 %v895_v3, %v894_v60 }
  0xd0   : > { %v786_v29 = vpop.permute.xlu0 %785  ;;  %v793_v30 = vpop.permute.xlu1 %792 }
  0xd1   : > { %v859_v45 = vmul.f32 %v793_v30, %v2688_v13  ;;  %v858_v46 = vmul.f32 %v786_v29, %v2678_v10  ;;  %v713_v0 = vrot.slane %v691_v57, 4  ;;  %v897_v29 = vrot.slane %v896_v6, 1 }
  0xd3   : > { %v881_v52 = vrot.slane %v859_v45, 4  ;;  %v875_v54 = vrot.slane %v858_v46, 4  ;;  %v714_v15 = vadd.f32 %v713_v0, %v691_v57 }
  0xd5   : > { %v882_v61 = vadd.f32 %v881_v52, %v859_v45  ;;  %v876_v62 = vadd.f32 %v875_v54, %v858_v46  ;;  %v715_v25 = vrot.slane %v714_v15, 2  ;;  %v735_v45 = vrot.slane %v734_v28, 1 }
  0xd6   : > { %v611_v51 = vpop.permute.xlu2 %610  ;;  %v898_v46 = vadd.f32 %v897_v29, %v896_v6 }
  0xd7   : > { %v689_v63 = vmul.f32 %v611_v51, %v2735_v55  ;;  %v883_v4 = vrot.slane %v882_v61, 2  ;;  %v877_v9 = vrot.slane %v876_v62, 2 }
  0xd8   : > { %v814_v35 = vpop.permute.xlu0 %813  ;;  %v821_v36 = vpop.permute.xlu1 %820  ;;  %v2751_v0 = vmul.f32 2.0, %v898_v46 }
  0xd9   : > { %v701_v11 = vrot.slane %v689_v63, 4  ;;  %v863_v17 = vmul.f32 %v821_v36, %v2688_v13  ;;  %v884_v7 = vadd.f32 %v883_v4, %v882_v61  ;;  %v878_v20 = vadd.f32 %v877_v9, %v876_v62 }
  0xda   : > { %v862_v24 = vmul.f32 %v814_v35, %v2678_v10  ;;  %v716_v36 = vadd.f32 %v715_v25, %v714_v15 }
  0xdb   : > { %v702_v23 = vadd.f32 %v701_v11, %v689_v63  ;;  %v905_v26 = vrot.slane %v863_v17, 4  ;;  %v885_v30 = vrot.slane %v884_v7, 1  ;;  %v2749_v63 = vadd.f32 %v735_v45, %v734_v28 }
  0xdc   : > { %1058 = vperm.xlu0 %2318, %v1053_v31   ;;  %v879_v31 = vrot.slane %v878_v20, 1  ;;  %v717_v59 = vrot.slane %v716_v36, 1 }
  0xdd   : > { %1051 = vperm.xlu2 %2317, %v1046_v32   ;;  %v703_v32 = vrot.slane %v702_v23, 2  ;;  %v906_v37 = vadd.f32 %v905_v26, %v863_v17  ;;  %v886_v48 = vadd.f32 %v885_v30, %v884_v7 }
  0xde   : > { %v660_v14 = vpop.permute.xlu2 %659  ;;  %v880_v51 = vadd.f32 %v879_v31, %v878_v20  ;;  %v2762_v15 = vadd.f32 %v717_v59, %v716_v36 }
  0xdf   : > { %v704_v52 = vadd.f32 %v703_v32, %v702_v23  ;;  %v696_v57 = vmul.f32 %v660_v14, %v604_v34  ;;  %v907_v60 = vrot.slane %v906_v37, 2  ;;  %v2755_v1 = vmul.f32 2.0, %v886_v48 }
  0xe0   : > { %v779_v38 = vpop.permute.xlu0 %778  ;;  %v2714_v39 = vpop.permute.xlu1 %799  ;;  %v2760_v9 = vmul.f32 2.0, %v880_v51 }
  0xe1   : > { %1065 = vperm.xlu1 %2319, %v1060_v33   ;;  %v899_v33 = vrot.slane %v862_v24, 4  ;;  %v857_v40 = vmul.f32 %v779_v38, %v2683_v12  ;;  %v860_v61 = vmul.f32 %v2714_v39, %v2704_v16  ;;  %v2747_v38 = vadd.f32 %v711_v44, %v710_v27 }
  0xe2   : > { %v705_v39 = vrot.slane %v704_v52, 1  ;;  %v743_v14 = vrot.slane %v696_v57, 4  ;;  %v908_v17 = vadd.f32 %v907_v60, %v906_v37 }
  0xe3   : > { %v900_v54 = vadd.f32 %v899_v33, %v862_v24  ;;  %v869_v62 = vrot.slane %v857_v40, 4  ;;  %v887_v19 = vrot.slane %v860_v61, 4  ;;  %v954_v25 = vsub.f32 %v2747_v38, %v2760_v9 }
  0xe4   : > { %v2770_v26 = vadd.f32 %v705_v39, %v704_v52  ;;  %v744_v28 = vadd.f32 %v743_v14, %v696_v57  ;;  %v909_v30 = vrot.slane %v908_v17, 1 }
  0xe5   : > { %v901_v11 = vrot.slane %v900_v54, 2  ;;  %v870_v21 = vadd.f32 %v869_v62, %v857_v40  ;;  %v888_v31 = vadd.f32 %v887_v19, %v860_v61 }
  0xe6   : > { %v856_v35 = vpop.permute.xlu2 %855  ;;  %v745_v51 = vrot.slane %v744_v28, 2 }
  0xe7   : > { %v902_v27 = vadd.f32 %v901_v11, %v900_v54  ;;  %v871_v32 = vrot.slane %v870_v21, 2  ;;  %v889_v57 = vrot.slane %v888_v31, 2 }
  0xe8   : > { %v828_v41 = vpop.permute.xlu0 %827  ;;  %v2716_v42 = vpop.permute.xlu1 %841 }
  0xe9   : > { %v864_v49 = vmul.f32 %v828_v41, %v2704_v16  ;;  %v866_v41 = vmul.f32 %v2716_v42, %v2678_v10  ;;  %v868_v42 = vmul.f32 %v856_v35, %v2704_v16  ;;  %v872_v59 = vadd.f32 %v871_v32, %v870_v21 }
  0xeb   : > { %v911_v2 = vrot.slane %v864_v49, 4  ;;  %v923_v6 = vrot.slane %v866_v41, 4  ;;  %v935_v33 = vrot.slane %v868_v42, 4 }
  0xed   : > { %v924_v36 = vadd.f32 %v923_v6, %v866_v41  ;;  %v873_v6 = vrot.slane %v872_v59, 1 }
  0xee   : > { %v688_v29 = vpop.permute.xlu2 %687 }
  0xef   : > { %v700_v46 = vmul.f32 %v688_v29, %v604_v34  ;;  %v925_v61 = vrot.slane %v924_v36, 2 }
  0xf0   : > { %v2731_v53 = vpop.permute.xlu0 %652  ;;  %v849_v56 = vpop.permute.xlu1 %848 }
  0xf1   : > { %v867_v3 = vmul.f32 %v849_v56, %v2688_v13  ;;  %v695_v4 = vmul.f32 %v2731_v53, %v2727_v47  ;;  %v955_v56 = vsub.f32 %v2762_v15, %v2755_v1  ;;  %v912_v53 = vadd.f32 %v911_v2, %v864_v49 }
  0xf2   : > { %v903_v49 = vrot.slane %v902_v27, 1  ;;  %v767_v39 = vrot.slane %v700_v46, 4 }
  0xf3   : > { %v929_v23 = vrot.slane %v867_v3, 4  ;;  %v737_v24 = vrot.slane %v695_v4, 4  ;;  %v913_v45 = vrot.slane %v912_v53, 2 }
  0xf4   : > { %v904_v11 = vadd.f32 %v903_v49, %v902_v27  ;;  %v768_v32 = vadd.f32 %v767_v39, %v700_v46 }
  0xf5   : > { %v930_v35 = vadd.f32 %v929_v23, %v867_v3  ;;  %v738_v48 = vadd.f32 %v737_v24, %v695_v4  ;;  %v914_v2 = vadd.f32 %v913_v45, %v912_v53  ;;  %v910_v4 = vadd.f32 %v909_v30, %v908_v17 }
  0xf6   : > { %v926_v24 = vadd.f32 %v925_v61, %v924_v36  ;;  %v874_v30 = vadd.f32 %v873_v6, %v872_v59  ;;  %v769_v49 = vrot.slane %v768_v32, 2  ;;  %v946_v46 = vmul.f32 2.0, %v904_v11 }
  0xf7   : > { %v739_v3 = vrot.slane %v738_v48, 2  ;;  %v2776_v53 = vmul.f32 2.0, %v910_v4 }
  0xf8   : > { %v632_v18 = vpop.permute.xlu0 %631  ;;  %v639_v22 = vpop.permute.xlu1 %638 }
  0xf9   : > { %v693_v7 = vmul.f32 %v639_v22, %v2735_v55  ;;  %v692_v20 = vmul.f32 %v632_v18, %v604_v34  ;;  %v931_v34 = vrot.slane %v930_v35, 2 }
  0xfb   : > { %v725_v37 = vrot.slane %v693_v7, 4  ;;  %v719_v40 = vrot.slane %v692_v20, 4 }
  0xfd   : > { %v726_v62 = vadd.f32 %v725_v37, %v693_v7  ;;  %v720_v41 = vadd.f32 %v719_v40, %v692_v20  ;;  %v932_v7 = vadd.f32 %v931_v34, %v930_v35  ;;  %v740_v20 = vadd.f32 %v739_v3, %v738_v48 }
  0xfe   : > { %v770_v3 = vadd.f32 %v769_v49, %v768_v32 }
  0xff   : > { %v727_v29 = vrot.slane %v726_v62, 2 }
 0x100   : > { %v674_v50 = vpop.permute.xlu0 %673  ;;  %v835_v58 = vpop.permute.xlu1 %834 }
 0x101   : > { %v698_v22 = vmul.f32 %v674_v50, %v2720_v43  ;;  %v865_v52 = vmul.f32 %v835_v58, %v2683_v12  ;;  %v936_v50 = vadd.f32 %v935_v33, %v868_v42  ;;  %v890_v58 = vadd.f32 %v889_v57, %v888_v31 }
 0x102   : > { %v915_v42 = vrot.slane %v914_v2, 1  ;;  %v933_v57 = vrot.slane %v932_v7, 1 }
 0x103   : > { %v755_v60 = vrot.slane %v698_v22, 4  ;;  %v917_v14 = vrot.slane %v865_v52, 4  ;;  %v937_v21 = vrot.slane %v936_v50, 2  ;;  %v891_v27 = vrot.slane %v890_v58, 1 }
 0x104   : > { %v916_v36 = vadd.f32 %v915_v42, %v914_v2  ;;  %v958_v2 = vsub.f32 %v2749_v63, %v946_v46  ;;  %v771_v42 = vrot.slane %v770_v3, 1 }
 0x105   : > { %v918_v33 = vadd.f32 %v917_v14, %v865_v52  ;;  %v938_v40 = vadd.f32 %v937_v21, %v936_v50  ;;  %v892_v39 = vadd.f32 %v891_v27, %v890_v58 }
 0x106   : > { %v948_v50 = vmul.f32 2.0, %v916_v36 }
 0x107   : > { %v919_v48 = vrot.slane %v918_v33, 2 }
 0x108   : > { %v681_v18 = vpop.permute.xlu0 %680  ;;  %v667_v44 = vpop.permute.xlu1 %666 }
 0x109   : > { %v699_v54 = vmul.f32 %v681_v18, %v2727_v47  ;;  %v697_v43 = vmul.f32 %v667_v44, %v2735_v55  ;;  %v756_v47 = vadd.f32 %v755_v60, %v698_v22  ;;  %v721_v55 = vrot.slane %v720_v41, 2 }
 0x10a   : > { %v746_v18 = vadd.f32 %v745_v51, %v744_v28  ;;  %v927_v22 = vrot.slane %v926_v24, 1  ;;  %v728_v44 = vadd.f32 %v727_v29, %v726_v62  ;;  %v741_v60 = vrot.slane %v740_v20, 1 }
 0x10b   : > { %v761_v19 = vrot.slane %v699_v54, 4  ;;  %v749_v23 = vrot.slane %v697_v43, 4  ;;  %v757_v37 = vrot.slane %v756_v47, 2  ;;  %v722_v45 = vadd.f32 %v721_v55, %v720_v41 }
 0x10c   : > { %v747_v35 = vrot.slane %v746_v18, 1  ;;  %v941_v28 = vmul.f32 2.0, %v874_v30  ;;  %v928_v59 = vadd.f32 %v927_v22, %v926_v24  ;;  %v729_v34 = vrot.slane %v728_v44, 1 }
 0x10d   : > { %v762_v17 = vadd.f32 %v761_v19, %v699_v54  ;;  %v750_v31 = vadd.f32 %v749_v23, %v697_v43  ;;  %v758_v51 = vadd.f32 %v757_v37, %v756_v47  ;;  %v939_v54 = vrot.slane %v938_v40, 1 }
 0x10e   : > { %v723_v43 = vrot.slane %v722_v45, 1  ;;  %v934_v62 = vadd.f32 %v933_v57, %v932_v7  ;;  %v742_v41 = vadd.f32 %v741_v60, %v740_v20  ;;  %v748_v4 = vadd.f32 %v747_v35, %v746_v18 }
 0x10f   : > { %v763_v61 = vrot.slane %v762_v17, 2  ;;  %v751_v52 = vrot.slane %v750_v31, 2  ;;  %v920_v14 = vadd.f32 %v919_v48, %v918_v33  ;;  %v944_v19 = vmul.f32 2.0, %v892_v39 }
 0x110   : > { %v759_v6 = vrot.slane %v758_v51, 1  ;;  %v953_v58 = vsub.f32 %v2770_v26, %v941_v28  ;;  %v940_v47 = vadd.f32 %v939_v54, %v938_v40  ;;  %v950_v21 = vmul.f32 2.0, %v928_v59 }
 0x111   : > { %v764_v11 = vadd.f32 %v763_v61, %v762_v17  ;;  %v752_v23 = vadd.f32 %v751_v52, %v750_v31  ;;  %v730_v29 = vadd.f32 %v729_v34, %v728_v44  ;;  %v724_v24 = vadd.f32 %v723_v43, %v722_v45 }
 0x112   : > { %v951_v32 = vmul.f32 2.0, %v934_v62  ;;  %v959_v7 = vsub.f32 %v742_v41, %v2776_v53  ;;  %v960_v18 = vsub.f32 %v748_v4, %v948_v50  ;;  %v921_v33 = vrot.slane %v920_v14, 1 }
 0x113   : > { %v765_v17 = vrot.slane %v764_v11, 1  ;;  %v760_v37 = vadd.f32 %v759_v6, %v758_v51  ;;  %v753_v31 = vrot.slane %v752_v23, 1  ;;  %v957_v44 = vsub.f32 %v730_v29, %v2751_v0 }
 0x114   : > { %v956_v36 = vsub.f32 %v724_v24, %v944_v19  ;;  %v922_v46 = vadd.f32 %v921_v33, %v920_v14  ;;  %v772_v50 = vadd.f32 %v771_v42, %v770_v3  ;;  %v952_v62 = vmul.f32 2.0, %v940_v47 }
 0x115   : > { %v766_v35 = vadd.f32 %v765_v17, %v764_v11  ;;  %v962_v39 = vsub.f32 %v760_v37, %v950_v21  ;;  %v754_v28 = vadd.f32 %v753_v31, %v752_v23 }
 0x116   : > { %v949_v1 = vmul.f32 2.0, %v922_v46  ;;  %v964_v29 = vsub.f32 %v772_v50, %v952_v62 }
 0x117   : > { %v963_v15 = vsub.f32 %v766_v35, %v951_v32 }
 0x118   : > { %v961_v41 = vsub.f32 %v754_v28, %v949_v1 }
 0x130   : > { %v2780_v55 = vpop.xlane.xlu2 %599 }
 0x131   : > { %v974_v22 = vrot.slane %v2780_v55, 1  ;;  %v975_v52 = vrot.slane %v2780_v55, 2  ;;  %v976_v14 = vrot.slane %v2780_v55, 3 }
 0x133   : > { %v597_v20 = vpop.xlane.xlu1 %596  ;;  %v594_v63 = vpop.xlane.xlu0 %593  ;;  %v998_v34 = vadd.f32 %v974_v22, %v962_v39  ;;  %v1000_v32 = vadd.f32 %v976_v14, %v964_v29 }
 0x134   : > { %v971_v27 = vrot.slane %v597_v20, 1  ;;  %v972_v30 = vrot.slane %v597_v20, 2  ;;  %v968_v26 = vrot.slane %v594_v63, 1  ;;  %v969_v40 = vrot.slane %v594_v63, 2 }
 0x135   : > { %v970_v57 = vrot.slane %v594_v63, 3  ;;  %v973_v48 = vrot.slane %v597_v20, 3  ;;  %v989_v51 = vadd.f32 %v953_v58, %v594_v63  ;;  %v993_v54 = vadd.f32 %v957_v44, %v597_v20 }
 0x136   : > { %v994_v45 = vadd.f32 %v971_v27, %v958_v2  ;;  %v995_v49 = vadd.f32 %v972_v30, %v959_v7  ;;  %v990_v53 = vadd.f32 %v968_v26, %v954_v25  ;;  %v991_v60 = vadd.f32 %v969_v40, %v955_v56 }
 0x137   : > { %v992_v38 = vadd.f32 %v970_v57, %v956_v36  ;;  %v996_v56 = vadd.f32 %v973_v48, %v960_v18  ;;  %v999_v2 = vadd.f32 %v975_v52, %v963_v15  ;;  %v1028_v11 = vrot.slane %v998_v34, 7 }
 0x138   : > { %v1022_v61 = vrot.slane %v994_v45, 7  ;;  %v1013_v0 = vrot.slane %v990_v53, 7  ;;  %v1016_v59 = vrot.slane %v991_v60, 6  ;;  %v1024_v25 = vrot.slane %v995_v49, 6  ;;  %v582_v42 = vpop.xlane.xlu2 %581 }
 0x139   : > { %v1019_v19 = vrot.slane %v992_v38, 5  ;;  %v1026_v23 = vrot.slane %v996_v56, 5  ;;  %v997_v58 = vadd.f32 %v961_v41, %v2780_v55  ;;  %v1030_v3 = vrot.slane %v999_v2, 6 }
 0x13a   : > { %v1015_v9 = vsel %vm1014_vm0, %v1013_v0, %v989_v51  ;;  %v1023_v43 = vsel %vm1014_vm0, %v1022_v61, %v993_v54  ;;  %v1032_v17 = vrot.slane %v1000_v32, 5  ;;  %v2808_v51 = vand.u32 127, %v606_v5 }
 0x13b   : > { %v1018_v4 = vsel %vm1017_vm1, %v1016_v59, %v1015_v9  ;;  %v1025_v6 = vsel %vm1017_vm1, %v1024_v25, %v1023_v43  ;;  %v585_v24 = vpop.xlane.xlu0 %584  ;;  %v1029_v7 = vsel %vm1014_vm0, %v1028_v11, %v997_v58  ;;  %v588_v33 = vpop.xlane.xlu1 %587  ;;  %v1096_v0 = vstv %s2253_s27 }
 0x13c   : > { %v1021_v21 = vsel %vm1020_vm2, %v1019_v19, %v1018_v4  ;;  %v1027_v47 = vsel %vm1020_vm2, %v1026_v23, %v1025_v6  ;;  %v1031_v18 = vsel %vm1017_vm1, %v1030_v3, %v1029_v7  ;;  %v1097_v38 = vadd.s32 %v1096_v0, %v2808_v51 }
 0x13d   : > { %v1037_v20 = vadd.f32 %v1021_v21, %v582_v42  ;;  %v1038_v63 = vadd.f32 %v1027_v47, %v585_v24  ;;  %v1033_v55 = vsel %vm1020_vm2, %v1032_v17, %v1031_v18 }
 0x13e   : > { %v1039_v37 = vadd.f32 %v1033_v55, %v588_v33  ;;  %vm1098_vm8 = vcmp.lt.s32.totalorder %v1097_v38, 300 }
 0x13f   : > { %v1040_v27 = vadd.f32 9.157839, %v1037_v20  ;;  %v1041_v30 = vadd.f32 9.157839, %v1038_v63 }
 0x140   : > { %v1042_v40 = vadd.f32 9.157839, %v1039_v37  ;;  %v1052_v44 = vpop.permute.xlu2 %1051 }
 0x141   : > { %v1043_v31 = vmul.f32 -0.5, %v1040_v27  ;;  %v1044_v26 = vmul.f32 -0.5, %v1041_v30 }
 0x142   : > { %v1045_v49 = vmul.f32 -0.5, %v1042_v40 }
 0x143   : > { %v1067_v36 = vmul.f32 %v1052_v44, %v1043_v31 }
 0x145   : > { %v1071_v60 = vsel %vm1070_vm3, %v1067_v36, 0.0 }
 0x14e   : > { %v1059_v22 = vpop.permute.xlu0 %1058 }
 0x14f   : > { %v1068_v45 = vmul.f32 %v1059_v22, %v1044_v26 }
 0x151   : > { %v1072_v57 = vsel %vm1070_vm3, %v1068_v45, 0.0 }
 0x152   : > { %v1073_v35 = vadd.f32 %v1072_v57, %v1071_v60 }
 0x153   : > { %v1066_v53 = vpop.permute.xlu1 %1065 }
 0x154   : > { %v1069_v46 = vmul.f32 %v1066_v53, %v1045_v49 }
 0x156   : > { %v1074_v48 = vsel %vm1070_vm3, %v1069_v46, 0.0 }
 0x157   : > { %v1075_v61 = vadd.f32 %v1074_v48, %v1073_v35 }
 0x159   : > { %2332 = vrcp.f32 %v1075_v61  ;;  %v1087_v54 = vand.u32 2147483648, %v1075_v61  ;;  %v1085_v34 = vand.u32 2147483647, %v1075_v61  ;;  %vm1081_vm5 = vweird.f32 %v1075_v61 }
 0x15b   : > { %v1088_v25 = vor.u32 1.1754944e-38, %v1087_v54  ;;  %vm1086_vm7 = vcmp.eq.f32.partialorder %v1085_v34, 8.507059e+37 }
 0x15f   : > { %v2333_v39 = vpop.eup %2332 }
 0x160   : > { %v1077_v28 = vmul.f32 %v2333_v39, %v1075_v61  ;;  %vm1082_vm4 = vweird.f32 %v2333_v39 }
 0x161   : > { %vm1083_vm6 = vmor %vm1081_vm5, %vm1082_vm4 }
 0x162   : > { %v1078_v52 = vsub.f32 1.0, %v1077_v28 }
 0x164   : > { %v1079_v59 = vmul.f32 %v2333_v39, %v1078_v52 }
 0x166   : > { %v1080_v9 = vadd.f32 %v2333_v39, %v1079_v59 }
 0x168   : > { %v1084_v1 = vsel %vm1083_vm6, %v2333_v39, %v1080_v9  ;;  %v1107_v9 = vld [vmem:[#allocation2] sm:$0x7] }
 0x169   : > { %v1089_v15 = vsel %vm1086_vm7, %v1088_v25, %v1084_v1 }
 0x16a   : > { %v1090_v5 = vmul.f32 %v1089_v15, %v1067_v36  ;;  %v1091_v56 = vmul.f32 %v1089_v15, %v1068_v45  ;;  %v1092_v43 = vmul.f32 %v1089_v15, %v1069_v46 }
 0x16c   : > { %v1101_v50 = vsel %vm1098_vm8, %v1090_v5, 0.0  ;;  %v1102_v62 = vsel %vm1098_vm8, %v1091_v56, 0.0  ;;  %v2811_v41 = vsel %vm1098_vm8, %v1092_v43, 0.0  ;;  %v1415_v5 = vld [vmem:[#allocation4 + $0x8] sm:$0xff]  ;;  %v1414_v56 = vld [vmem:[#allocation4] sm:$0xff] }
 0x16d   : > { %1104 = vst [vmem:[%s2607_s24] sm:$0xf] %v1101_v50  ;;  %v1114_v2 = vsel %vm1070_vm3, %v2811_v41, 0.0  ;;  %v1111_v4 = vsel %vm1070_vm3, %v1102_v62, 0.0  ;;  %v1108_v14 = vsel %vm1070_vm3, %v1101_v50, 0.0  ;;  %v1132_v11 = vrot.slane %v1102_v62, 7 }
 0x16e   : > { %1105 = vst [vmem:[%s2607_s24 + $0x4] sm:$0xf] %v1102_v62  ;;  %1115 = vadd.xlane.f32.xlu1 %v1114_v2  ;;  %1112 = vadd.xlane.f32.xlu2 %v1111_v4  ;;  %v1134_v19 = vrot.slane %v2811_v41, 6  ;;  %v1189_v6 = vrot.slane %v1101_v50, 1  ;;  %v1191_v23 = vrot.slane %v2811_v41, 7  ;;  %v1214_v58 = vperm.slane %v1101_v50, 1 }
 0x16f   : > { %1106 = vst [vmem:[%s2607_s24 + $0x8] sm:$0xf] %v2811_v41  ;;  %1109 = vadd.xlane.f32.xlu0 %v1108_v14  ;;  %v1133_v21 = vsel %vm1014_vm0, %v1132_v11, %v1101_v50  ;;  %v1303_v29 = vrot.slane %v1101_v50, 3  ;;  %v1304_v3 = vrot.slane %v1102_v62, 2  ;;  %v1306_v24 = vrot.slane %v2811_v41, 1  ;;  %v1417_v2 = vld [vmem:[#allocation4 + $0x18] sm:$0xff] }
 0x170   : > { %v1135_v47 = vsel %vm1017_vm1, %v1134_v19, %v1133_v21  ;;  %v1190_v42 = vsel %vm1014_vm0, %v1102_v62, %v1189_v6  ;;  %v1217_v32 = vmul.f32 %v1214_v58, %v2678_v10  ;;  %v1157_v18 = vperm.slane %v1101_v50, 0  ;;  %v1419_v19 = vld [vmem:[#allocation4 + $0x28] sm:$0xff]  ;;  %v1416_v6 = vld [vmem:[#allocation4 + $0x10] sm:$0xff] }
 0x171   : > { %1153 = vmatmul.f32.vlgmr.msra.gmra.mxu1 %v1135_v47  ;;  %v1192_v7 = vsel %vm1017_vm1, %v1191_v23, %v1190_v42  ;;  %v1305_v20 = vsel %vm1014_vm0, %v1304_v3, %v1303_v29  ;;  %v1215_v33 = vperm.slane %v1102_v62, 1  ;;  %v1271_v17 = vperm.slane %v1101_v50, 2  ;;  %v1418_v23 = vld [vmem:[#allocation4 + $0x20] sm:$0xff]  ;;  %v1421_v47 = vld [vmem:[#allocation4 + $0x38] sm:$0xff] }
 0x172   : > { %1210 = vmatmul.f32.vlgmr.msra.gmra.mxu2 %v1192_v7  ;;  %1236 = vmatmul.f32.vlgmr.msra.gmra.mxu3 %v1217_v32  ;;  %v1307_v63 = vsel %vm1017_vm1, %v1306_v24, %v1305_v20  ;;  %v1329_v27 = vperm.slane %v1101_v50, 3  ;;  %v1160_v55 = vmul.f32 %v1157_v18, %v2683_v12  ;;  %v1158_v26 = vperm.slane %v1102_v62, 0  ;;  %v1423_v20 = vld [vmem:[#allocation4 + $0x48] sm:$0xff]  ;;  %v1422_v18 = vld [vmem:[#allocation4 + $0x40] sm:$0xff] }
 0x173   : > { %1325 = vmatmul.f32.vlgmr.msra.gmra.mxu0 %v1307_v63  ;;  %v1218_v30 = vmul.f32 %v1215_v33, %v2678_v10  ;;  %v1274_v37 = vmul.f32 %v1271_v17, %v2688_v13  ;;  %v1216_v40 = vperm.slane %v2811_v41, 1  ;;  %v1272_v22 = vperm.slane %v1102_v62, 2  ;;  %v1420_v63 = vld [vmem:[#allocation4 + $0x30] sm:$0xff] }
 0x174   : > { %v1332_v31 = vmul.f32 %v1329_v27, %v2704_v16  ;;  %v1330_v44 = vperm.slane %v1102_v62, 3  ;;  %v1161_v45 = vmul.f32 %v1158_v26, %v2683_v12  ;;  %v1246_v53 = vrot.slane %v1101_v50, 2 }
 0x175   : > { %v1219_v36 = vmul.f32 %v1216_v40, %v2678_v10  ;;  %v1275_v49 = vmul.f32 %v1272_v22, %v2688_v13  ;;  %v1247_v60 = vrot.slane %v1102_v62, 1  ;;  %v1159_v46 = vperm.slane %v2811_v41, 0 }
 0x176   : > { %v1333_v57 = vmul.f32 %v1330_v44, %v2704_v16  ;;  %v1273_v35 = vperm.slane %v2811_v41, 2  ;;  %v1331_v48 = vperm.slane %v2811_v41, 3 }
 0x177   : > { %v1248_v61 = vsel %vm1014_vm0, %v1247_v60, %v1246_v53  ;;  %v1162_v10 = vmul.f32 %v1159_v46, %v2683_v12 }
 0x178   : > { %v1276_v39 = vmul.f32 %v1273_v35, %v2688_v13  ;;  %v1249_v28 = vsel %vm1017_vm1, %v2811_v41, %v1248_v61  ;;  %v1334_v0 = vmul.f32 %v1331_v48, %v2704_v16 }
 0x179   : > { %1179 = vmatmul.f32.vlgmr.msrb.gmra.mxu1 %v1160_v55 }
 0x17a   : > { %1239 = vmatmul.f32.gmra.mxu3 %v1218_v30  ;;  %1293 = vmatmul.f32.vlgmr.msrb.gmra.mxu2 %v1274_v37  ;;  %v1425_v37 = vld [vmem:[#allocation4 + $0x58] sm:$0xff] }
 0x17b   : > { %1351 = vmatmul.f32.vlgmr.msrb.gmra.mxu0 %v1332_v31 }
 0x181   : > { %1182 = vmatmul.f32.gmra.mxu1 %v1161_v45 }
 0x182   : > { %1242 = vmatmul.f32.gmra.mxu3 %v1219_v36  ;;  %1296 = vmatmul.f32.gmra.mxu2 %v1275_v49  ;;  %v1424_v36 = vld [vmem:[#allocation4 + $0x50] sm:$0xff] }
 0x183   : > { %1354 = vmatmul.f32.gmra.mxu0 %v1333_v57 }
 0x189   : > { %1185 = vmatmul.f32.gmra.mxu1 %v1162_v10 }
 0x18a   : > { %1267 = vmatmul.f32.vlgmr.msrb.gmra.mxu3 %v1249_v28  ;;  %1299 = vmatmul.f32.gmra.mxu2 %v1276_v39 }
 0x18b   : > { %1357 = vmatmul.f32.gmra.mxu0 %v1334_v0 }
 0x1e1   : > { %v1116_v52 = vpop.xlane.xlu1 %1115  ;;  %v1113_v54 = vpop.xlane.xlu2 %1112 }
 0x1e2   : > { %v1122_v59 = vperm.slane %v1116_v52, %v2808_v51  ;;  %v1121_v34 = vperm.slane %v1113_v54, %v2808_v51  ;;  %v1110_v38 = vpop.xlane.xlu0 %1109 }
 0x1e3   : > { %v1120_v12 = vperm.slane %v1110_v38, %v2808_v51 }
 0x1e5   : > { %v1123_v13 = vsel %vm1014_vm0, %v1121_v34, %v1120_v12 }
 0x1e6   : > { %v1124_v25 = vsel %vm1017_vm1, %v1122_v59, %v1123_v13  ;;  %v1361_v59 = vld [vmem:[#allocation3] sm:$0xf] }
 0x1e7   : > { %v1126_v1 = vadd.f32 %v1124_v25, %v1107_v9 }
 0x1e9   : > { %1128 = vst.msk [vmem:[#allocation2] sm:$0x7] %vm1127_vm9, %v1126_v1 }
 0x1ee   : > { %v2855_v16 = vpop.f32.mrf.mxu1 }
 0x1ef   : > { %v1365_v28 = vrot.slane %v2855_v16, 1  ;;  %v1366_v0 = vrot.slane %v2855_v16, 2 }
 0x1f0   : > { %v2857_v15 = vpop.f32.mrf.mxu0 }
 0x1f1   : > { %v1376_v49 = vrot.slane %v2857_v15, 1  ;;  %v1377_v57 = vrot.slane %v2857_v15, 2  ;;  %v1390_v52 = vperm.slane %v2857_v15, 0 }
 0x1f3   : > { %v1391_v34 = vperm.slane %v1376_v49, 0  ;;  %v1392_v13 = vperm.slane %v1377_v57, 0 }
 0x1f5   : > { %v2859_v43 = vpop.f32.mrf.mxu2  ;;  %v1237_v50 = vpop.f32.mrf.mxu3 }
 0x1f6   : > { %v1427_v62 = vadd.f32 %v1415_v5, %v1237_v50  ;;  %v1180_v41 = vpop.f32.mrf.mxu1  ;;  %v1370_v40 = vrot.slane %v2859_v43, 1  ;;  %v1371_v22 = vrot.slane %v2859_v43, 2  ;;  %v1378_v45 = vperm.slane %v2859_v43, 0  ;;  %v1362_v5 = vld [vmem:[#allocation3 + $0x4] sm:$0xf] }
 0x1f7   : > { %v1426_v4 = vadd.f32 %v1414_v56, %v1180_v41  ;;  %v1363_v56 = vld [vmem:[#allocation3 + $0x8] sm:$0xf] }
 0x1f8   : > { %1440 = vst.msk [vmem:[#allocation4 + $0x8] sm:$0xff] %vm1438_vm10, %v1427_v62  ;;  %v1352_v14 = vpop.f32.mrf.mxu0  ;;  %v1379_v53 = vperm.slane %v1370_v40, 0  ;;  %v1380_v60 = vperm.slane %v1371_v22, 0  ;;  %v1397_v54 = vsel %vm1396_vm11, %v2855_v16, %v1378_v45 }
 0x1f9   : > { %1439 = vst.msk [vmem:[#allocation4] sm:$0xff] %vm1438_vm10, %v1426_v4  ;;  %v1429_v11 = vadd.f32 %v1417_v2, %v1352_v14 }
 0x1fa   : > { %v1398_v25 = vsel %vm1396_vm11, %v1365_v28, %v1379_v53  ;;  %v1399_v1 = vsel %vm1396_vm11, %v1366_v0, %v1380_v60 }
 0x1fb   : > { %1442 = vst.msk [vmem:[#allocation4 + $0x18] sm:$0xff] %vm1438_vm10, %v1429_v11 }
 0x1fd   : > { %v1240_v58 = vpop.f32.mrf.mxu3  ;;  %v1294_v21 = vpop.f32.mrf.mxu2 }
 0x1fe   : > { %v1431_v29 = vadd.f32 %v1419_v19, %v1240_v58  ;;  %v1428_v3 = vadd.f32 %v1416_v6, %v1294_v21  ;;  %v1183_v24 = vpop.f32.mrf.mxu1 }
 0x1ff   : > { %v1430_v42 = vadd.f32 %v1418_v23, %v1183_v24 }
 0x200   : > { %1444 = vst.msk [vmem:[#allocation4 + $0x28] sm:$0xff] %vm1438_vm10, %v1431_v29  ;;  %v1355_v32 = vpop.f32.mrf.mxu0 }
 0x201   : > { %1441 = vst.msk [vmem:[#allocation4 + $0x10] sm:$0xff] %vm1438_vm10, %v1428_v3  ;;  %v1433_v7 = vadd.f32 %v1421_v47, %v1355_v32 }
 0x202   : > { %1443 = vst.msk [vmem:[#allocation4 + $0x20] sm:$0xff] %vm1438_vm10, %v1430_v42 }
 0x203   : > { %1446 = vst.msk [vmem:[#allocation4 + $0x38] sm:$0xff] %vm1438_vm10, %v1433_v7 }
 0x205   : > { %v1243_v33 = vpop.f32.mrf.mxu3  ;;  %v1297_v17 = vpop.f32.mrf.mxu2 }
 0x206   : > { %v1435_v27 = vadd.f32 %v1423_v20, %v1243_v33  ;;  %v1432_v55 = vadd.f32 %v1420_v63, %v1297_v17  ;;  %v1186_v30 = vpop.f32.mrf.mxu1 }
 0x207   : > { %v1434_v31 = vadd.f32 %v1422_v18, %v1186_v30 }
 0x208   : > { %1448 = vst.msk [vmem:[#allocation4 + $0x48] sm:$0xff] %vm1438_vm10, %v1435_v27  ;;  %v1358_v26 = vpop.f32.mrf.mxu0 }
 0x209   : > { %1445 = vst.msk [vmem:[#allocation4 + $0x30] sm:$0xff] %vm1438_vm10, %v1432_v55  ;;  %v1437_v44 = vadd.f32 %v1425_v37, %v1358_v26 }
 0x20a   : > { %1447 = vst.msk [vmem:[#allocation4 + $0x40] sm:$0xff] %vm1438_vm10, %v1434_v31 }
 0x20b   : > { %1450 = vst.msk [vmem:[#allocation4 + $0x58] sm:$0xff] %vm1438_vm10, %v1437_v44 }
 0x20d   : > { %v1268_v46 = vpop.f32.mrf.mxu3  ;;  %v1300_v35 = vpop.f32.mrf.mxu2 }
 0x20e   : > { %v1373_v48 = vrot.slane %v1268_v46, 1  ;;  %v1374_v61 = vrot.slane %v1268_v46, 2  ;;  %v1384_v10 = vperm.slane %v1268_v46, 0  ;;  %v1436_v39 = vadd.f32 %v1424_v36, %v1300_v35 }
 0x210   : > { %v1385_v38 = vperm.slane %v1373_v48, 0  ;;  %v1386_v12 = vperm.slane %v1374_v61, 0  ;;  %v1401_v9 = vsel %vm1400_vm12, %v1397_v54, %v1384_v10  ;;  %1449 = vst.msk [vmem:[#allocation4 + $0x50] sm:$0xff] %vm1438_vm10, %v1436_v39 }
 0x211   : > { %v1405_v15 = vsel %vm1404_vm13, %v1401_v9, %v1390_v52 }
 0x212   : > { %v1402_v43 = vsel %vm1400_vm12, %v1398_v25, %v1385_v38  ;;  %v1403_v16 = vsel %vm1400_vm12, %v1399_v1, %v1386_v12  ;;  %v1408_v50 = vadd.f32 %v1405_v15, %v1361_v59 }
 0x213   : > { %v1406_v62 = vsel %vm1404_vm13, %v1402_v43, %v1391_v34  ;;  %v1407_v41 = vsel %vm1404_vm13, %v1403_v16, %v1392_v13  ;;  %1454 = sbr.rel (%p2254_p11) target bundleno = 996 (0x3e4), region = 94 }
 0x214   : > { %v1409_v2 = vadd.f32 %v1406_v62, %v1362_v5  ;;  %v1410_v4 = vadd.f32 %v1407_v41, %v1363_v56  ;;  %1411 = vst.msk [vmem:[#allocation3] sm:$0xf] %vm579_vm15, %v1408_v50 }
 0x216   : > { %1412 = vst.msk [vmem:[#allocation3 + $0x4] sm:$0xf] %vm579_vm15, %v1409_v2 }
 0x217   : > { %1413 = vst.msk [vmem:[#allocation3 + $0x8] sm:$0xf] %vm579_vm15, %v1410_v4 }
 0x218   : > { %v1481_v14 = vld [vmem:[%s3172_s6 + $0x30] sm:$0xff]  ;;  %v1505_v11 = vld [vmem:[#allocation4 + $0x30] sm:$0xff]  ;;  %vm1713_vm14 = vcmp.eq.s32.totalorder %v2622_v8, %v2808_v51  ;;  %v1476_v19 = vld [vmem:[%s3172_s6 + $0x8] sm:$0xff]  ;;  %2335 = vset.pattern.permute.xlu1 %v2622_v8  ;;  %2334 = vset.pattern.permute.xlu0 %v2622_v8  ;;  %v2475_v58 = vmov 0.0   ;;  %vm2027_vm7 = vcmask 24576  }
 0x219   : > { %v1493_v6 = vmul.f32 0.9, %v1481_v14  ;;  %v1517_v23 = vmul.f32 0.1, %v1505_v11  ;;  %v2905_v21 = vsel %vm1713_vm14, 1.0, %v2475_v58  ;;  %v1500_v29 = vld [vmem:[#allocation4 + $0x8] sm:$0xff]  ;;  %2336 = vset.pattern.permute.xlu2 %v2622_v8 }
 0x21a   : > { %v1488_v3 = vmul.f32 0.9, %v1476_v19  ;;  %v1512_v24 = vmul.f32 0.1, %v1500_v29  ;;  %v1475_v47 = vld [vmem:[%s3172_s6] sm:$0xff]  ;;  %v1499_v42 = vld [vmem:[#allocation4] sm:$0xff] }
 0x21b   : > { %v1529_v32 = vadd.f32 %v1517_v23, %v1493_v6  ;;  %v1487_v7 = vmul.f32 0.9, %v1475_v47  ;;  %v1511_v20 = vmul.f32 0.1, %v1499_v42  ;;  %v1484_v63 = vld [vmem:[%s3172_s6 + $0x48] sm:$0xff]  ;;  %v1508_v18 = vld [vmem:[#allocation4 + $0x48] sm:$0xff] }
 0x21c   : > { %v1524_v33 = vadd.f32 %v1512_v24, %v1488_v3  ;;  %v1496_v17 = vmul.f32 0.9, %v1484_v63  ;;  %v1520_v27 = vmul.f32 0.1, %v1508_v18  ;;  %v1477_v8 = vld [vmem:[%s3172_s6 + $0x10] sm:$0xff]  ;;  %v1501_v55 = vld [vmem:[#allocation4 + $0x10] sm:$0xff] }
 0x21d   : > { %v1721_v30 = vmul.f32 %v2905_v21, %v1529_v32  ;;  %1545 = vst.msk [vmem:[#allocation9 + $0x30] sm:$0xff] %vm1438_vm10, %v1529_v32  ;;  %v1523_v37 = vadd.f32 %v1511_v20, %v1487_v7  ;;  %v1489_v31 = vmul.f32 0.9, %v1477_v8  ;;  %v1513_v26 = vmul.f32 0.1, %v1501_v55  ;;  %v1483_v40 = vld [vmem:[%s3172_s6 + $0x40] sm:$0xff] }
 0x21e   : > { %v1716_v22 = vmul.f32 %v2905_v21, %v1524_v33  ;;  %1540 = vst.msk [vmem:[#allocation9 + $0x8] sm:$0xff] %vm1438_vm10, %v1524_v33  ;;  %v1532_v44 = vadd.f32 %v1520_v27, %v1496_v17  ;;  %v1495_v45 = vmul.f32 0.9, %v1483_v40  ;;  %v1507_v36 = vld [vmem:[#allocation4 + $0x40] sm:$0xff]  ;;  %v1478_v49 = vld [vmem:[%s3172_s6 + $0x18] sm:$0xff]  ;;  %v1502_v57 = vld [vmem:[#allocation4 + $0x18] sm:$0xff] }
 0x21f   : > { %v1745_v53 = vsel %vm1438_vm10, %v1721_v30, 0.0  ;;  %v1715_v60 = vmul.f32 %v2905_v21, %v1523_v37  ;;  %1539 = vst.msk [vmem:[#allocation9] sm:$0xff] %vm1438_vm10, %v1523_v37  ;;  %v1525_v46 = vadd.f32 %v1513_v26, %v1489_v31  ;;  %v1519_v35 = vmul.f32 0.1, %v1507_v36  ;;  %v1486_v48 = vld [vmem:[%s3172_s6 + $0x58] sm:$0xff]  ;;  %v1510_v61 = vld [vmem:[#allocation4 + $0x58] sm:$0xff] }
 0x220   : > { %1746 = vadd.xlane.f32.xlu1 %v1745_v53  ;;  %v1730_v10 = vsel %vm1438_vm10, %v1716_v22, 0.0  ;;  %1548 = vst.msk [vmem:[#allocation9 + $0x48] sm:$0xff] %vm1438_vm10, %v1532_v44  ;;  %v1490_v39 = vmul.f32 0.9, %v1478_v49  ;;  %v1514_v28 = vmul.f32 0.1, %v1502_v57  ;;  %v1724_v52 = vmul.f32 %v2905_v21, %v1532_v44 }
 0x221   : > { %1731 = vadd.xlane.f32.xlu2 %v1730_v10  ;;  %v1727_v0 = vsel %vm1438_vm10, %v1715_v60, 0.0  ;;  %1541 = vst.msk [vmem:[#allocation9 + $0x10] sm:$0xff] %vm1438_vm10, %v1525_v46  ;;  %v1531_v54 = vadd.f32 %v1519_v35, %v1495_v45  ;;  %v1498_v59 = vmul.f32 0.9, %v1486_v48  ;;  %v1479_v34 = vld [vmem:[%s3172_s6 + $0x20] sm:$0xff]  ;;  %v1503_v38 = vld [vmem:[#allocation4 + $0x20] sm:$0xff]  ;;  %v1717_v12 = vmul.f32 %v2905_v21, %v1525_v46 }
 0x222   : > { %1728 = vadd.xlane.f32.xlu0 %v1727_v0  ;;  %v1526_v9 = vadd.f32 %v1514_v28, %v1490_v39  ;;  %v1522_v13 = vmul.f32 0.1, %v1510_v61  ;;  %v1491_v25 = vmul.f32 0.9, %v1479_v34  ;;  %v1480_v1 = vld [vmem:[%s3172_s6 + $0x28] sm:$0xff]  ;;  %v1504_v16 = vld [vmem:[#allocation4 + $0x28] sm:$0xff] }
 0x223   : > { %1547 = vst.msk [vmem:[#allocation9 + $0x40] sm:$0xff] %vm1438_vm10, %v1531_v54  ;;  %v1723_v5 = vmul.f32 %v2905_v21, %v1531_v54  ;;  %v1515_v56 = vmul.f32 0.1, %v1503_v38  ;;  %v1492_v15 = vmul.f32 0.9, %v1480_v1  ;;  %v1754_v41 = vsel %vm1438_vm10, %v1724_v52, 0.0 }
 0x224   : > { %1542 = vst.msk [vmem:[#allocation9 + $0x18] sm:$0xff] %vm1438_vm10, %v1526_v9  ;;  %v1534_v43 = vadd.f32 %v1522_v13, %v1498_v59  ;;  %v1455_v50 = vld [vmem:[#allocation2] sm:$0x7]  ;;  %v1516_v4 = vmul.f32 0.1, %v1504_v16  ;;  %v1482_v11 = vld [vmem:[%s3172_s6 + $0x38] sm:$0xff]  ;;  %v1718_v32 = vmul.f32 %v2905_v21, %v1526_v9 }
 0x225   : > { %v1456_v62 = vld [vmem:[%s3170_s4] sm:$0x7]  ;;  %v1527_v2 = vadd.f32 %v1515_v56, %v1491_v25  ;;  %v1733_v19 = vsel %vm1438_vm10, %v1717_v12, 0.0  ;;  %v1458_v6 = vmul.f32 0.1, %v1455_v50  ;;  %v1751_v58 = vsel %vm1438_vm10, %v1723_v5, 0.0 }
 0x226   : > { %v1457_v14 = vmul.f32 0.9, %v1456_v62  ;;  %1550 = vst.msk [vmem:[#allocation9 + $0x58] sm:$0xff] %vm1438_vm10, %v1534_v43  ;;  %v2016_v23 = vmul.f32 0.0033333334, %v1455_v50  ;;  %v1528_v29 = vadd.f32 %v1516_v4, %v1492_v15  ;;  %v1506_v24 = vld [vmem:[#allocation4 + $0x38] sm:$0xff]  ;;  %v1726_v20 = vmul.f32 %v2905_v21, %v1534_v43 }
 0x227   : > { %1543 = vst.msk [vmem:[#allocation9 + $0x20] sm:$0xff] %vm1438_vm10, %v1527_v2  ;;  %v1494_v3 = vmul.f32 0.9, %v1482_v11  ;;  %v1518_v42 = vmul.f32 0.1, %v1506_v24  ;;  %v1485_v7 = vld [vmem:[%s3172_s6 + $0x50] sm:$0xff]  ;;  %v1719_v49 = vmul.f32 %v2905_v21, %v1527_v2 }
 0x228   : > { %1755 = vadd.xlane.f32.xlu1 %v1754_v41  ;;  %v2959_v47 = vadd.f32 %v1458_v6, %v1457_v14  ;;  %2340 = vlog2.f32 %v2016_v23  ;;  %1544 = vst.msk [vmem:[#allocation9 + $0x28] sm:$0xff] %vm1438_vm10, %v1528_v29  ;;  %v1497_v33 = vmul.f32 0.9, %v1485_v7  ;;  %v1509_v17 = vld [vmem:[#allocation4 + $0x50] sm:$0xff]  ;;  %v1736_v30 = vsel %vm1438_vm10, %v1718_v32, 0.0 }
 0x229   : > { %1734 = vadd.xlane.f32.xlu2 %v1733_v19  ;;  %v1530_v18 = vadd.f32 %v1518_v42, %v1494_v3  ;;  %v1521_v8 = vmul.f32 0.1, %v1509_v17  ;;  %v1760_v26 = vsel %vm1438_vm10, %v1726_v20, 0.0  ;;  %v1739_v39 = vsel %vm1438_vm10, %v1719_v49, 0.0  ;;  %v1460_v20 = vld [vmem:[%s3171_s5] sm:$0xf] }
 0x22a   : > { %1752 = vadd.xlane.f32.xlu0 %v1751_v58  ;;  %2342 = vrcp.f32 %v2959_v47  ;;  %1535 = vst.msk [vmem:[%s3174_s8] sm:$0x7] %vm1127_vm9, %v2959_v47  ;;  %v1551_v63 = vsel %vm1127_vm9, %v2959_v47, 0.0  ;;  %vm1579_vm3 = vweird.f32 %v2959_v47  ;;  %v1585_v57 = vand.u32 2147483648, %v2959_v47 }
 0x22b   : > { %v1552_v27 = vrot.slane %v1551_v63, 4  ;;  %1546 = vst.msk [vmem:[#allocation9 + $0x38] sm:$0xff] %vm1438_vm10, %v1530_v18  ;;  %v2977_v31 = vadd.f32 %v1521_v8, %v1497_v33  ;;  %v1583_v46 = vand.u32 2147483647, %v2959_v47  ;;  %v1720_v38 = vmul.f32 %v2905_v21, %v1528_v29  ;;  %v1461_v8 = vld [vmem:[%s3171_s5 + $0x4] sm:$0xf] }
 0x22c   : > { %v1586_v28 = vor.u32 1.1754944e-38, %v1585_v57  ;;  %v1722_v2 = vmul.f32 %v2905_v21, %v1530_v18 }
 0x22d   : > { %v1553_v37 = vadd.f32 %v1552_v27, %v1551_v63  ;;  %1549 = vst.msk [vmem:[#allocation9 + $0x50] sm:$0xff] %vm1438_vm10, %v2977_v31  ;;  %vm1584_vm6 = vcmp.eq.f32.partialorder %v1583_v46, 8.507059e+37  ;;  %v1742_v5 = vsel %vm1438_vm10, %v1720_v38, 0.0  ;;  %v1725_v24 = vmul.f32 %v2905_v21, %v2977_v31  ;;  %v1466_v63 = vld [vmem:[#allocation3] sm:$0xf] }
 0x22e   : > { %v2341_v55 = vpop.eup %2340  ;;  %v1748_v6 = vsel %vm1438_vm10, %v1722_v2, 0.0  ;;  %v1463_v21 = vmul.f32 0.9, %v1460_v20  ;;  %v1469_v18 = vmul.f32 0.1, %v1466_v63 }
 0x22f   : > { %v2018_v40 = vmul.f32 0.6931472, %v2341_v55  ;;  %v1554_v44 = vrot.slane %v1553_v37, 2  ;;  %v1757_v42 = vsel %vm1438_vm10, %v1725_v24, 0.0  ;;  %v1467_v55 = vld [vmem:[#allocation3 + $0x4] sm:$0xf] }
 0x230   : > { %v2343_v22 = vpop.eup %2342  ;;  %v1472_v33 = vadd.f32 %v1469_v18, %v1463_v21 }
 0x231   : > { %1737 = vadd.xlane.f32.xlu2 %v1736_v30  ;;  %v1575_v45 = vmul.f32 %v2343_v22, %v2959_v47  ;;  %v2019_v36 = vmul.f32 %v2018_v40, %v2016_v23  ;;  %v1555_v53 = vadd.f32 %v1554_v44, %v1553_v37  ;;  %vm1580_vm4 = vweird.f32 %v2343_v22  ;;  %v1462_v40 = vld [vmem:[%s3171_s5 + $0x8] sm:$0xf] }
 0x232   : > { %1761 = vadd.xlane.f32.xlu0 %v1760_v26  ;;  %vm1581_vm5 = vmor %vm1579_vm3, %vm1580_vm4  ;;  %1536 = vst.msk [vmem:[#allocation7] sm:$0xf] %vm579_vm15, %v1472_v33  ;;  %v1464_v30 = vmul.f32 0.9, %v1461_v8  ;;  %v1470_v37 = vmul.f32 0.1, %v1467_v55 }
 0x233   : > { %v1576_v60 = vsub.f32 1.0, %v1575_v45  ;;  %v2020_v35 = vsel %vm1127_vm9, %v2019_v36, 0.0  ;;  %v1556_v61 = vrot.slane %v1555_v53, 1  ;;  %v1465_v44 = vmul.f32 0.9, %v1462_v40 }
 0x234   : > { %v2021_v48 = vrot.slane %v2020_v35, 4  ;;  %v1473_v26 = vadd.f32 %v1470_v37, %v1464_v30 }
 0x235   : > { %v1577_v10 = vmul.f32 %v2343_v22, %v1576_v60  ;;  %v1557_v52 = vadd.f32 %v1556_v61, %v1555_v53 }
 0x236   : > { %v2022_v0 = vadd.f32 %v2021_v48, %v2020_v35  ;;  %1537 = vst.msk [vmem:[#allocation7 + $0x4] sm:$0xf] %vm579_vm15, %v1473_v26  ;;  %v1803_v21 = vmul.f32 %v1473_v26, %v1473_v26 }
 0x237   : > { %v1578_v54 = vadd.f32 %v2343_v22, %v1577_v10  ;;  %2344 = vrcp.f32 %v1557_v52  ;;  %vm1563_vm8 = vweird.f32 %v1557_v52  ;;  %v1569_v43 = vand.u32 2147483648, %v1557_v52 }
 0x238   : > { %v2023_v59 = vrot.slane %v2022_v0, 2  ;;  %v1567_v50 = vand.u32 2147483647, %v1557_v52 }
 0x239   : > { %1740 = vadd.xlane.f32.xlu2 %v1739_v39  ;;  %v1582_v34 = vsel %vm1581_vm5, %v2343_v22, %v1578_v54  ;;  %v1570_v14 = vor.u32 1.1754944e-38, %v1569_v43  ;;  %v1468_v22 = vld [vmem:[#allocation3 + $0x8] sm:$0xf] }
 0x23a   : > { %v1587_v12 = vsel %vm1584_vm6, %v1586_v28, %v1582_v34  ;;  %v2024_v9 = vadd.f32 %v2023_v59, %v2022_v0  ;;  %vm1568_vm13 = vcmp.eq.f32.partialorder %v1567_v50, 8.507059e+37  ;;  %v1471_v45 = vmul.f32 0.1, %v1468_v22 }
 0x23b   : > { %v1602_v25 = vperm.slane %v1587_v12, 2  ;;  %v1805_v62 = vmul.f32 %v1587_v12, %v1587_v12  ;;  %v1588_v41 = vperm.slane %v1587_v12, 0  ;;  %v1595_v3 = vperm.slane %v1587_v12, 1 }
 0x23c   : > { %v2025_v13 = vrot.slane %v2024_v9, 1  ;;  %v1474_v49 = vadd.f32 %v1471_v45, %v1465_v44  ;;  %v1802_v59 = vmul.f32 %v1472_v33, %v1472_v33 }
 0x23d   : > { %v2345_v1 = vpop.eup %2344  ;;  %v1806_v19 = vperm.slane %v1805_v62, 0  ;;  %v1820_v32 = vperm.slane %v1805_v62, 2  ;;  %v1813_v7 = vperm.slane %v1805_v62, 1 }
 0x23e   : > { %v2026_v56 = vadd.f32 %v2025_v13, %v2024_v9  ;;  %v1559_v15 = vmul.f32 %v2345_v1, %v1557_v52  ;;  %vm1564_vm11 = vweird.f32 %v2345_v1  ;;  %1538 = vst.msk [vmem:[#allocation7 + $0x8] sm:$0xf] %vm579_vm15, %v1474_v49  ;;  %v1804_v30 = vmul.f32 %v1474_v49, %v1474_v49 }
 0x23f   : > { %vm1565_vm12 = vmor %vm1563_vm8, %vm1564_vm11 }
 0x240   : > { %2028 = vst.msk [vmem:[#allocation11] sm:$0x1] %vm2027_vm7, %v2026_v56  ;;  %v1560_v16 = vsub.f32 1.0, %v1559_v15 }
 0x241   : > { %1743 = vadd.xlane.f32.xlu2 %v1742_v5  ;;  %1607 = vperm.xlu1 %2335, %v1602_v25  }
 0x242   : > { %v1561_v4 = vmul.f32 %v2345_v1, %v1560_v16 }
 0x244   : > { %v1562_v11 = vadd.f32 %v2345_v1, %v1561_v4 }
 0x246   : > { %1593 = vperm.xlu0 %2334, %v1588_v41   ;;  %v1566_v23 = vsel %vm1565_vm12, %v2345_v1, %v1562_v11 }
 0x247   : > { %v1571_v58 = vsel %vm1568_vm13, %v1570_v14, %v1566_v23 }
 0x248   : > { %v1572_v29 = vmul.f32 %v1571_v58, %v2959_v47 }
 0x249   : > { %1749 = vadd.xlane.f32.xlu2 %v1748_v6  ;;  %1811 = vperm.xlu1 %2335, %v1806_v19  }
 0x24a   : > { %1573 = vst.msk [vmem:[%s3178_s12] sm:$0x7] %vm1127_vm9, %v1572_v29 }
 0x24e   : > { %1600 = vperm.xlu0 %2334, %v1595_v3  }
 0x251   : > { %1758 = vadd.xlane.f32.xlu2 %v1757_v42 }
 0x256   : > { %1825 = vperm.xlu0 %2334, %v1820_v32  }
 0x269   : > { %1818 = vperm.xlu2 %2336, %v1813_v7  }
 0x293   : > { %v1747_v31 = vpop.xlane.xlu1 %1746 }
 0x294   : > { %v1732_v47 = vpop.xlane.xlu2 %1731 }
 0x295   : > { %v1729_v17 = vpop.xlane.xlu0 %1728 }
 0x29b   : > { %v1756_v53 = vpop.xlane.xlu1 %1755 }
 0x29c   : > { %v1735_v27 = vpop.xlane.xlu2 %1734 }
 0x29d   : > { %v1753_v57 = vpop.xlane.xlu0 %1752 }
 0x2a4   : > { %v1738_v36 = vpop.xlane.xlu2 %1737 }
 0x2a5   : > { %v1762_v46 = vpop.xlane.xlu0 %1761 }
 0x2ac   : > { %v1741_v60 = vpop.xlane.xlu2 %1740 }
 0x2b3   : > { %v1608_v35 = vpop.permute.xlu1 %1607 }
 0x2b4   : > { %v1744_v48 = vpop.xlane.xlu2 %1743  ;;  %v1774_v61 = vperm.slane %v1608_v35, 0  ;;  %v1775_v10 = vperm.slane %v1608_v35, 1  ;;  %v1777_v39 = vperm.slane %v1608_v35, 3  ;;  %v1776_v4 = vperm.slane %v1608_v35, 2 }
 0x2b5   : > { %v3034_v23 = vmul.f32 %v1608_v35, %v1474_v49  ;;  %v2476_v49 = vmov 0  }
 0x2b6   : > { %v3013_v28 = vmul.f32 %v1774_v61, %v1753_v57  ;;  %v3015_v0 = vmul.f32 %v1775_v10, %v1756_v53  ;;  %v3017_v52 = vmul.f32 %v1777_v39, %v1762_v46 }
 0x2b7   : > { %v1614_v63 = vmul.f32 %v3034_v23, %v3034_v23 }
 0x2b8   : > { %v1594_v54 = vpop.permute.xlu0 %1593 }
 0x2b9   : > { %v3019_v34 = vmul.f32 %v1594_v54, %v1472_v33  ;;  %v1767_v38 = vperm.slane %v1594_v54, 1  ;;  %v1766_v12 = vperm.slane %v1594_v54, 0  ;;  %v1768_v9 = vperm.slane %v1594_v54, 2 }
 0x2ba   : > { %v1769_v13 = vperm.slane %v1594_v54, 3  ;;  %v1621_v18 = vsel %vm579_vm15, %v1614_v63, 0.0 }
 0x2bb   : > { %v1812_v25 = vpop.permute.xlu1 %1811  ;;  %v1612_v1 = vmul.f32 %v3019_v34, %v3019_v34  ;;  %v3023_v5 = vmul.f32 %v1767_v38, %v1732_v47  ;;  %v3025_v56 = vmul.f32 %v1766_v12, %v1729_v17  ;;  %v3027_v15 = vmul.f32 %v1768_v9, %v1735_v27 }
 0x2bc   : > { %v1750_v43 = vpop.xlane.xlu2 %1749  ;;  %v1827_v16 = vmul.f32 %v1812_v25, %v1802_v59  ;;  %v3029_v50 = vmul.f32 %v1769_v13, %v1738_v36 }
 0x2bd   : > { %v1615_v62 = vsel %vm579_vm15, %v1612_v1, 0.0 }
 0x2be   : > { %1616 = vadd.xlane.f32.xlu1 %v1615_v62  ;;  %v1840_v41 = vperm.slane %v1827_v16, 1  ;;  %v1833_v8 = vperm.slane %v1827_v16, 0  ;;  %v1854_v40 = vperm.slane %v1827_v16, 3 }
 0x2c0   : > { %v1601_v2 = vpop.permute.xlu0 %1600  ;;  %1845 = vperm.xlu0 %2334, %v1840_v41  }
 0x2c1   : > { %v3032_v14 = vmul.f32 %v1601_v2, %v1473_v26  ;;  %v1770_v11 = vperm.slane %v1601_v2, 0  ;;  %v1773_v19 = vperm.slane %v1601_v2, 3  ;;  %v1771_v6 = vperm.slane %v1601_v2, 1 }
 0x2c2   : > { %v1772_v58 = vperm.slane %v1601_v2, 2  ;;  %v1847_v26 = vperm.slane %v1827_v16, 2 }
 0x2c3   : > { %v1613_v29 = vmul.f32 %v3032_v14, %v3032_v14  ;;  %v3038_v3 = vmul.f32 %v1770_v11, %v1741_v60  ;;  %v3040_v24 = vmul.f32 %v1773_v19, %v1750_v43  ;;  %v3042_v42 = vmul.f32 %v1771_v6, %v1744_v48 }
 0x2c4   : > { %v1759_v32 = vpop.xlane.xlu2 %1758  ;;  %v3044_v7 = vmul.f32 %v1772_v58, %v1747_v31 }
 0x2c5   : > { %v3046_v47 = vmul.f32 %v1776_v4, %v1759_v32  ;;  %v1618_v20 = vsel %vm579_vm15, %v1613_v29, 0.0 }
 0x2c6   : > { %1619 = vadd.xlane.f32.xlu2 %v1618_v20 }
 0x2c8   : > { %v1826_v37 = vpop.permute.xlu0 %1825 }
 0x2c9   : > { %v1829_v31 = vmul.f32 %v1826_v37, %v1804_v30 }
 0x2cb   : > { %v1903_v22 = vperm.slane %v1829_v31, 2  ;;  %v1896_v36 = vperm.slane %v1829_v31, 1  ;;  %v1889_v57 = vperm.slane %v1829_v31, 0  ;;  %v1910_v53 = vperm.slane %v1829_v31, 3 }
 0x2cc   : > { %v1819_v33 = vpop.permute.xlu2 %1818 }
 0x2cd   : > { %v1828_v17 = vmul.f32 %v1819_v33, %v1803_v21 }
 0x2ce   : > { %1622 = vadd.xlane.f32.xlu2 %v1621_v18 }
 0x2cf   : > { %v1861_v27 = vperm.slane %v1828_v17, 0  ;;  %v1882_v55 = vperm.slane %v1828_v17, 3  ;;  %v1875_v44 = vperm.slane %v1828_v17, 2  ;;  %v1868_v45 = vperm.slane %v1828_v17, 1 }
 0x2d1   : > { %1866 = vperm.xlu0 %2334, %v1861_v27  }
 0x2d7   : > { %1838 = vperm.xlu1 %2335, %v1833_v8  }
 0x2d9   : > { %1887 = vperm.xlu0 %2334, %v1882_v55  }
 0x2df   : > { %1859 = vperm.xlu1 %2335, %v1854_v40  }
 0x2e1   : > { %1908 = vperm.xlu0 %2334, %v1903_v22  }
 0x2e6   : > { %1852 = vperm.xlu2 %2336, %v1847_v26  }
 0x2e7   : > { %1880 = vperm.xlu1 %2335, %v1875_v44  }
 0x2e9   : > { %2338 = vset.pattern.permute.xlu0 %v2476_v49 }
 0x2ee   : > { %1873 = vperm.xlu2 %2336, %v1868_v45  }
 0x2ef   : > { %1901 = vperm.xlu1 %2335, %v1896_v36  }
 0x2f6   : > { %1894 = vperm.xlu2 %2336, %v1889_v57  }
 0x2f7   : > { %2337 = vset.pattern.permute.xlu1 %v2476_v49 }
 0x2fe   : > { %1915 = vperm.xlu2 %2336, %v1910_v53  }
 0x306   : > { %2339 = vset.pattern.permute.xlu2 %v2476_v49 }
 0x331   : > { %v1617_v60 = vpop.xlane.xlu1 %1616 }
 0x332   : > { %2346 = vrsqrt.f32 %v1617_v60  ;;  %v1846_v46 = vpop.permute.xlu0 %1845  ;;  %vm1631_vm9 = vcmp.eq.f32.partialorder %v1617_v60, inf  ;;  %v1634_v43 = vand.u32 2147483648, %v1617_v60  ;;  %vm1633_vm10 = vcmp.eq.f32.partialorder %v1617_v60, 0.0 }
 0x333   : > { %v1930_v35 = vsub.f32 %v3023_v5, %v1846_v46 }
 0x335   : > { %1957 = vperm.xlu0 %2338, %v1930_v35  }
 0x338   : > { %v2347_v48 = vpop.eup %2346 }
 0x339   : > { %v1625_v61 = vmul.f32 %v2347_v48, %v1617_v60  ;;  %v1620_v10 = vpop.xlane.xlu2 %1619 }
 0x33a   : > { %2348 = vrsqrt.f32 %v1620_v10  ;;  %vm1643_vm14 = vcmp.eq.f32.partialorder %v1620_v10, inf  ;;  %v1646_v18 = vand.u32 2147483648, %v1620_v10  ;;  %vm1645_vm3 = vcmp.eq.f32.partialorder %v1620_v10, 0.0 }
 0x33b   : > { %v1626_v39 = vmul.f32 %v2347_v48, %v1625_v61 }
 0x33d   : > { %v1627_v54 = vmul.f32 0.5, %v1626_v39 }
 0x33f   : > { %v1628_v59 = vsub.f32 1.5, %v1627_v54 }
 0x340   : > { %v2349_v38 = vpop.eup %2348 }
 0x341   : > { %v1629_v12 = vmul.f32 %v2347_v48, %v1628_v59  ;;  %v1637_v9 = vmul.f32 %v2349_v38, %v1620_v10  ;;  %v3053_v13 = vpop.xlane.xlu2 %1622 }
 0x342   : > { %2350 = vrsqrt.f32 %v3053_v13  ;;  %vm1655_vm6 = vcmp.eq.f32.partialorder %v3053_v13, inf  ;;  %vm1657_vm8 = vcmp.eq.f32.partialorder %v3053_v13, 0.0 }
 0x343   : > { %v1630_v25 = vmul.f32 %v1629_v12, %v1617_v60  ;;  %v1638_v1 = vmul.f32 %v2349_v38, %v1637_v9  ;;  %v1867_v20 = vpop.permute.xlu0 %1866 }
 0x345   : > { %v1632_v5 = vsel %vm1631_vm9, %v1617_v60, %v1630_v25  ;;  %v1639_v16 = vmul.f32 0.5, %v1638_v1  ;;  %v1658_v60 = vand.u32 2147483648, %v3053_v13 }
 0x346   : > { %v1635_v62 = vsel %vm1633_vm10, %v1634_v43, %v1632_v5 }
 0x347   : > { %v1660_v41 = vmax.f32 %v1635_v62, 1e-12  ;;  %v1640_v2 = vsub.f32 1.5, %v1639_v16 }
 0x348   : > { %v2351_v4 = vpop.eup %2350 }
 0x349   : > { %2352 = vrcp.f32 %v1660_v41  ;;  %v1839_v11 = vpop.permute.xlu1 %1838  ;;  %v1853_v19 = vpop.permute.xlu2 %1852  ;;  %v1641_v6 = vmul.f32 %v2349_v38, %v1640_v2  ;;  %v1649_v58 = vmul.f32 %v2351_v4, %v3053_v13  ;;  %v1674_v22 = vand.u32 2147483648, %v1660_v41 }
 0x34a   : > { %v1929_v29 = vsub.f32 %v3025_v56, %v1839_v11  ;;  %v1931_v32 = vsub.f32 %v3027_v15, %v1853_v19  ;;  %v1933_v15 = vsub.f32 %v3038_v3, %v1867_v20  ;;  %v1672_v36 = vand.u32 2147483647, %v1660_v41 }
 0x34b   : > { %v1642_v63 = vmul.f32 %v1641_v6, %v1620_v10  ;;  %v1650_v21 = vmul.f32 %v2351_v4, %v1649_v58  ;;  %v3062_v53 = vpop.permute.xlu0 %1887  ;;  %vm1668_vm5 = vweird.f32 %v1660_v41  ;;  %v1675_v3 = vor.u32 1.1754944e-38, %v1674_v22 }
 0x34c   : > { %1954 = vperm.xlu1 %2337, %v1929_v29   ;;  %1960 = vperm.xlu2 %2339, %v1931_v32   ;;  %vm1673_vm11 = vcmp.eq.f32.partialorder %v1672_v36, 8.507059e+37 }
 0x34d   : > { %v1644_v33 = vsel %vm1643_vm14, %v1620_v10, %v1642_v63  ;;  %v1651_v17 = vmul.f32 0.5, %v1650_v21 }
 0x34e   : > { %v1647_v8 = vsel %vm1645_vm3, %v1646_v18, %v1644_v33 }
 0x34f   : > { %v2353_v27 = vpop.eup %2352  ;;  %v1661_v30 = vmax.f32 %v1647_v8, 1e-12  ;;  %v1652_v37 = vsub.f32 1.5, %v1651_v17 }
 0x350   : > { %v1664_v55 = vmul.f32 %v2353_v27, %v1660_v41  ;;  %vm1669_vm4 = vweird.f32 %v2353_v27 }
 0x351   : > { %v1860_v31 = vpop.permute.xlu1 %1859  ;;  %v1874_v40 = vpop.permute.xlu2 %1873  ;;  %2354 = vrcp.f32 %v1661_v30  ;;  %v1653_v44 = vmul.f32 %v2351_v4, %v1652_v37  ;;  %vm1670_vm7 = vmor %vm1668_vm5, %vm1669_vm4  ;;  %v1687_v43 = vand.u32 2147483647, %v1661_v30  ;;  %vm1683_vm13 = vweird.f32 %v1661_v30 }
 0x352   : > { %v1665_v56 = vsub.f32 1.0, %v1664_v55  ;;  %v1932_v26 = vsub.f32 %v3029_v50, %v1860_v31  ;;  %v1934_v25 = vsub.f32 %v3042_v42, %v1874_v40 }
 0x353   : > { %v1654_v57 = vmul.f32 %v1653_v44, %v3053_v13  ;;  %vm1688_vm10 = vcmp.eq.f32.partialorder %v1687_v43, 8.507059e+37 }
 0x354   : > { %v1666_v45 = vmul.f32 %v2353_v27, %v1665_v56  ;;  %1966 = vperm.xlu2 %2339, %v1933_v15   ;;  %1963 = vperm.xlu1 %2337, %v1932_v26  }
 0x355   : > { %v1656_v46 = vsel %vm1655_vm6, %v3053_v13, %v1654_v57  ;;  %v1689_v13 = vand.u32 2147483648, %v1661_v30 }
 0x356   : > { %v1667_v49 = vadd.f32 %v2353_v27, %v1666_v45  ;;  %v1659_v48 = vsel %vm1657_vm8, %v1658_v60, %v1656_v46 }
 0x357   : > { %v2355_v50 = vpop.eup %2354  ;;  %v1662_v39 = vmax.f32 %v1659_v48, 1e-12 }
 0x358   : > { %v1671_v35 = vsel %vm1670_vm7, %v2353_v27, %v1667_v49  ;;  %v1679_v10 = vmul.f32 %v2355_v50, %v1661_v30  ;;  %vm1684_vm12 = vweird.f32 %v2355_v50 }
 0x359   : > { %v1676_v61 = vsel %vm1673_vm11, %v1675_v3, %v1671_v35  ;;  %v1881_v54 = vpop.permute.xlu1 %1880  ;;  %v1895_v59 = vpop.permute.xlu2 %1894  ;;  %2356 = vrcp.f32 %v1662_v39  ;;  %vm1685_vm9 = vmor %vm1683_vm13, %vm1684_vm12  ;;  %v1704_v29 = vand.u32 2147483648, %v1662_v39  ;;  %v1702_v20 = vand.u32 2147483647, %v1662_v39 }
 0x35a   : > { %v1677_v38 = vmul.f32 %v1676_v61, %v3019_v34  ;;  %v1937_v12 = vsub.f32 %v3013_v28, %v1895_v59  ;;  %v1680_v9 = vsub.f32 1.0, %v1679_v10  ;;  %v1909_v34 = vpop.permute.xlu0 %1908  ;;  %v1690_v28 = vor.u32 1.1754944e-38, %v1689_v13 }
 0x35b   : > { %v1939_v4 = vsub.f32 %v3046_v47, %v1909_v34  ;;  %v1935_v6 = vsub.f32 %v3044_v7, %v1881_v54  ;;  %vm1698_vm3 = vweird.f32 %v1662_v39  ;;  %vm1703_vm5 = vcmp.eq.f32.partialorder %v1702_v20, 8.507059e+37 }
 0x35c   : > { %1708 = vst.msk [vmem:[%s3177_s11] sm:$0xf] %vm579_vm15, %v1677_v38  ;;  %1978 = vperm.xlu0 %2338, %v1937_v12   ;;  %v1681_v1 = vmul.f32 %v2355_v50, %v1680_v9  ;;  %1969 = vperm.xlu1 %2337, %v1934_v25   ;;  %v1936_v7 = vsub.f32 %v3040_v24, %v3062_v53 }
 0x35e   : > { %v1682_v5 = vadd.f32 %v2355_v50, %v1681_v1 }
 0x35f   : > { %v2357_v16 = vpop.eup %2356 }
 0x360   : > { %v1686_v62 = vsel %vm1685_vm9, %v2355_v50, %v1682_v5  ;;  %v1694_v2 = vmul.f32 %v2357_v16, %v1662_v39  ;;  %vm1699_vm14 = vweird.f32 %v2357_v16 }
 0x361   : > { %v1902_v42 = vpop.permute.xlu1 %1901  ;;  %v1691_v41 = vsel %vm1688_vm10, %v1690_v28, %v1686_v62  ;;  %vm1700_vm4 = vmor %vm1698_vm3, %vm1699_vm14 }
 0x362   : > { %v1938_v11 = vsub.f32 %v3015_v0, %v1902_v42  ;;  %v1692_v19 = vmul.f32 %v1691_v41, %v3032_v14  ;;  %v1695_v58 = vsub.f32 1.0, %v1694_v2  ;;  %v1916_v0 = vpop.permute.xlu2 %1915  ;;  %v1705_v14 = vor.u32 1.1754944e-38, %v1704_v29 }
 0x363   : > { %v1940_v18 = vsub.f32 %v3017_v52, %v1916_v0 }
 0x364   : > { %1981 = vperm.xlu2 %2339, %v1938_v11   ;;  %1984 = vperm.xlu0 %2338, %v1939_v4   ;;  %1709 = vst.msk [vmem:[%s3177_s11 + $0x4] sm:$0xf] %vm579_vm15, %v1692_v19  ;;  %v1696_v32 = vmul.f32 %v2357_v16, %v1695_v58 }
 0x365   : > { %1972 = vperm.xlu1 %2337, %v1935_v6  }
 0x366   : > { %v1697_v47 = vadd.f32 %v2357_v16, %v1696_v32 }
 0x368   : > { %v1701_v63 = vsel %vm1700_vm4, %v2357_v16, %v1697_v47 }
 0x369   : > { %v1706_v21 = vsel %vm1703_vm5, %v1705_v14, %v1701_v63 }
 0x36a   : > { %v1707_v33 = vmul.f32 %v1706_v21, %v3034_v23 }
 0x36c   : > { %1975 = vperm.xlu2 %2339, %v1936_v7   ;;  %1710 = vst.msk [vmem:[%s3177_s11 + $0x8] sm:$0xf] %vm579_vm15, %v1707_v33 }
 0x36d   : > { %1987 = vperm.xlu1 %2337, %v1940_v18  }
 0x3a6   : > { %v1961_v17 = vpop.permute.xlu2 %1960 }
 0x3a7   : > { %v1958_v8 = vpop.permute.xlu0 %1957  ;;  %v1991_v52 = vperm.slane %v1961_v17, %v2808_v51 }
 0x3a8   : > { %v1990_v30 = vperm.slane %v1958_v8, %v2808_v51 }
 0x3ae   : > { %v1967_v24 = vpop.permute.xlu2 %1966 }
 0x3af   : > { %v1993_v36 = vperm.slane %v1967_v24, %v2808_v51 }
 0x3be   : > { %v1955_v27 = vpop.permute.xlu1 %1954  ;;  %v1982_v15 = vpop.permute.xlu2 %1981 }
 0x3bf   : > { %v1989_v55 = vperm.slane %v1955_v27, %v2808_v51  ;;  %v1998_v61 = vperm.slane %v1982_v15, %v2808_v51 }
 0x3c1   : > { %v2001_v37 = vsel %vm1014_vm0, %v1990_v30, %v1989_v55 }
 0x3c2   : > { %v2002_v40 = vsel %vm1017_vm1, %v1991_v52, %v2001_v37 }
 0x3c6   : > { %v1964_v23 = vpop.permute.xlu1 %1963  ;;  %v1976_v45 = vpop.permute.xlu2 %1975 }
 0x3c7   : > { %v1992_v31 = vperm.slane %v1964_v23, %v2808_v51  ;;  %v1996_v49 = vperm.slane %v1976_v45, %v2808_v51 }
 0x3c9   : > { %v2003_v56 = vsel %vm1020_vm2, %v1992_v31, %v2002_v40 }
 0x3ca   : > { %2013 = vst.msk [vmem:[%s3179_s13] sm:$0xf] %vm579_vm15, %v2003_v56 }
 0x3ce   : > { %v1970_v22 = vpop.permute.xlu1 %1969  ;;  %v1979_v44 = vpop.permute.xlu0 %1978 }
 0x3cf   : > { %v1994_v26 = vperm.slane %v1970_v22, %v2808_v51  ;;  %v1997_v35 = vperm.slane %v1979_v44, %v2808_v51 }
 0x3d1   : > { %v2004_v60 = vsel %vm1014_vm0, %v1994_v26, %v1993_v36  ;;  %v2007_v39 = vsel %vm1014_vm0, %v1998_v61, %v1997_v35 }
 0x3d6   : > { %v1985_v46 = vpop.permute.xlu0 %1984 }
 0x3d7   : > { %v1973_v57 = vpop.permute.xlu1 %1972  ;;  %v1999_v48 = vperm.slane %v1985_v46, %v2808_v51 }
 0x3d8   : > { %v1995_v53 = vperm.slane %v1973_v57, %v2808_v51 }
 0x3d9   : > { %v2008_v59 = vsel %vm1017_vm1, %v1999_v48, %v2007_v39 }
 0x3da   : > { %v2005_v3 = vsel %vm1017_vm1, %v1995_v53, %v2004_v60 }
 0x3db   : > { %v2006_v50 = vsel %vm1020_vm2, %v1996_v49, %v2005_v3 }
 0x3dc   : > { %2014 = vst.msk [vmem:[%s3179_s13 + $0x4] sm:$0xf] %vm579_vm15, %v2006_v50 }
 0x3df   : > { %v1988_v10 = vpop.permute.xlu1 %1987 }
 0x3e0   : > { %v2000_v54 = vperm.slane %v1988_v10, %v2808_v51 }
 0x3e2   : > { %v2009_v38 = vsel %vm1020_vm2, %v2000_v54, %v2008_v59 }
 0x3e3   : > { %2015 = vst.msk [vmem:[%s3179_s13 + $0x8] sm:$0xf] %vm579_vm15, %v2009_v38 }
 0x3e4 PF: > { %2035 = sbr.rel (!%p2592_p5) target bundleno = 1001 (0x3e9), region = 98  ;;  %s2255_s26 = sshll.u32 (%p2592_p5), %s2575_s16, 2  ;;  %v2054_v12 = vld [vmem:[%s2607_s24] sm:$0xf] (%p2592_p5)  ;;  %v2056_v51 = vld [vmem:[%s2607_s24 + $0x4] sm:$0xf] (%p2592_p5) }
 0x3e5   : > { %s2037_s18 = scalar_lea.vmem (%p2592_p5), %s3173_s7, %s2255_s26  ;;  %v2058_v9 = vld [vmem:[%s2607_s24 + $0x8] sm:$0xf] (%p2592_p5) }
 0x3e6   : > { %2055 = vst [vmem:[%s2037_s18] sm:$0xf] (%p2592_p5), %v2054_v12 }
 0x3e7   : > { %2057 = vst [vmem:[%s2037_s18 + $0xc] sm:$0xf] (%p2592_p5), %v2056_v51 }
 0x3e8   : > { %2059 = vst [vmem:[%s2037_s18 + $0x18] sm:$0xf] (%p2592_p5), %v2058_v9 }
 0x3e9 PF: > { %s2111_s21 = sshll.u32 %s3176_s10, 4  ;;  %s2477_s29 = smov [#allocation9]   ;;  %s2112_s21 = int_to_ptr.hbm [resolvable:$true] %s2111_s21 }
 0x3ea   : > { %s2109_s15 = sshll.u32 %s2477_s29, 4  ;;  %s2478_s25 = smov 128   ;;  %s2110_s15 = int_to_ptr.vmem [resolvable:$true] %s2109_s15 }
 0x3eb   : > { %s2479_s23 = smov 8   ;;  %s2480_s24 = smov [#allocation7]  }
 0x3ec   : > { %2268 = dma.vmem_to_hbm [thread:$0]  (%p197_p3), %s2110_s15, 1536, %s2112_s21, [#allocation10], %s2478_s25, %s2478_s25, %s2479_s23  }
 0x3ed   : > { %s2095_s26 = sshll.u32 %s2480_s24, 4  ;;  %s2097_s18 = sshll.u32 %s3175_s9, 4  ;;  %s2096_s26 = int_to_ptr.vmem [resolvable:$true] %s2095_s26  ;;  %s2098_s18 = int_to_ptr.hbm [resolvable:$true] %s2097_s18 }
 0x3ee   : > { %s2481_s19 = smov 64   ;;  %s2482_s22 = smov 4  }
 0x3ef   : > { %2266 = dma.vmem_to_hbm [thread:$0]  (%p197_p3), %s2096_s26, 192, %s2098_s18, [#allocation8], %s2481_s19, %s2481_s19, %s2482_s22  }
 0x3f0   : > { %s2135_s1 = sshll.u32 %s3180_s14, 4  ;;  %s2483_s2 = smov [#allocation11]   ;;  %s2136_s1 = int_to_ptr.hbm [resolvable:$true] %s2135_s1 }
 0x3f1   : > { %s2133_s3 = sshll.u32 %s2483_s2, 4  ;;  %s2134_s3 = int_to_ptr.vmem [resolvable:$true] %s2133_s3 }
 0x3f2   : > { %2270 = dma.vmem_to_hbm [thread:$0]  (%p197_p3), %s2134_s3, 16, %s2136_s1, [#allocation10]  }
 0x3f3   : > { %2455 = dma.done.wait (%p197_p3), [#allocation8], 192  }
 0x3f4   : > { %2457 = vsyncadd (%p197_p3), [#allocation8], 4294967104 }
 0x3f5   : > { %2459 = dma.done.wait (%p197_p3), [#allocation10], 1552  }
 0x3f6   : > { %2461 = vsyncadd (%p197_p3), [#allocation10], 4294965744 }
 0x3f7 PF: > { %p24_p12 = scmp.ge.s32.totalorder %s2578_s17, 5   ;;  %s3190_s29 = smov %s2468_s30 }
 0x3f8   : > { %s3191_s30 = smov %s2588_s20  ;;  %s3192_s15 = smov %s2578_s17 }
 0x3f9   :  { %26 = sbr.rel (!%p24_p12) target bundleno = 8 (0x8), region = 227 }
 0x3fe   :  { %2178 = vsyncpa [#allocation8], 1 }
 0x3ff   :  { %2180 = vsyncpa [#allocation8 + $0x1], 1 }
 0x400   :  { %2181 = vsyncpa [#allocation10], 1 }

</bundles_post_ra>
